<compile_context>
chip_gen: v7x
topology: tpu7x:2x2x1
jax: 0.10.0
libtpu: 0.0.40
codegen_flags: <defaults>
</compile_context>

<pallas_src>
import functools
import numpy as np
import jax
import jax.numpy as jnp
from jax import lax
from jax.experimental import pallas as pl
from jax.experimental.pallas import tpu as pltpu

# ----------------------- configuration (mirrors __init__) -------------------
LOWRES = (16, 16)
LUMA_BINS = 4
SPATIAL_BINS = 4
CHANNEL_MULTIPLIER = 1
GUIDE_PTS = 4
N_IN = 3
N_OUT = 3
FEATURE_MULTIPLIER = LUMA_BINS * CHANNEL_MULTIPLIER
N_COEFF = N_OUT * (N_IN + 1)                      # 12 grid channels
NUM_DOWN = int(np.log2(min(LOWRES) / SPATIAL_BINS))
N_SPLAT = (2 ** (NUM_DOWN - 1)) * FEATURE_MULTIPLIER


def _splat_config():
    """Static (in_c, out_c, k, stride, relu) structure of the splat tower."""
    cfg, in_c = [], N_IN
    n_extra = max(0, int(np.log2(SPATIAL_BINS) - np.log2(16)))
    extra = np.linspace(0, NUM_DOWN - 1, n_extra, dtype=int).tolist()
    for i in range(NUM_DOWN):
        out_c = (2 ** i) * FEATURE_MULTIPLIER
        cfg.append((in_c, out_c, 3, 2, True))
        if i in extra:
            cfg.append((out_c, out_c, 3, 1, True))
        in_c = out_c
    cfg.append((in_c, in_c, 1, 1, False))
    return cfg


SPLAT_CONFIG = _splat_config()
assert SPLAT_CONFIG[-1][1] == N_SPLAT


def _tile_pixel_budget():
    """Per-tile pixel budget (static).  Bigger tiles on v6e (128 MiB VMEM,
    single TensorCore); conservative elsewhere (v5e scoped default 16 MiB,
    v7x has only 64 MiB VMEM per TC and 2 TCs share the parallel grid)."""
    try:
        kind = jax.devices()[0].device_kind.lower()
    except Exception:
        return 64 * 1024
    if "v6" in kind:
        return 128 * 1024
    return 64 * 1024


_TILE_PIXEL_BUDGET = _tile_pixel_budget()


# ============ Pallas kernel: fused guide map + bilateral slice ==============
def _guide_slice_kernel(img_ref, cgrid_ref, wy_ref, gp_ref, out_ref,
                        *, gd, n_in, n_out, guide_pts, wpad):
    """One row tile:  guide map -> luma tent -> trilinear slice -> affine.

    img_ref   : (n_in, TH, W)        planar f32, W lane-dense
    cgrid_ref : (gd, 4, n_coeff*W)   gx-contracted grid (per-batch constant)
    wy_ref    : (TH, 4)              row (gy) tent weights for this tile
    gp_ref    : (34,) SMEM           [ccm(9), shifts'(12), slopes'(12), proj_b]
    out_ref   : (n_out, TH, W)
    """
    off_shift = n_in * n_in
    off_slope = off_shift + n_in * guide_pts
    off_projb = off_slope + n_in * guide_pts

    # ---- guide map: folded ccm mix + piecewise-linear curve + clip ----
    # slopes' = slopes * proj_w, shifts' = shifts - ccm_b  (folded in wrapper)
    guide = None
    for c in range(n_in):
        lin = None
        for i in range(n_in):
            contrib = img_ref[i] * gp_ref[c * n_in + i]
            lin = contrib if lin is None else lin + contrib
        for p in range(guide_pts):
            shift = gp_ref[off_shift + c * guide_pts + p]
            slope = gp_ref[off_slope + c * guide_pts + p]
            term = jnp.maximum(lin - shift, 0.0) * slope
            guide = term if guide is None else guide + term
    guide = jnp.clip(guide + gp_ref[off_projb], 0.0, 1.0)          # (TH, W)

    # ---- luma coordinate (HDRNet convention, clamped grid edges) ----
    t = guide * float(gd) - 0.5

    # ---- trilinear slice + per-pixel affine apply ----
    # Per luma level: one (TH,4)@(4, n_coeff*W) MXU dot (gy contraction); the
    # sliced planes are lane-aligned column slices; everything downstream is
    # lane-dense VPU FMAs.  wz is derived per level, nothing persists across z
    # except the three f32 accumulators.
    wy = wy_ref[...]                                               # (TH, 4)
    acc = [None] * n_out
    for z in range(gd):
        wz = jnp.maximum(1.0 - jnp.abs(t - float(z)), 0.0)
        if z == 0:
            wz = wz + jnp.maximum(1.0 - jnp.abs(t + 1.0), 0.0)
        if z == gd - 1:
            wz = wz + jnp.maximum(1.0 - jnp.abs(float(gd) - t), 0.0)
        # NOTE: default MXU precision (~1e-3 rel err vs fp32 torch); pass
        # precision=lax.Precision.HIGHEST here for closer parity if needed.
        gz = jnp.dot(wy, cgrid_ref[z], preferred_element_type=jnp.float32)
        for o in range(n_out):
            base = o * (n_in + 1)
            a = gz[:, (base + n_in) * wpad:(base + n_in + 1) * wpad]  # offset
            for i in range(n_in):
                a = a + gz[:, (base + i) * wpad:(base + i + 1) * wpad] * img_ref[i]
            term = wz * a
            acc[o] = term if acc[o] is None else acc[o] + term

    for o in range(n_out):
        out_ref[o] = acc[o]


def _pick_row_tile(H, W, max_pixels, max_rows=512):
    """Largest row tile TH (multiple of 8, divides H) within the pixel budget.
    H is already padded to a multiple of 8 by the wrapper."""
    best = 8
    th = 8
    while th <= H:
        if H % th == 0 and th * W <= max_pixels and th <= max_rows:
            best = th
        th += 8
    return min(best, H)


def guide_and_slice(image, cgrid, wy, gparams, *, gd, n_out, guide_pts,
                    row_tile):
    """Fused guide-map + bilateral slice + affine apply.  Padded NCHW in/out."""
    N, n_in, H, W = image.shape
    sb = cgrid.shape[2]
    L = cgrid.shape[3]
    TH = row_tile
    assert H % TH == 0 and W % 128 == 0 and TH % 8 == 0

    kernel = functools.partial(_guide_slice_kernel, gd=gd, n_in=n_in,
                               n_out=n_out, guide_pts=guide_pts, wpad=W)
    smem = pl.BlockSpec(memory_space=pltpu.MemorySpace.SMEM)
    return pl.pallas_call(
        kernel,
        out_shape=jax.ShapeDtypeStruct((N, n_out, H, W), jnp.float32),
        grid=(N, H // TH),
        in_specs=[
            # full-res image: row-tiled, W lane-dense
            pl.BlockSpec((None, n_in, TH, W), lambda n, h: (n, 0, h, 0)),
            # gx-contracted grid: per-batch constant (no re-DMA across h)
            pl.BlockSpec((None, gd, sb, L), lambda n, h: (n, 0, 0, 0)),
            # row tent weights for this tile
            pl.BlockSpec((TH, sb), lambda n, h: (h, 0)),
            # flattened guide scalars
            smem,
        ],
        out_specs=pl.BlockSpec((None, n_out, TH, W), lambda n, h: (n, 0, h, 0)),
        compiler_params=pltpu.CompilerParams(
            dimension_semantics=("parallel", "parallel"),
            vmem_limit_bytes=32 * 1024 * 1024),
    )(image, cgrid, wy, gparams)


# --------------------- low-res coefficient branch (plain XLA) ----------------
def conv_block(x, w, b, stride=1, relu=True):
    """Conv2d (padding = k//2) in NCHW / OIHW + bias (+ReLU).  Tiny 16x16 ops."""
    k = w.shape[2]
    pad = k // 2
    y = lax.conv_general_dilated(
        x, w, window_strides=(stride, stride),
        padding=((pad, pad), (pad, pad)),
        dimension_numbers=('NCHW', 'OIHW', 'NCHW'))
    y = y + b[None, :, None, None]
    if relu:
        y = jnp.maximum(y, 0.0)
    return y


def resize_bilinear_nchw(x, out_h, out_w):
    """F.interpolate(mode='bilinear', align_corners=False, antialias=False)."""
    N, C, H, W = x.shape

    def src_idx(out_size, in_size):
        s = (np.arange(out_size) + 0.5) * (in_size / out_size) - 0.5
        s = np.maximum(s, 0.0)
        i0 = np.minimum(np.floor(s).astype(np.int64), in_size - 1)
        i1 = np.minimum(i0 + 1, in_size - 1)
        frac = (s - i0).astype(np.float32)
        return i0, i1, frac

    y0, y1, fy = src_idx(out_h, H)
    x0, x1, fx = src_idx(out_w, W)
    top = (x[:, :, y0, :] * (1.0 - fy)[None, None, :, None]
           + x[:, :, y1, :] * fy[None, None, :, None])
    out = (top[:, :, :, x0] * (1.0 - fx)[None, None, None, :]
           + top[:, :, :, x1] * fx[None, None, None, :])
    return out


def adaptive_avg_pool_nchw(x, out_size):
    """nn.AdaptiveAvgPool2d semantics (floor/ceil windows)."""
    N, C, H, W = x.shape
    rows = []
    for i in range(out_size):
        h0, h1 = (i * H) // out_size, -(-((i + 1) * H) // out_size)
        cols = []
        for j in range(out_size):
            w0, w1 = (j * W) // out_size, -(-((j + 1) * W) // out_size)
            cols.append(jnp.mean(x[:, :, h0:h1, w0:w1], axis=(2, 3)))
        rows.append(jnp.stack(cols, axis=-1))
    return jnp.stack(rows, axis=-2)                   # (N, C, out, out)


def tent_matrix(out_size, grid_size):
    """Spatial tent weights of the HDRNet bilateral slice (clamped edges)."""
    t = (np.arange(out_size) + 0.5) * grid_size / out_size - 0.5
    g = np.arange(grid_size)
    w = np.maximum(1.0 - np.abs(g[None, :] - t[:, None]), 0.0)
    w[:, 0] += np.maximum(1.0 - np.abs(-1.0 - t), 0.0)
    w[:, -1] += np.maximum(1.0 - np.abs(grid_size - t), 0.0)
    return w.astype(np.float32)


# ----------------------------- parameters ------------------------------------
def init_params(key):
    keys = iter(jax.random.split(key, 64))

    def conv(cin, cout, k):
        scale = 1.0 / np.sqrt(k * k * cin)
        w = jax.random.normal(next(keys), (cout, cin, k, k), jnp.float32) * scale
        b = jax.random.normal(next(keys), (cout,), jnp.float32) * scale
        return w, b

    params = {}
    # splat tower weights (static structure lives in SPLAT_CONFIG)
    splat = []
    for (cin, cout, k, _stride, _relu) in SPLAT_CONFIG:
        w, b = conv(cin, cout, k)
        splat.append(dict(w=w, b=b))
    params['splat'] = splat

    local = []
    for cin, cout in [(N_SPLAT, 2 * N_SPLAT), (2 * N_SPLAT, 2 * N_SPLAT),
                      (2 * N_SPLAT, N_SPLAT)]:
        w, b = conv(cin, cout, 1)
        local.append(dict(w=w, b=b))
    params['local'] = local

    w, b = conv(N_SPLAT, 4, 1)
    params['cond_conv'] = dict(w=w, b=b)

    def fcp(cin, cout):   # fc(...) assumed Linear + ReLU (relu in forward)
        scale = 1.0 / np.sqrt(cin)
        w = jax.random.normal(next(keys), (cin, cout), jnp.float32) * scale
        b = jax.random.normal(next(keys), (cout,), jnp.float32) * scale
        return dict(w=w, b=b)

    params['fc1'] = fcp(64, 64)
    params['fc2'] = fcp(64, N_SPLAT)

    w, b = conv(N_SPLAT, LUMA_BINS * (N_IN + 1) * N_OUT, 1)
    params['pred'] = dict(w=w, b=b)

    # guide params (mirrors make_guide_params; fixed eps instead of randn(1))
    params['ccm'] = jnp.asarray(np.identity(N_IN, dtype=np.float32) + 1e-4)
    params['ccm_b'] = jnp.zeros((N_IN,), jnp.float32)
    shifts = np.linspace(0, 1, GUIDE_PTS, endpoint=False, dtype=np.float32)
    params['shifts'] = jnp.asarray(np.tile(shifts[None, :], (N_IN, 1)))
    slopes = np.zeros((N_IN, GUIDE_PTS), np.float32)
    slopes[:, 0] = 1.0
    params['slopes'] = jnp.asarray(slopes)
    params['proj_w'] = jnp.full((N_IN,), 1.0 / N_IN, jnp.float32)
    params['proj_b'] = jnp.zeros((1,), jnp.float32)
    return params


# ----------------------------- forward ---------------------------------------
def forward(params, image_nchw, val_nchw):
    image = image_nchw.astype(jnp.float32)                       # NCHW
    N, _, H, W = image.shape
    sb = SPATIAL_BINS

    # ---- low-res coefficient branch (tiny; plain XLA per perf guidance) ----
    x = resize_bilinear_nchw(image, LOWRES[0], LOWRES[1])
    for layer, (_cin, _cout, _k, stride, relu) in zip(params['splat'],
                                                      SPLAT_CONFIG):
        x = conv_block(x, layer['w'], layer['b'], stride=stride, relu=relu)
    splat_feat = x + val_nchw

    y = splat_feat
    for layer in params['local']:
        y = conv_block(y, layer['w'], layer['b'], stride=1, relu=True)
    local_feat = y

    c = conv_block(splat_feat, params['cond_conv']['w'],
                   params['cond_conv']['b'], stride=2, relu=True)
    c = adaptive_avg_pool_nchw(c, 4)
    c = c.reshape(N, -1)                                         # NCHW flatten
    c = jnp.maximum(c @ params['fc1']['w'] + params['fc1']['b'], 0.0)
    c = jnp.maximum(c @ params['fc2']['w'] + params['fc2']['b'], 0.0)
    cond = c.reshape(N, N_SPLAT, 1, 1)

    fused = jnp.maximum(cond + local_feat, 0.0)
    pred = conv_block(fused, params['pred']['w'], params['pred']['b'],
                      stride=1, relu=False)                      # (N, 48, sb, sb)

    # grid5[n, z, gy, gx, c] with pred channel index = z * N_COEFF + c
    grid5 = pred.reshape(N, LUMA_BINS, N_COEFF, sb, sb).transpose(0, 1, 3, 4, 2)

    # ---- lane-dense padding of the full-res spatial dims ----
    H_pad = -(-H // 8) * 8
    W_pad = -(-W // 128) * 128
    if (H_pad, W_pad) != (H, W):
        image_p = jnp.pad(image, ((0, 0), (0, 0), (0, H_pad - H),
                                  (0, W_pad - W)))
    else:
        image_p = image

    # ---- precompute the COLUMN (gx) tent contraction: lane-dense cgrid ----
    wx = np.zeros((W_pad, sb), np.float32)
    wx[:W] = tent_matrix(W, sb)
    wym = np.zeros((H_pad, sb), np.float32)
    wym[:H] = tent_matrix(H, sb)
    # cgrid[n, z, gy, c*W_pad + w] = sum_gx wx[w, gx] * grid5[n, z, gy, gx, c]
    cgrid = jnp.einsum('wx,nzyxc->nzycw', jnp.asarray(wx), grid5)
    cgrid = cgrid.reshape(N, LUMA_BINS, sb, N_COEFF * W_pad)
    wy = jnp.asarray(wym)                                        # (H_pad, sb)

    # ---- fold guide constants, flatten to one 1-D SMEM vector ----
    shifts_f = params['shifts'] - params['ccm_b'][:, None]
    slopes_f = params['slopes'] * params['proj_w'][:, None]
    gparams = jnp.concatenate([params['ccm'].reshape(-1),
                               shifts_f.reshape(-1),
                               slopes_f.reshape(-1),
                               params['proj_b'].reshape(-1)]).astype(jnp.float32)

    # ---- fused guide-map + bilateral slice + affine apply (Pallas) ----
    th = _pick_row_tile(H_pad, W_pad, max_pixels=_TILE_PIXEL_BUDGET)
    out = guide_and_slice(image_p, cgrid, wy, gparams,
                          gd=LUMA_BINS, n_out=N_OUT, guide_pts=GUIDE_PTS,
                          row_tile=th)
    if (H_pad, W_pad) != (H, W):
        out = out[:, :, :H, :W]
    return out                                                   # NCHW


# ----------------------------- main -------------------------------------------
if __name__ == "__main__":
    key = jax.random.PRNGKey(0)
    kp, ki, kv = jax.random.split(key, 3)
    params = init_params(kp)
    image = jax.random.uniform(ki, (2, N_IN, 32, 32), jnp.float32)
    val = jax.random.normal(kv, (2, 1, 1, 1), jnp.float32) * 0.1

    fwd = jax.jit(forward)
    out = jax.block_until_ready(fwd(params, image, val))
    assert out.shape == (2, N_OUT, 32, 32), out.shape
    assert bool(np.all(np.isfinite(np.asarray(out))))
    print("KERNEL_OK")
</pallas_src>

<mosaic_0001>
module attributes {stable_mosaic.version = 11 : i64} {
  func.func @_guide_slice_kernel(%arg0: i32, %arg1: i32, %arg2: memref<1x3x32x128xf32, #tpu.memory_space<vmem>>, %arg3: memref<1x4x4x1536xf32, #tpu.memory_space<vmem>>, %arg4: memref<32x4xf32, #tpu.memory_space<vmem>>, %arg5: memref<34xf32, #tpu.memory_space<smem>>, %arg6: memref<1x3x32x128xf32, #tpu.memory_space<vmem>>) attributes {dimension_semantics = [#tpu.dimension_semantics<parallel>, #tpu.dimension_semantics<parallel>], iteration_bounds = array<i64: 2, 1>, scalar_prefetch = 0 : i64, scratch_operands = 0 : i64, tpu.core_type = #tpu.core_type<tc>, window_params = [{transform_indices = @transform_0, window_bounds = array<i64: 1, 3, 32, 128>}, {transform_indices = @transform_1, window_bounds = array<i64: 1, 4, 4, 1536>}, {transform_indices = @transform_2, window_bounds = array<i64: 32, 4>}, {transform_indices = @transform_3, window_bounds = array<i64: 34>}, {transform_indices = @transform_4, window_bounds = array<i64: 1, 3, 32, 128>}]} {
    %c0 = arith.constant 0 : index
    %c0_0 = arith.constant 0 : index
    %c0_1 = arith.constant 0 : index
    %c0_2 = arith.constant 0 : index
    %0 = vector.load %arg2[%c0, %c0_0, %c0_1, %c0_2] : memref<1x3x32x128xf32, #tpu.memory_space<vmem>>, vector<1x1x32x128xf32>
    %1 = vector.shape_cast %0 : vector<1x1x32x128xf32> to vector<32x128xf32>
    %c0_3 = arith.constant 0 : index
    %2 = memref.load %arg5[%c0_3] : memref<34xf32, #tpu.memory_space<smem>>
    %3 = vector.broadcast %2 : f32 to vector<32x128xf32>
    %4 = arith.mulf %1, %3 : vector<32x128xf32>
    %c0_4 = arith.constant 0 : index
    %c1 = arith.constant 1 : index
    %c0_5 = arith.constant 0 : index
    %c0_6 = arith.constant 0 : index
    %5 = vector.load %arg2[%c0_4, %c1, %c0_5, %c0_6] : memref<1x3x32x128xf32, #tpu.memory_space<vmem>>, vector<1x1x32x128xf32>
    %6 = vector.shape_cast %5 : vector<1x1x32x128xf32> to vector<32x128xf32>
    %c1_7 = arith.constant 1 : index
    %7 = memref.load %arg5[%c1_7] : memref<34xf32, #tpu.memory_space<smem>>
    %8 = vector.broadcast %7 : f32 to vector<32x128xf32>
    %9 = arith.mulf %6, %8 : vector<32x128xf32>
    %10 = arith.addf %4, %9 : vector<32x128xf32>
    %c0_8 = arith.constant 0 : index
    %c2 = arith.constant 2 : index
    %c0_9 = arith.constant 0 : index
    %c0_10 = arith.constant 0 : index
    %11 = vector.load %arg2[%c0_8, %c2, %c0_9, %c0_10] : memref<1x3x32x128xf32, #tpu.memory_space<vmem>>, vector<1x1x32x128xf32>
    %12 = vector.shape_cast %11 : vector<1x1x32x128xf32> to vector<32x128xf32>
    %c2_11 = arith.constant 2 : index
    %13 = memref.load %arg5[%c2_11] : memref<34xf32, #tpu.memory_space<smem>>
    %14 = vector.broadcast %13 : f32 to vector<32x128xf32>
    %15 = arith.mulf %12, %14 : vector<32x128xf32>
    %16 = arith.addf %10, %15 : vector<32x128xf32>
    %c9 = arith.constant 9 : index
    %17 = memref.load %arg5[%c9] : memref<34xf32, #tpu.memory_space<smem>>
    %c21 = arith.constant 21 : index
    %18 = memref.load %arg5[%c21] : memref<34xf32, #tpu.memory_space<smem>>
    %19 = vector.broadcast %17 : f32 to vector<32x128xf32>
    %20 = arith.subf %16, %19 : vector<32x128xf32>
    %cst = arith.constant 0.000000e+00 : f32
    %21 = vector.broadcast %cst : f32 to vector<32x128xf32>
    %22 = arith.maximumf %20, %21 : vector<32x128xf32>
    %23 = vector.broadcast %18 : f32 to vector<32x128xf32>
    %24 = arith.mulf %22, %23 : vector<32x128xf32>
    %c10 = arith.constant 10 : index
    %25 = memref.load %arg5[%c10] : memref<34xf32, #tpu.memory_space<smem>>
    %c22 = arith.constant 22 : index
    %26 = memref.load %arg5[%c22] : memref<34xf32, #tpu.memory_space<smem>>
    %27 = vector.broadcast %25 : f32 to vector<32x128xf32>
    %28 = arith.subf %16, %27 : vector<32x128xf32>
    %cst_12 = arith.constant 0.000000e+00 : f32
    %29 = vector.broadcast %cst_12 : f32 to vector<32x128xf32>
    %30 = arith.maximumf %28, %29 : vector<32x128xf32>
    %31 = vector.broadcast %26 : f32 to vector<32x128xf32>
    %32 = arith.mulf %30, %31 : vector<32x128xf32>
    %33 = arith.addf %24, %32 : vector<32x128xf32>
    %c11 = arith.constant 11 : index
    %34 = memref.load %arg5[%c11] : memref<34xf32, #tpu.memory_space<smem>>
    %c23 = arith.constant 23 : index
    %35 = memref.load %arg5[%c23] : memref<34xf32, #tpu.memory_space<smem>>
    %36 = vector.broadcast %34 : f32 to vector<32x128xf32>
    %37 = arith.subf %16, %36 : vector<32x128xf32>
    %cst_13 = arith.constant 0.000000e+00 : f32
    %38 = vector.broadcast %cst_13 : f32 to vector<32x128xf32>
    %39 = arith.maximumf %37, %38 : vector<32x128xf32>
    %40 = vector.broadcast %35 : f32 to vector<32x128xf32>
    %41 = arith.mulf %39, %40 : vector<32x128xf32>
    %42 = arith.addf %33, %41 : vector<32x128xf32>
    %c12 = arith.constant 12 : index
    %43 = memref.load %arg5[%c12] : memref<34xf32, #tpu.memory_space<smem>>
    %c24 = arith.constant 24 : index
    %44 = memref.load %arg5[%c24] : memref<34xf32, #tpu.memory_space<smem>>
    %45 = vector.broadcast %43 : f32 to vector<32x128xf32>
    %46 = arith.subf %16, %45 : vector<32x128xf32>
    %cst_14 = arith.constant 0.000000e+00 : f32
    %47 = vector.broadcast %cst_14 : f32 to vector<32x128xf32>
    %48 = arith.maximumf %46, %47 : vector<32x128xf32>
    %49 = vector.broadcast %44 : f32 to vector<32x128xf32>
    %50 = arith.mulf %48, %49 : vector<32x128xf32>
    %51 = arith.addf %42, %50 : vector<32x128xf32>
    %c0_15 = arith.constant 0 : index
    %c0_16 = arith.constant 0 : index
    %c0_17 = arith.constant 0 : index
    %c0_18 = arith.constant 0 : index
    %52 = vector.load %arg2[%c0_15, %c0_16, %c0_17, %c0_18] : memref<1x3x32x128xf32, #tpu.memory_space<vmem>>, vector<1x1x32x128xf32>
    %53 = vector.shape_cast %52 : vector<1x1x32x128xf32> to vector<32x128xf32>
    %c3 = arith.constant 3 : index
    %54 = memref.load %arg5[%c3] : memref<34xf32, #tpu.memory_space<smem>>
    %55 = vector.broadcast %54 : f32 to vector<32x128xf32>
    %56 = arith.mulf %53, %55 : vector<32x128xf32>
    %c0_19 = arith.constant 0 : index
    %c1_20 = arith.constant 1 : index
    %c0_21 = arith.constant 0 : index
    %c0_22 = arith.constant 0 : index
    %57 = vector.load %arg2[%c0_19, %c1_20, %c0_21, %c0_22] : memref<1x3x32x128xf32, #tpu.memory_space<vmem>>, vector<1x1x32x128xf32>
    %58 = vector.shape_cast %57 : vector<1x1x32x128xf32> to vector<32x128xf32>
    %c4 = arith.constant 4 : index
    %59 = memref.load %arg5[%c4] : memref<34xf32, #tpu.memory_space<smem>>
    %60 = vector.broadcast %59 : f32 to vector<32x128xf32>
    %61 = arith.mulf %58, %60 : vector<32x128xf32>
    %62 = arith.addf %56, %61 : vector<32x128xf32>
    %c0_23 = arith.constant 0 : index
    %c2_24 = arith.constant 2 : index
    %c0_25 = arith.constant 0 : index
    %c0_26 = arith.constant 0 : index
    %63 = vector.load %arg2[%c0_23, %c2_24, %c0_25, %c0_26] : memref<1x3x32x128xf32, #tpu.memory_space<vmem>>, vector<1x1x32x128xf32>
    %64 = vector.shape_cast %63 : vector<1x1x32x128xf32> to vector<32x128xf32>
    %c5 = arith.constant 5 : index
    %65 = memref.load %arg5[%c5] : memref<34xf32, #tpu.memory_space<smem>>
    %66 = vector.broadcast %65 : f32 to vector<32x128xf32>
    %67 = arith.mulf %64, %66 : vector<32x128xf32>
    %68 = arith.addf %62, %67 : vector<32x128xf32>
    %c13 = arith.constant 13 : index
    %69 = memref.load %arg5[%c13] : memref<34xf32, #tpu.memory_space<smem>>
    %c25 = arith.constant 25 : index
    %70 = memref.load %arg5[%c25] : memref<34xf32, #tpu.memory_space<smem>>
    %71 = vector.broadcast %69 : f32 to vector<32x128xf32>
    %72 = arith.subf %68, %71 : vector<32x128xf32>
    %cst_27 = arith.constant 0.000000e+00 : f32
    %73 = vector.broadcast %cst_27 : f32 to vector<32x128xf32>
    %74 = arith.maximumf %72, %73 : vector<32x128xf32>
    %75 = vector.broadcast %70 : f32 to vector<32x128xf32>
    %76 = arith.mulf %74, %75 : vector<32x128xf32>
    %77 = arith.addf %51, %76 : vector<32x128xf32>
    %c14 = arith.constant 14 : index
    %78 = memref.load %arg5[%c14] : memref<34xf32, #tpu.memory_space<smem>>
    %c26 = arith.constant 26 : index
    %79 = memref.load %arg5[%c26] : memref<34xf32, #tpu.memory_space<smem>>
    %80 = vector.broadcast %78 : f32 to vector<32x128xf32>
    %81 = arith.subf %68, %80 : vector<32x128xf32>
    %cst_28 = arith.constant 0.000000e+00 : f32
    %82 = vector.broadcast %cst_28 : f32 to vector<32x128xf32>
    %83 = arith.maximumf %81, %82 : vector<32x128xf32>
    %84 = vector.broadcast %79 : f32 to vector<32x128xf32>
    %85 = arith.mulf %83, %84 : vector<32x128xf32>
    %86 = arith.addf %77, %85 : vector<32x128xf32>
    %c15 = arith.constant 15 : index
    %87 = memref.load %arg5[%c15] : memref<34xf32, #tpu.memory_space<smem>>
    %c27 = arith.constant 27 : index
    %88 = memref.load %arg5[%c27] : memref<34xf32, #tpu.memory_space<smem>>
    %89 = vector.broadcast %87 : f32 to vector<32x128xf32>
    %90 = arith.subf %68, %89 : vector<32x128xf32>
    %cst_29 = arith.constant 0.000000e+00 : f32
    %91 = vector.broadcast %cst_29 : f32 to vector<32x128xf32>
    %92 = arith.maximumf %90, %91 : vector<32x128xf32>
    %93 = vector.broadcast %88 : f32 to vector<32x128xf32>
    %94 = arith.mulf %92, %93 : vector<32x128xf32>
    %95 = arith.addf %86, %94 : vector<32x128xf32>
    %c16 = arith.constant 16 : index
    %96 = memref.load %arg5[%c16] : memref<34xf32, #tpu.memory_space<smem>>
    %c28 = arith.constant 28 : index
    %97 = memref.load %arg5[%c28] : memref<34xf32, #tpu.memory_space<smem>>
    %98 = vector.broadcast %96 : f32 to vector<32x128xf32>
    %99 = arith.subf %68, %98 : vector<32x128xf32>
    %cst_30 = arith.constant 0.000000e+00 : f32
    %100 = vector.broadcast %cst_30 : f32 to vector<32x128xf32>
    %101 = arith.maximumf %99, %100 : vector<32x128xf32>
    %102 = vector.broadcast %97 : f32 to vector<32x128xf32>
    %103 = arith.mulf %101, %102 : vector<32x128xf32>
    %104 = arith.addf %95, %103 : vector<32x128xf32>
    %c0_31 = arith.constant 0 : index
    %c0_32 = arith.constant 0 : index
    %c0_33 = arith.constant 0 : index
    %c0_34 = arith.constant 0 : index
    %105 = vector.load %arg2[%c0_31, %c0_32, %c0_33, %c0_34] : memref<1x3x32x128xf32, #tpu.memory_space<vmem>>, vector<1x1x32x128xf32>
    %106 = vector.shape_cast %105 : vector<1x1x32x128xf32> to vector<32x128xf32>
    %c6 = arith.constant 6 : index
    %107 = memref.load %arg5[%c6] : memref<34xf32, #tpu.memory_space<smem>>
    %108 = vector.broadcast %107 : f32 to vector<32x128xf32>
    %109 = arith.mulf %106, %108 : vector<32x128xf32>
    %c0_35 = arith.constant 0 : index
    %c1_36 = arith.constant 1 : index
    %c0_37 = arith.constant 0 : index
    %c0_38 = arith.constant 0 : index
    %110 = vector.load %arg2[%c0_35, %c1_36, %c0_37, %c0_38] : memref<1x3x32x128xf32, #tpu.memory_space<vmem>>, vector<1x1x32x128xf32>
    %111 = vector.shape_cast %110 : vector<1x1x32x128xf32> to vector<32x128xf32>
    %c7 = arith.constant 7 : index
    %112 = memref.load %arg5[%c7] : memref<34xf32, #tpu.memory_space<smem>>
    %113 = vector.broadcast %112 : f32 to vector<32x128xf32>
    %114 = arith.mulf %111, %113 : vector<32x128xf32>
    %115 = arith.addf %109, %114 : vector<32x128xf32>
    %c0_39 = arith.constant 0 : index
    %c2_40 = arith.constant 2 : index
    %c0_41 = arith.constant 0 : index
    %c0_42 = arith.constant 0 : index
    %116 = vector.load %arg2[%c0_39, %c2_40, %c0_41, %c0_42] : memref<1x3x32x128xf32, #tpu.memory_space<vmem>>, vector<1x1x32x128xf32>
    %117 = vector.shape_cast %116 : vector<1x1x32x128xf32> to vector<32x128xf32>
    %c8 = arith.constant 8 : index
    %118 = memref.load %arg5[%c8] : memref<34xf32, #tpu.memory_space<smem>>
    %119 = vector.broadcast %118 : f32 to vector<32x128xf32>
    %120 = arith.mulf %117, %119 : vector<32x128xf32>
    %121 = arith.addf %115, %120 : vector<32x128xf32>
    %c17 = arith.constant 17 : index
    %122 = memref.load %arg5[%c17] : memref<34xf32, #tpu.memory_space<smem>>
    %c29 = arith.constant 29 : index
    %123 = memref.load %arg5[%c29] : memref<34xf32, #tpu.memory_space<smem>>
    %124 = vector.broadcast %122 : f32 to vector<32x128xf32>
    %125 = arith.subf %121, %124 : vector<32x128xf32>
    %cst_43 = arith.constant 0.000000e+00 : f32
    %126 = vector.broadcast %cst_43 : f32 to vector<32x128xf32>
    %127 = arith.maximumf %125, %126 : vector<32x128xf32>
    %128 = vector.broadcast %123 : f32 to vector<32x128xf32>
    %129 = arith.mulf %127, %128 : vector<32x128xf32>
    %130 = arith.addf %104, %129 : vector<32x128xf32>
    %c18 = arith.constant 18 : index
    %131 = memref.load %arg5[%c18] : memref<34xf32, #tpu.memory_space<smem>>
    %c30 = arith.constant 30 : index
    %132 = memref.load %arg5[%c30] : memref<34xf32, #tpu.memory_space<smem>>
    %133 = vector.broadcast %131 : f32 to vector<32x128xf32>
    %134 = arith.subf %121, %133 : vector<32x128xf32>
    %cst_44 = arith.constant 0.000000e+00 : f32
    %135 = vector.broadcast %cst_44 : f32 to vector<32x128xf32>
    %136 = arith.maximumf %134, %135 : vector<32x128xf32>
    %137 = vector.broadcast %132 : f32 to vector<32x128xf32>
    %138 = arith.mulf %136, %137 : vector<32x128xf32>
    %139 = arith.addf %130, %138 : vector<32x128xf32>
    %c19 = arith.constant 19 : index
    %140 = memref.load %arg5[%c19] : memref<34xf32, #tpu.memory_space<smem>>
    %c31 = arith.constant 31 : index
    %141 = memref.load %arg5[%c31] : memref<34xf32, #tpu.memory_space<smem>>
    %142 = vector.broadcast %140 : f32 to vector<32x128xf32>
    %143 = arith.subf %121, %142 : vector<32x128xf32>
    %cst_45 = arith.constant 0.000000e+00 : f32
    %144 = vector.broadcast %cst_45 : f32 to vector<32x128xf32>
    %145 = arith.maximumf %143, %144 : vector<32x128xf32>
    %146 = vector.broadcast %141 : f32 to vector<32x128xf32>
    %147 = arith.mulf %145, %146 : vector<32x128xf32>
    %148 = arith.addf %139, %147 : vector<32x128xf32>
    %c20 = arith.constant 20 : index
    %149 = memref.load %arg5[%c20] : memref<34xf32, #tpu.memory_space<smem>>
    %c32 = arith.constant 32 : index
    %150 = memref.load %arg5[%c32] : memref<34xf32, #tpu.memory_space<smem>>
    %151 = vector.broadcast %149 : f32 to vector<32x128xf32>
    %152 = arith.subf %121, %151 : vector<32x128xf32>
    %cst_46 = arith.constant 0.000000e+00 : f32
    %153 = vector.broadcast %cst_46 : f32 to vector<32x128xf32>
    %154 = arith.maximumf %152, %153 : vector<32x128xf32>
    %155 = vector.broadcast %150 : f32 to vector<32x128xf32>
    %156 = arith.mulf %154, %155 : vector<32x128xf32>
    %157 = arith.addf %148, %156 : vector<32x128xf32>
    %c33 = arith.constant 33 : index
    %158 = memref.load %arg5[%c33] : memref<34xf32, #tpu.memory_space<smem>>
    %159 = vector.broadcast %158 : f32 to vector<32x128xf32>
    %160 = arith.addf %157, %159 : vector<32x128xf32>
    %cst_47 = arith.constant 0.000000e+00 : f32
    %cst_48 = arith.constant 1.000000e+00 : f32
    %161 = vector.broadcast %cst_47 : f32 to vector<32x128xf32>
    %162 = arith.maximumf %161, %160 : vector<32x128xf32>
    %163 = vector.broadcast %cst_48 : f32 to vector<32x128xf32>
    %164 = arith.minimumf %163, %162 : vector<32x128xf32>
    %cst_49 = arith.constant 4.000000e+00 : f32
    %165 = vector.broadcast %cst_49 : f32 to vector<32x128xf32>
    %166 = arith.mulf %164, %165 : vector<32x128xf32>
    %cst_50 = arith.constant 5.000000e-01 : f32
    %167 = vector.broadcast %cst_50 : f32 to vector<32x128xf32>
    %168 = arith.subf %166, %167 : vector<32x128xf32>
    %c0_51 = arith.constant 0 : index
    %c0_52 = arith.constant 0 : index
    %169 = vector.load %arg4[%c0_51, %c0_52] : memref<32x4xf32, #tpu.memory_space<vmem>>, vector<32x4xf32>
    %cst_53 = arith.constant 0.000000e+00 : f32
    %170 = vector.broadcast %cst_53 : f32 to vector<32x128xf32>
    %171 = arith.subf %168, %170 : vector<32x128xf32>
    %172 = math.absf %171 : vector<32x128xf32>
    %cst_54 = arith.constant 1.000000e+00 : f32
    %173 = vector.broadcast %cst_54 : f32 to vector<32x128xf32>
    %174 = arith.subf %173, %172 : vector<32x128xf32>
    %cst_55 = arith.constant 0.000000e+00 : f32
    %175 = vector.broadcast %cst_55 : f32 to vector<32x128xf32>
    %176 = arith.maximumf %174, %175 : vector<32x128xf32>
    %cst_56 = arith.constant 1.000000e+00 : f32
    %177 = vector.broadcast %cst_56 : f32 to vector<32x128xf32>
    %178 = arith.addf %168, %177 : vector<32x128xf32>
    %179 = math.absf %178 : vector<32x128xf32>
    %cst_57 = arith.constant 1.000000e+00 : f32
    %180 = vector.broadcast %cst_57 : f32 to vector<32x128xf32>
    %181 = arith.subf %180, %179 : vector<32x128xf32>
    %cst_58 = arith.constant 0.000000e+00 : f32
    %182 = vector.broadcast %cst_58 : f32 to vector<32x128xf32>
    %183 = arith.maximumf %181, %182 : vector<32x128xf32>
    %184 = arith.addf %176, %183 : vector<32x128xf32>
    %c0_59 = arith.constant 0 : index
    %c0_60 = arith.constant 0 : index
    %c0_61 = arith.constant 0 : index
    %c0_62 = arith.constant 0 : index
    %185 = vector.load %arg3[%c0_59, %c0_60, %c0_61, %c0_62] : memref<1x4x4x1536xf32, #tpu.memory_space<vmem>>, vector<1x1x4x1536xf32>
    %186 = vector.shape_cast %185 : vector<1x1x4x1536xf32> to vector<4x1536xf32>
    %cst_63 = arith.constant dense<0.000000e+00> : vector<32x1536xf32>
    %187 = tpu.matmul %169, %186, %cst_63 {dimension_numbers = #tpu.dot_dimension_numbers<[1], [0], [0], [1], [0, 0, 1, 1], [], []>} : vector<32x4xf32>, vector<4x1536xf32>, vector<32x1536xf32> -> vector<32x1536xf32>
    %188 = vector.extract_strided_slice %187 {offsets = [0, 384], sizes = [32, 128], strides = [1, 1]} : vector<32x1536xf32> to vector<32x128xf32>
    %189 = vector.extract_strided_slice %187 {offsets = [0, 0], sizes = [32, 128], strides = [1, 1]} : vector<32x1536xf32> to vector<32x128xf32>
    %c0_64 = arith.constant 0 : index
    %c0_65 = arith.constant 0 : index
    %c0_66 = arith.constant 0 : index
    %c0_67 = arith.constant 0 : index
    %190 = vector.load %arg2[%c0_64, %c0_65, %c0_66, %c0_67] : memref<1x3x32x128xf32, #tpu.memory_space<vmem>>, vector<1x1x32x128xf32>
    %191 = vector.shape_cast %190 : vector<1x1x32x128xf32> to vector<32x128xf32>
    %192 = arith.mulf %189, %191 : vector<32x128xf32>
    %193 = arith.addf %188, %192 : vector<32x128xf32>
    %194 = vector.extract_strided_slice %187 {offsets = [0, 128], sizes = [32, 128], strides = [1, 1]} : vector<32x1536xf32> to vector<32x128xf32>
    %c0_68 = arith.constant 0 : index
    %c1_69 = arith.constant 1 : index
    %c0_70 = arith.constant 0 : index
    %c0_71 = arith.constant 0 : index
    %195 = vector.load %arg2[%c0_68, %c1_69, %c0_70, %c0_71] : memref<1x3x32x128xf32, #tpu.memory_space<vmem>>, vector<1x1x32x128xf32>
    %196 = vector.shape_cast %195 : vector<1x1x32x128xf32> to vector<32x128xf32>
    %197 = arith.mulf %194, %196 : vector<32x128xf32>
    %198 = arith.addf %193, %197 : vector<32x128xf32>
    %199 = vector.extract_strided_slice %187 {offsets = [0, 256], sizes = [32, 128], strides = [1, 1]} : vector<32x1536xf32> to vector<32x128xf32>
    %c0_72 = arith.constant 0 : index
    %c2_73 = arith.constant 2 : index
    %c0_74 = arith.constant 0 : index
    %c0_75 = arith.constant 0 : index
    %200 = vector.load %arg2[%c0_72, %c2_73, %c0_74, %c0_75] : memref<1x3x32x128xf32, #tpu.memory_space<vmem>>, vector<1x1x32x128xf32>
    %201 = vector.shape_cast %200 : vector<1x1x32x128xf32> to vector<32x128xf32>
    %202 = arith.mulf %199, %201 : vector<32x128xf32>
    %203 = arith.addf %198, %202 : vector<32x128xf32>
    %204 = arith.mulf %184, %203 : vector<32x128xf32>
    %205 = vector.extract_strided_slice %187 {offsets = [0, 896], sizes = [32, 128], strides = [1, 1]} : vector<32x1536xf32> to vector<32x128xf32>
    %206 = vector.extract_strided_slice %187 {offsets = [0, 512], sizes = [32, 128], strides = [1, 1]} : vector<32x1536xf32> to vector<32x128xf32>
    %c0_76 = arith.constant 0 : index
    %c0_77 = arith.constant 0 : index
    %c0_78 = arith.constant 0 : index
    %c0_79 = arith.constant 0 : index
    %207 = vector.load %arg2[%c0_76, %c0_77, %c0_78, %c0_79] : memref<1x3x32x128xf32, #tpu.memory_space<vmem>>, vector<1x1x32x128xf32>
    %208 = vector.shape_cast %207 : vector<1x1x32x128xf32> to vector<32x128xf32>
    %209 = arith.mulf %206, %208 : vector<32x128xf32>
    %210 = arith.addf %205, %209 : vector<32x128xf32>
    %211 = vector.extract_strided_slice %187 {offsets = [0, 640], sizes = [32, 128], strides = [1, 1]} : vector<32x1536xf32> to vector<32x128xf32>
    %c0_80 = arith.constant 0 : index
    %c1_81 = arith.constant 1 : index
    %c0_82 = arith.constant 0 : index
    %c0_83 = arith.constant 0 : index
    %212 = vector.load %arg2[%c0_80, %c1_81, %c0_82, %c0_83] : memref<1x3x32x128xf32, #tpu.memory_space<vmem>>, vector<1x1x32x128xf32>
    %213 = vector.shape_cast %212 : vector<1x1x32x128xf32> to vector<32x128xf32>
    %214 = arith.mulf %211, %213 : vector<32x128xf32>
    %215 = arith.addf %210, %214 : vector<32x128xf32>
    %216 = vector.extract_strided_slice %187 {offsets = [0, 768], sizes = [32, 128], strides = [1, 1]} : vector<32x1536xf32> to vector<32x128xf32>
    %c0_84 = arith.constant 0 : index
    %c2_85 = arith.constant 2 : index
    %c0_86 = arith.constant 0 : index
    %c0_87 = arith.constant 0 : index
    %217 = vector.load %arg2[%c0_84, %c2_85, %c0_86, %c0_87] : memref<1x3x32x128xf32, #tpu.memory_space<vmem>>, vector<1x1x32x128xf32>
    %218 = vector.shape_cast %217 : vector<1x1x32x128xf32> to vector<32x128xf32>
    %219 = arith.mulf %216, %218 : vector<32x128xf32>
    %220 = arith.addf %215, %219 : vector<32x128xf32>
    %221 = arith.mulf %184, %220 : vector<32x128xf32>
    %222 = vector.extract_strided_slice %187 {offsets = [0, 1408], sizes = [32, 128], strides = [1, 1]} : vector<32x1536xf32> to vector<32x128xf32>
    %223 = vector.extract_strided_slice %187 {offsets = [0, 1024], sizes = [32, 128], strides = [1, 1]} : vector<32x1536xf32> to vector<32x128xf32>
    %c0_88 = arith.constant 0 : index
    %c0_89 = arith.constant 0 : index
    %c0_90 = arith.constant 0 : index
    %c0_91 = arith.constant 0 : index
    %224 = vector.load %arg2[%c0_88, %c0_89, %c0_90, %c0_91] : memref<1x3x32x128xf32, #tpu.memory_space<vmem>>, vector<1x1x32x128xf32>
    %225 = vector.shape_cast %224 : vector<1x1x32x128xf32> to vector<32x128xf32>
    %226 = arith.mulf %223, %225 : vector<32x128xf32>
    %227 = arith.addf %222, %226 : vector<32x128xf32>
    %228 = vector.extract_strided_slice %187 {offsets = [0, 1152], sizes = [32, 128], strides = [1, 1]} : vector<32x1536xf32> to vector<32x128xf32>
    %c0_92 = arith.constant 0 : index
    %c1_93 = arith.constant 1 : index
    %c0_94 = arith.constant 0 : index
    %c0_95 = arith.constant 0 : index
    %229 = vector.load %arg2[%c0_92, %c1_93, %c0_94, %c0_95] : memref<1x3x32x128xf32, #tpu.memory_space<vmem>>, vector<1x1x32x128xf32>
    %230 = vector.shape_cast %229 : vector<1x1x32x128xf32> to vector<32x128xf32>
    %231 = arith.mulf %228, %230 : vector<32x128xf32>
    %232 = arith.addf %227, %231 : vector<32x128xf32>
    %233 = vector.extract_strided_slice %187 {offsets = [0, 1280], sizes = [32, 128], strides = [1, 1]} : vector<32x1536xf32> to vector<32x128xf32>
    %c0_96 = arith.constant 0 : index
    %c2_97 = arith.constant 2 : index
    %c0_98 = arith.constant 0 : index
    %c0_99 = arith.constant 0 : index
    %234 = vector.load %arg2[%c0_96, %c2_97, %c0_98, %c0_99] : memref<1x3x32x128xf32, #tpu.memory_space<vmem>>, vector<1x1x32x128xf32>
    %235 = vector.shape_cast %234 : vector<1x1x32x128xf32> to vector<32x128xf32>
    %236 = arith.mulf %233, %235 : vector<32x128xf32>
    %237 = arith.addf %232, %236 : vector<32x128xf32>
    %238 = arith.mulf %184, %237 : vector<32x128xf32>
    %cst_100 = arith.constant 1.000000e+00 : f32
    %239 = vector.broadcast %cst_100 : f32 to vector<32x128xf32>
    %240 = arith.subf %168, %239 : vector<32x128xf32>
    %241 = math.absf %240 : vector<32x128xf32>
    %cst_101 = arith.constant 1.000000e+00 : f32
    %242 = vector.broadcast %cst_101 : f32 to vector<32x128xf32>
    %243 = arith.subf %242, %241 : vector<32x128xf32>
    %cst_102 = arith.constant 0.000000e+00 : f32
    %244 = vector.broadcast %cst_102 : f32 to vector<32x128xf32>
    %245 = arith.maximumf %243, %244 : vector<32x128xf32>
    %c0_103 = arith.constant 0 : index
    %c1_104 = arith.constant 1 : index
    %c0_105 = arith.constant 0 : index
    %c0_106 = arith.constant 0 : index
    %246 = vector.load %arg3[%c0_103, %c1_104, %c0_105, %c0_106] : memref<1x4x4x1536xf32, #tpu.memory_space<vmem>>, vector<1x1x4x1536xf32>
    %247 = vector.shape_cast %246 : vector<1x1x4x1536xf32> to vector<4x1536xf32>
    %cst_107 = arith.constant dense<0.000000e+00> : vector<32x1536xf32>
    %248 = tpu.matmul %169, %247, %cst_107 {dimension_numbers = #tpu.dot_dimension_numbers<[1], [0], [0], [1], [0, 0, 1, 1], [], []>} : vector<32x4xf32>, vector<4x1536xf32>, vector<32x1536xf32> -> vector<32x1536xf32>
    %249 = vector.extract_strided_slice %248 {offsets = [0, 384], sizes = [32, 128], strides = [1, 1]} : vector<32x1536xf32> to vector<32x128xf32>
    %250 = vector.extract_strided_slice %248 {offsets = [0, 0], sizes = [32, 128], strides = [1, 1]} : vector<32x1536xf32> to vector<32x128xf32>
    %c0_108 = arith.constant 0 : index
    %c0_109 = arith.constant 0 : index
    %c0_110 = arith.constant 0 : index
    %c0_111 = arith.constant 0 : index
    %251 = vector.load %arg2[%c0_108, %c0_109, %c0_110, %c0_111] : memref<1x3x32x128xf32, #tpu.memory_space<vmem>>, vector<1x1x32x128xf32>
    %252 = vector.shape_cast %251 : vector<1x1x32x128xf32> to vector<32x128xf32>
    %253 = arith.mulf %250, %252 : vector<32x128xf32>
    %254 = arith.addf %249, %253 : vector<32x128xf32>
    %255 = vector.extract_strided_slice %248 {offsets = [0, 128], sizes = [32, 128], strides = [1, 1]} : vector<32x1536xf32> to vector<32x128xf32>
    %c0_112 = arith.constant 0 : index
    %c1_113 = arith.constant 1 : index
    %c0_114 = arith.constant 0 : index
    %c0_115 = arith.constant 0 : index
    %256 = vector.load %arg2[%c0_112, %c1_113, %c0_114, %c0_115] : memref<1x3x32x128xf32, #tpu.memory_space<vmem>>, vector<1x1x32x128xf32>
    %257 = vector.shape_cast %256 : vector<1x1x32x128xf32> to vector<32x128xf32>
    %258 = arith.mulf %255, %257 : vector<32x128xf32>
    %259 = arith.addf %254, %258 : vector<32x128xf32>
    %260 = vector.extract_strided_slice %248 {offsets = [0, 256], sizes = [32, 128], strides = [1, 1]} : vector<32x1536xf32> to vector<32x128xf32>
    %c0_116 = arith.constant 0 : index
    %c2_117 = arith.constant 2 : index
    %c0_118 = arith.constant 0 : index
    %c0_119 = arith.constant 0 : index
    %261 = vector.load %arg2[%c0_116, %c2_117, %c0_118, %c0_119] : memref<1x3x32x128xf32, #tpu.memory_space<vmem>>, vector<1x1x32x128xf32>
    %262 = vector.shape_cast %261 : vector<1x1x32x128xf32> to vector<32x128xf32>
    %263 = arith.mulf %260, %262 : vector<32x128xf32>
    %264 = arith.addf %259, %263 : vector<32x128xf32>
    %265 = arith.mulf %245, %264 : vector<32x128xf32>
    %266 = arith.addf %204, %265 : vector<32x128xf32>
    %267 = vector.extract_strided_slice %248 {offsets = [0, 896], sizes = [32, 128], strides = [1, 1]} : vector<32x1536xf32> to vector<32x128xf32>
    %268 = vector.extract_strided_slice %248 {offsets = [0, 512], sizes = [32, 128], strides = [1, 1]} : vector<32x1536xf32> to vector<32x128xf32>
    %c0_120 = arith.constant 0 : index
    %c0_121 = arith.constant 0 : index
    %c0_122 = arith.constant 0 : index
    %c0_123 = arith.constant 0 : index
    %269 = vector.load %arg2[%c0_120, %c0_121, %c0_122, %c0_123] : memref<1x3x32x128xf32, #tpu.memory_space<vmem>>, vector<1x1x32x128xf32>
    %270 = vector.shape_cast %269 : vector<1x1x32x128xf32> to vector<32x128xf32>
    %271 = arith.mulf %268, %270 : vector<32x128xf32>
    %272 = arith.addf %267, %271 : vector<32x128xf32>
    %273 = vector.extract_strided_slice %248 {offsets = [0, 640], sizes = [32, 128], strides = [1, 1]} : vector<32x1536xf32> to vector<32x128xf32>
    %c0_124 = arith.constant 0 : index
    %c1_125 = arith.constant 1 : index
    %c0_126 = arith.constant 0 : index
    %c0_127 = arith.constant 0 : index
    %274 = vector.load %arg2[%c0_124, %c1_125, %c0_126, %c0_127] : memref<1x3x32x128xf32, #tpu.memory_space<vmem>>, vector<1x1x32x128xf32>
    %275 = vector.shape_cast %274 : vector<1x1x32x128xf32> to vector<32x128xf32>
    %276 = arith.mulf %273, %275 : vector<32x128xf32>
    %277 = arith.addf %272, %276 : vector<32x128xf32>
    %278 = vector.extract_strided_slice %248 {offsets = [0, 768], sizes = [32, 128], strides = [1, 1]} : vector<32x1536xf32> to vector<32x128xf32>
    %c0_128 = arith.constant 0 : index
    %c2_129 = arith.constant 2 : index
    %c0_130 = arith.constant 0 : index
    %c0_131 = arith.constant 0 : index
    %279 = vector.load %arg2[%c0_128, %c2_129, %c0_130, %c0_131] : memref<1x3x32x128xf32, #tpu.memory_space<vmem>>, vector<1x1x32x128xf32>
    %280 = vector.shape_cast %279 : vector<1x1x32x128xf32> to vector<32x128xf32>
    %281 = arith.mulf %278, %280 : vector<32x128xf32>
    %282 = arith.addf %277, %281 : vector<32x128xf32>
    %283 = arith.mulf %245, %282 : vector<32x128xf32>
    %284 = arith.addf %221, %283 : vector<32x128xf32>
    %285 = vector.extract_strided_slice %248 {offsets = [0, 1408], sizes = [32, 128], strides = [1, 1]} : vector<32x1536xf32> to vector<32x128xf32>
    %286 = vector.extract_strided_slice %248 {offsets = [0, 1024], sizes = [32, 128], strides = [1, 1]} : vector<32x1536xf32> to vector<32x128xf32>
    %c0_132 = arith.constant 0 : index
    %c0_133 = arith.constant 0 : index
    %c0_134 = arith.constant 0 : index
    %c0_135 = arith.constant 0 : index
    %287 = vector.load %arg2[%c0_132, %c0_133, %c0_134, %c0_135] : memref<1x3x32x128xf32, #tpu.memory_space<vmem>>, vector<1x1x32x128xf32>
    %288 = vector.shape_cast %287 : vector<1x1x32x128xf32> to vector<32x128xf32>
    %289 = arith.mulf %286, %288 : vector<32x128xf32>
    %290 = arith.addf %285, %289 : vector<32x128xf32>
    %291 = vector.extract_strided_slice %248 {offsets = [0, 1152], sizes = [32, 128], strides = [1, 1]} : vector<32x1536xf32> to vector<32x128xf32>
    %c0_136 = arith.constant 0 : index
    %c1_137 = arith.constant 1 : index
    %c0_138 = arith.constant 0 : index
    %c0_139 = arith.constant 0 : index
    %292 = vector.load %arg2[%c0_136, %c1_137, %c0_138, %c0_139] : memref<1x3x32x128xf32, #tpu.memory_space<vmem>>, vector<1x1x32x128xf32>
    %293 = vector.shape_cast %292 : vector<1x1x32x128xf32> to vector<32x128xf32>
    %294 = arith.mulf %291, %293 : vector<32x128xf32>
    %295 = arith.addf %290, %294 : vector<32x128xf32>
    %296 = vector.extract_strided_slice %248 {offsets = [0, 1280], sizes = [32, 128], strides = [1, 1]} : vector<32x1536xf32> to vector<32x128xf32>
    %c0_140 = arith.constant 0 : index
    %c2_141 = arith.constant 2 : index
    %c0_142 = arith.constant 0 : index
    %c0_143 = arith.constant 0 : index
    %297 = vector.load %arg2[%c0_140, %c2_141, %c0_142, %c0_143] : memref<1x3x32x128xf32, #tpu.memory_space<vmem>>, vector<1x1x32x128xf32>
    %298 = vector.shape_cast %297 : vector<1x1x32x128xf32> to vector<32x128xf32>
    %299 = arith.mulf %296, %298 : vector<32x128xf32>
    %300 = arith.addf %295, %299 : vector<32x128xf32>
    %301 = arith.mulf %245, %300 : vector<32x128xf32>
    %302 = arith.addf %238, %301 : vector<32x128xf32>
    %cst_144 = arith.constant 2.000000e+00 : f32
    %303 = vector.broadcast %cst_144 : f32 to vector<32x128xf32>
    %304 = arith.subf %168, %303 : vector<32x128xf32>
    %305 = math.absf %304 : vector<32x128xf32>
    %cst_145 = arith.constant 1.000000e+00 : f32
    %306 = vector.broadcast %cst_145 : f32 to vector<32x128xf32>
    %307 = arith.subf %306, %305 : vector<32x128xf32>
    %cst_146 = arith.constant 0.000000e+00 : f32
    %308 = vector.broadcast %cst_146 : f32 to vector<32x128xf32>
    %309 = arith.maximumf %307, %308 : vector<32x128xf32>
    %c0_147 = arith.constant 0 : index
    %c2_148 = arith.constant 2 : index
    %c0_149 = arith.constant 0 : index
    %c0_150 = arith.constant 0 : index
    %310 = vector.load %arg3[%c0_147, %c2_148, %c0_149, %c0_150] : memref<1x4x4x1536xf32, #tpu.memory_space<vmem>>, vector<1x1x4x1536xf32>
    %311 = vector.shape_cast %310 : vector<1x1x4x1536xf32> to vector<4x1536xf32>
    %cst_151 = arith.constant dense<0.000000e+00> : vector<32x1536xf32>
    %312 = tpu.matmul %169, %311, %cst_151 {dimension_numbers = #tpu.dot_dimension_numbers<[1], [0], [0], [1], [0, 0, 1, 1], [], []>} : vector<32x4xf32>, vector<4x1536xf32>, vector<32x1536xf32> -> vector<32x1536xf32>
    %313 = vector.extract_strided_slice %312 {offsets = [0, 384], sizes = [32, 128], strides = [1, 1]} : vector<32x1536xf32> to vector<32x128xf32>
    %314 = vector.extract_strided_slice %312 {offsets = [0, 0], sizes = [32, 128], strides = [1, 1]} : vector<32x1536xf32> to vector<32x128xf32>
    %c0_152 = arith.constant 0 : index
    %c0_153 = arith.constant 0 : index
    %c0_154 = arith.constant 0 : index
    %c0_155 = arith.constant 0 : index
    %315 = vector.load %arg2[%c0_152, %c0_153, %c0_154, %c0_155] : memref<1x3x32x128xf32, #tpu.memory_space<vmem>>, vector<1x1x32x128xf32>
    %316 = vector.shape_cast %315 : vector<1x1x32x128xf32> to vector<32x128xf32>
    %317 = arith.mulf %314, %316 : vector<32x128xf32>
    %318 = arith.addf %313, %317 : vector<32x128xf32>
    %319 = vector.extract_strided_slice %312 {offsets = [0, 128], sizes = [32, 128], strides = [1, 1]} : vector<32x1536xf32> to vector<32x128xf32>
    %c0_156 = arith.constant 0 : index
    %c1_157 = arith.constant 1 : index
    %c0_158 = arith.constant 0 : index
    %c0_159 = arith.constant 0 : index
    %320 = vector.load %arg2[%c0_156, %c1_157, %c0_158, %c0_159] : memref<1x3x32x128xf32, #tpu.memory_space<vmem>>, vector<1x1x32x128xf32>
    %321 = vector.shape_cast %320 : vector<1x1x32x128xf32> to vector<32x128xf32>
    %322 = arith.mulf %319, %321 : vector<32x128xf32>
    %323 = arith.addf %318, %322 : vector<32x128xf32>
    %324 = vector.extract_strided_slice %312 {offsets = [0, 256], sizes = [32, 128], strides = [1, 1]} : vector<32x1536xf32> to vector<32x128xf32>
    %c0_160 = arith.constant 0 : index
    %c2_161 = arith.constant 2 : index
    %c0_162 = arith.constant 0 : index
    %c0_163 = arith.constant 0 : index
    %325 = vector.load %arg2[%c0_160, %c2_161, %c0_162, %c0_163] : memref<1x3x32x128xf32, #tpu.memory_space<vmem>>, vector<1x1x32x128xf32>
    %326 = vector.shape_cast %325 : vector<1x1x32x128xf32> to vector<32x128xf32>
    %327 = arith.mulf %324, %326 : vector<32x128xf32>
    %328 = arith.addf %323, %327 : vector<32x128xf32>
    %329 = arith.mulf %309, %328 : vector<32x128xf32>
    %330 = arith.addf %266, %329 : vector<32x128xf32>
    %331 = vector.extract_strided_slice %312 {offsets = [0, 896], sizes = [32, 128], strides = [1, 1]} : vector<32x1536xf32> to vector<32x128xf32>
    %332 = vector.extract_strided_slice %312 {offsets = [0, 512], sizes = [32, 128], strides = [1, 1]} : vector<32x1536xf32> to vector<32x128xf32>
    %c0_164 = arith.constant 0 : index
    %c0_165 = arith.constant 0 : index
    %c0_166 = arith.constant 0 : index
    %c0_167 = arith.constant 0 : index
    %333 = vector.load %arg2[%c0_164, %c0_165, %c0_166, %c0_167] : memref<1x3x32x128xf32, #tpu.memory_space<vmem>>, vector<1x1x32x128xf32>
    %334 = vector.shape_cast %333 : vector<1x1x32x128xf32> to vector<32x128xf32>
    %335 = arith.mulf %332, %334 : vector<32x128xf32>
    %336 = arith.addf %331, %335 : vector<32x128xf32>
    %337 = vector.extract_strided_slice %312 {offsets = [0, 640], sizes = [32, 128], strides = [1, 1]} : vector<32x1536xf32> to vector<32x128xf32>
    %c0_168 = arith.constant 0 : index
    %c1_169 = arith.constant 1 : index
    %c0_170 = arith.constant 0 : index
    %c0_171 = arith.constant 0 : index
    %338 = vector.load %arg2[%c0_168, %c1_169, %c0_170, %c0_171] : memref<1x3x32x128xf32, #tpu.memory_space<vmem>>, vector<1x1x32x128xf32>
    %339 = vector.shape_cast %338 : vector<1x1x32x128xf32> to vector<32x128xf32>
    %340 = arith.mulf %337, %339 : vector<32x128xf32>
    %341 = arith.addf %336, %340 : vector<32x128xf32>
    %342 = vector.extract_strided_slice %312 {offsets = [0, 768], sizes = [32, 128], strides = [1, 1]} : vector<32x1536xf32> to vector<32x128xf32>
    %c0_172 = arith.constant 0 : index
    %c2_173 = arith.constant 2 : index
    %c0_174 = arith.constant 0 : index
    %c0_175 = arith.constant 0 : index
    %343 = vector.load %arg2[%c0_172, %c2_173, %c0_174, %c0_175] : memref<1x3x32x128xf32, #tpu.memory_space<vmem>>, vector<1x1x32x128xf32>
    %344 = vector.shape_cast %343 : vector<1x1x32x128xf32> to vector<32x128xf32>
    %345 = arith.mulf %342, %344 : vector<32x128xf32>
    %346 = arith.addf %341, %345 : vector<32x128xf32>
    %347 = arith.mulf %309, %346 : vector<32x128xf32>
    %348 = arith.addf %284, %347 : vector<32x128xf32>
    %349 = vector.extract_strided_slice %312 {offsets = [0, 1408], sizes = [32, 128], strides = [1, 1]} : vector<32x1536xf32> to vector<32x128xf32>
    %350 = vector.extract_strided_slice %312 {offsets = [0, 1024], sizes = [32, 128], strides = [1, 1]} : vector<32x1536xf32> to vector<32x128xf32>
    %c0_176 = arith.constant 0 : index
    %c0_177 = arith.constant 0 : index
    %c0_178 = arith.constant 0 : index
    %c0_179 = arith.constant 0 : index
    %351 = vector.load %arg2[%c0_176, %c0_177, %c0_178, %c0_179] : memref<1x3x32x128xf32, #tpu.memory_space<vmem>>, vector<1x1x32x128xf32>
    %352 = vector.shape_cast %351 : vector<1x1x32x128xf32> to vector<32x128xf32>
    %353 = arith.mulf %350, %352 : vector<32x128xf32>
    %354 = arith.addf %349, %353 : vector<32x128xf32>
    %355 = vector.extract_strided_slice %312 {offsets = [0, 1152], sizes = [32, 128], strides = [1, 1]} : vector<32x1536xf32> to vector<32x128xf32>
    %c0_180 = arith.constant 0 : index
    %c1_181 = arith.constant 1 : index
    %c0_182 = arith.constant 0 : index
    %c0_183 = arith.constant 0 : index
    %356 = vector.load %arg2[%c0_180, %c1_181, %c0_182, %c0_183] : memref<1x3x32x128xf32, #tpu.memory_space<vmem>>, vector<1x1x32x128xf32>
    %357 = vector.shape_cast %356 : vector<1x1x32x128xf32> to vector<32x128xf32>
    %358 = arith.mulf %355, %357 : vector<32x128xf32>
    %359 = arith.addf %354, %358 : vector<32x128xf32>
    %360 = vector.extract_strided_slice %312 {offsets = [0, 1280], sizes = [32, 128], strides = [1, 1]} : vector<32x1536xf32> to vector<32x128xf32>
    %c0_184 = arith.constant 0 : index
    %c2_185 = arith.constant 2 : index
    %c0_186 = arith.constant 0 : index
    %c0_187 = arith.constant 0 : index
    %361 = vector.load %arg2[%c0_184, %c2_185, %c0_186, %c0_187] : memref<1x3x32x128xf32, #tpu.memory_space<vmem>>, vector<1x1x32x128xf32>
    %362 = vector.shape_cast %361 : vector<1x1x32x128xf32> to vector<32x128xf32>
    %363 = arith.mulf %360, %362 : vector<32x128xf32>
    %364 = arith.addf %359, %363 : vector<32x128xf32>
    %365 = arith.mulf %309, %364 : vector<32x128xf32>
    %366 = arith.addf %302, %365 : vector<32x128xf32>
    %cst_188 = arith.constant 3.000000e+00 : f32
    %367 = vector.broadcast %cst_188 : f32 to vector<32x128xf32>
    %368 = arith.subf %168, %367 : vector<32x128xf32>
    %369 = math.absf %368 : vector<32x128xf32>
    %cst_189 = arith.constant 1.000000e+00 : f32
    %370 = vector.broadcast %cst_189 : f32 to vector<32x128xf32>
    %371 = arith.subf %370, %369 : vector<32x128xf32>
    %cst_190 = arith.constant 0.000000e+00 : f32
    %372 = vector.broadcast %cst_190 : f32 to vector<32x128xf32>
    %373 = arith.maximumf %371, %372 : vector<32x128xf32>
    %cst_191 = arith.constant 4.000000e+00 : f32
    %374 = vector.broadcast %cst_191 : f32 to vector<32x128xf32>
    %375 = arith.subf %374, %168 : vector<32x128xf32>
    %376 = math.absf %375 : vector<32x128xf32>
    %cst_192 = arith.constant 1.000000e+00 : f32
    %377 = vector.broadcast %cst_192 : f32 to vector<32x128xf32>
    %378 = arith.subf %377, %376 : vector<32x128xf32>
    %cst_193 = arith.constant 0.000000e+00 : f32
    %379 = vector.broadcast %cst_193 : f32 to vector<32x128xf32>
    %380 = arith.maximumf %378, %379 : vector<32x128xf32>
    %381 = arith.addf %373, %380 : vector<32x128xf32>
    %c0_194 = arith.constant 0 : index
    %c3_195 = arith.constant 3 : index
    %c0_196 = arith.constant 0 : index
    %c0_197 = arith.constant 0 : index
    %382 = vector.load %arg3[%c0_194, %c3_195, %c0_196, %c0_197] : memref<1x4x4x1536xf32, #tpu.memory_space<vmem>>, vector<1x1x4x1536xf32>
    %383 = vector.shape_cast %382 : vector<1x1x4x1536xf32> to vector<4x1536xf32>
    %cst_198 = arith.constant dense<0.000000e+00> : vector<32x1536xf32>
    %384 = tpu.matmul %169, %383, %cst_198 {dimension_numbers = #tpu.dot_dimension_numbers<[1], [0], [0], [1], [0, 0, 1, 1], [], []>} : vector<32x4xf32>, vector<4x1536xf32>, vector<32x1536xf32> -> vector<32x1536xf32>
    %385 = vector.extract_strided_slice %384 {offsets = [0, 384], sizes = [32, 128], strides = [1, 1]} : vector<32x1536xf32> to vector<32x128xf32>
    %386 = vector.extract_strided_slice %384 {offsets = [0, 0], sizes = [32, 128], strides = [1, 1]} : vector<32x1536xf32> to vector<32x128xf32>
    %c0_199 = arith.constant 0 : index
    %c0_200 = arith.constant 0 : index
    %c0_201 = arith.constant 0 : index
    %c0_202 = arith.constant 0 : index
    %387 = vector.load %arg2[%c0_199, %c0_200, %c0_201, %c0_202] : memref<1x3x32x128xf32, #tpu.memory_space<vmem>>, vector<1x1x32x128xf32>
    %388 = vector.shape_cast %387 : vector<1x1x32x128xf32> to vector<32x128xf32>
    %389 = arith.mulf %386, %388 : vector<32x128xf32>
    %390 = arith.addf %385, %389 : vector<32x128xf32>
    %391 = vector.extract_strided_slice %384 {offsets = [0, 128], sizes = [32, 128], strides = [1, 1]} : vector<32x1536xf32> to vector<32x128xf32>
    %c0_203 = arith.constant 0 : index
    %c1_204 = arith.constant 1 : index
    %c0_205 = arith.constant 0 : index
    %c0_206 = arith.constant 0 : index
    %392 = vector.load %arg2[%c0_203, %c1_204, %c0_205, %c0_206] : memref<1x3x32x128xf32, #tpu.memory_space<vmem>>, vector<1x1x32x128xf32>
    %393 = vector.shape_cast %392 : vector<1x1x32x128xf32> to vector<32x128xf32>
    %394 = arith.mulf %391, %393 : vector<32x128xf32>
    %395 = arith.addf %390, %394 : vector<32x128xf32>
    %396 = vector.extract_strided_slice %384 {offsets = [0, 256], sizes = [32, 128], strides = [1, 1]} : vector<32x1536xf32> to vector<32x128xf32>
    %c0_207 = arith.constant 0 : index
    %c2_208 = arith.constant 2 : index
    %c0_209 = arith.constant 0 : index
    %c0_210 = arith.constant 0 : index
    %397 = vector.load %arg2[%c0_207, %c2_208, %c0_209, %c0_210] : memref<1x3x32x128xf32, #tpu.memory_space<vmem>>, vector<1x1x32x128xf32>
    %398 = vector.shape_cast %397 : vector<1x1x32x128xf32> to vector<32x128xf32>
    %399 = arith.mulf %396, %398 : vector<32x128xf32>
    %400 = arith.addf %395, %399 : vector<32x128xf32>
    %401 = arith.mulf %381, %400 : vector<32x128xf32>
    %402 = arith.addf %330, %401 : vector<32x128xf32>
    %403 = vector.extract_strided_slice %384 {offsets = [0, 896], sizes = [32, 128], strides = [1, 1]} : vector<32x1536xf32> to vector<32x128xf32>
    %404 = vector.extract_strided_slice %384 {offsets = [0, 512], sizes = [32, 128], strides = [1, 1]} : vector<32x1536xf32> to vector<32x128xf32>
    %c0_211 = arith.constant 0 : index
    %c0_212 = arith.constant 0 : index
    %c0_213 = arith.constant 0 : index
    %c0_214 = arith.constant 0 : index
    %405 = vector.load %arg2[%c0_211, %c0_212, %c0_213, %c0_214] : memref<1x3x32x128xf32, #tpu.memory_space<vmem>>, vector<1x1x32x128xf32>
    %406 = vector.shape_cast %405 : vector<1x1x32x128xf32> to vector<32x128xf32>
    %407 = arith.mulf %404, %406 : vector<32x128xf32>
    %408 = arith.addf %403, %407 : vector<32x128xf32>
    %409 = vector.extract_strided_slice %384 {offsets = [0, 640], sizes = [32, 128], strides = [1, 1]} : vector<32x1536xf32> to vector<32x128xf32>
    %c0_215 = arith.constant 0 : index
    %c1_216 = arith.constant 1 : index
    %c0_217 = arith.constant 0 : index
    %c0_218 = arith.constant 0 : index
    %410 = vector.load %arg2[%c0_215, %c1_216, %c0_217, %c0_218] : memref<1x3x32x128xf32, #tpu.memory_space<vmem>>, vector<1x1x32x128xf32>
    %411 = vector.shape_cast %410 : vector<1x1x32x128xf32> to vector<32x128xf32>
    %412 = arith.mulf %409, %411 : vector<32x128xf32>
    %413 = arith.addf %408, %412 : vector<32x128xf32>
    %414 = vector.extract_strided_slice %384 {offsets = [0, 768], sizes = [32, 128], strides = [1, 1]} : vector<32x1536xf32> to vector<32x128xf32>
    %c0_219 = arith.constant 0 : index
    %c2_220 = arith.constant 2 : index
    %c0_221 = arith.constant 0 : index
    %c0_222 = arith.constant 0 : index
    %415 = vector.load %arg2[%c0_219, %c2_220, %c0_221, %c0_222] : memref<1x3x32x128xf32, #tpu.memory_space<vmem>>, vector<1x1x32x128xf32>
    %416 = vector.shape_cast %415 : vector<1x1x32x128xf32> to vector<32x128xf32>
    %417 = arith.mulf %414, %416 : vector<32x128xf32>
    %418 = arith.addf %413, %417 : vector<32x128xf32>
    %419 = arith.mulf %381, %418 : vector<32x128xf32>
    %420 = arith.addf %348, %419 : vector<32x128xf32>
    %421 = vector.extract_strided_slice %384 {offsets = [0, 1408], sizes = [32, 128], strides = [1, 1]} : vector<32x1536xf32> to vector<32x128xf32>
    %422 = vector.extract_strided_slice %384 {offsets = [0, 1024], sizes = [32, 128], strides = [1, 1]} : vector<32x1536xf32> to vector<32x128xf32>
    %c0_223 = arith.constant 0 : index
    %c0_224 = arith.constant 0 : index
    %c0_225 = arith.constant 0 : index
    %c0_226 = arith.constant 0 : index
    %423 = vector.load %arg2[%c0_223, %c0_224, %c0_225, %c0_226] : memref<1x3x32x128xf32, #tpu.memory_space<vmem>>, vector<1x1x32x128xf32>
    %424 = vector.shape_cast %423 : vector<1x1x32x128xf32> to vector<32x128xf32>
    %425 = arith.mulf %422, %424 : vector<32x128xf32>
    %426 = arith.addf %421, %425 : vector<32x128xf32>
    %427 = vector.extract_strided_slice %384 {offsets = [0, 1152], sizes = [32, 128], strides = [1, 1]} : vector<32x1536xf32> to vector<32x128xf32>
    %c0_227 = arith.constant 0 : index
    %c1_228 = arith.constant 1 : index
    %c0_229 = arith.constant 0 : index
    %c0_230 = arith.constant 0 : index
    %428 = vector.load %arg2[%c0_227, %c1_228, %c0_229, %c0_230] : memref<1x3x32x128xf32, #tpu.memory_space<vmem>>, vector<1x1x32x128xf32>
    %429 = vector.shape_cast %428 : vector<1x1x32x128xf32> to vector<32x128xf32>
    %430 = arith.mulf %427, %429 : vector<32x128xf32>
    %431 = arith.addf %426, %430 : vector<32x128xf32>
    %432 = vector.extract_strided_slice %384 {offsets = [0, 1280], sizes = [32, 128], strides = [1, 1]} : vector<32x1536xf32> to vector<32x128xf32>
    %c0_231 = arith.constant 0 : index
    %c2_232 = arith.constant 2 : index
    %c0_233 = arith.constant 0 : index
    %c0_234 = arith.constant 0 : index
    %433 = vector.load %arg2[%c0_231, %c2_232, %c0_233, %c0_234] : memref<1x3x32x128xf32, #tpu.memory_space<vmem>>, vector<1x1x32x128xf32>
    %434 = vector.shape_cast %433 : vector<1x1x32x128xf32> to vector<32x128xf32>
    %435 = arith.mulf %432, %434 : vector<32x128xf32>
    %436 = arith.addf %431, %435 : vector<32x128xf32>
    %437 = arith.mulf %381, %436 : vector<32x128xf32>
    %438 = arith.addf %366, %437 : vector<32x128xf32>
    %c0_235 = arith.constant 0 : index
    %c0_236 = arith.constant 0 : index
    %c0_237 = arith.constant 0 : index
    %c0_238 = arith.constant 0 : index
    %439 = vector.load %arg6[%c0_235, %c0_236, %c0_237, %c0_238] : memref<1x3x32x128xf32, #tpu.memory_space<vmem>>, vector<1x1x32x128xf32>
    %440 = vector.shape_cast %439 : vector<1x1x32x128xf32> to vector<32x128xf32>
    %441 = vector.shape_cast %402 : vector<32x128xf32> to vector<1x1x32x128xf32>
    tpu.vector_store %arg6[%c0_235, %c0_236, %c0_237, %c0_238], %441 {strides = array<i32>} : memref<1x3x32x128xf32, #tpu.memory_space<vmem>>, vector<1x1x32x128xf32>,
    %c0_239 = arith.constant 0 : index
    %c1_240 = arith.constant 1 : index
    %c0_241 = arith.constant 0 : index
    %c0_242 = arith.constant 0 : index
    %442 = vector.load %arg6[%c0_239, %c1_240, %c0_241, %c0_242] : memref<1x3x32x128xf32, #tpu.memory_space<vmem>>, vector<1x1x32x128xf32>
    %443 = vector.shape_cast %442 : vector<1x1x32x128xf32> to vector<32x128xf32>
    %444 = vector.shape_cast %420 : vector<32x128xf32> to vector<1x1x32x128xf32>
    tpu.vector_store %arg6[%c0_239, %c1_240, %c0_241, %c0_242], %444 {strides = array<i32>} : memref<1x3x32x128xf32, #tpu.memory_space<vmem>>, vector<1x1x32x128xf32>,
    %c0_243 = arith.constant 0 : index
    %c2_244 = arith.constant 2 : index
    %c0_245 = arith.constant 0 : index
    %c0_246 = arith.constant 0 : index
    %445 = vector.load %arg6[%c0_243, %c2_244, %c0_245, %c0_246] : memref<1x3x32x128xf32, #tpu.memory_space<vmem>>, vector<1x1x32x128xf32>
    %446 = vector.shape_cast %445 : vector<1x1x32x128xf32> to vector<32x128xf32>
    %447 = vector.shape_cast %438 : vector<32x128xf32> to vector<1x1x32x128xf32>
    tpu.vector_store %arg6[%c0_243, %c2_244, %c0_245, %c0_246], %447 {strides = array<i32>} : memref<1x3x32x128xf32, #tpu.memory_space<vmem>>, vector<1x1x32x128xf32>,
    return
  }
  func.func @transform_0(%arg0: i32, %arg1: i32) -> (i32, i32, i32, i32) {
    %c0_i32 = arith.constant 0 : i32
    %c0_i32_0 = arith.constant 0 : i32
    %c0_i32_1 = arith.constant 0 : i32
    return %arg0, %c0_i32, %arg1, %c0_i32_0 : i32, i32, i32, i32
  }
  func.func @transform_1(%arg0: i32, %arg1: i32) -> (i32, i32, i32, i32) {
    %c0_i32 = arith.constant 0 : i32
    %c0_i32_0 = arith.constant 0 : i32
    %c0_i32_1 = arith.constant 0 : i32
    %c0_i32_2 = arith.constant 0 : i32
    return %arg0, %c0_i32, %c0_i32_0, %c0_i32_1 : i32, i32, i32, i32
  }
  func.func @transform_2(%arg0: i32, %arg1: i32) -> (i32, i32) {
    %c0_i32 = arith.constant 0 : i32
    %c0_i32_0 = arith.constant 0 : i32
    return %arg1, %c0_i32 : i32, i32
  }
  func.func @transform_3(%arg0: i32, %arg1: i32) -> i32 {
    %c0_i32 = arith.constant 0 : i32
    %c0_i32_0 = arith.constant 0 : i32
    return %c0_i32 : i32
  }
  func.func @transform_4(%arg0: i32, %arg1: i32) -> (i32, i32, i32, i32) {
    %c0_i32 = arith.constant 0 : i32
    %c0_i32_0 = arith.constant 0 : i32
    %c0_i32_1 = arith.constant 0 : i32
    return %arg0, %c0_i32, %arg1, %c0_i32_0 : i32, i32, i32, i32
  }
}

</mosaic_0001>

<bundles_post_ra>
// kernel: forward.1
= control target key start
LH: loop header
LB: loop body
LE: loop exit
PB: predicated region body
PF: predicated region fallthrough
CT: control target
= control target key end

     0   :  { %9 = vsyncpa [#allocation4], 0  ;;  %s5442_s0 = inlined_call_operand.vmem [shape: f32[2,3,32,128], index: 0, kind: input, shape index: {}]   ;;  %s5443_s1 = inlined_call_operand.vmem [shape: f32[2,4,4,1536], index: 1, kind: input, shape index: {}]   ;;  %s5444_s2 = inlined_call_operand.vmem [shape: f32[32,4], index: 2, kind: input, shape index: {}]   ;;  %s5445_s3 = inlined_call_operand.vmem [shape: f32[34], index: 3, kind: input, shape index: {}]   ;;  %s5446_s4 = inlined_call_operand.hbm [shape: f32[2,3,32,128], index: 4, kind: output, shape index: {}]  }
   0x1   :  { %10 = vsyncpa [#allocation3], 0 }
   0x2   :  { %12 = vsyncpa [#allocation3 + $0x1], 0  ;;  %s4056_s15 = smov 0   ;;  %s4058_s16 = smov 0  }
   0x3   :  { %s4060_s17 = smov 0   ;;  %s4062_s18 = smov 0  }
   0x4   :  { %s4064_s19 = smov 0   ;;  %s4066_s20 = smov 0  }
   0x5 LB: > { %s3578_s21 = sadd.s32 4294967295, %s4024_s20   ;;  %s3579_s22 = sadd.s32 4294967294, %s4024_s20   ;;  %s4024_s20 = sphi %s4066_s20, %s18_s20   ;;  %s4020_s19 = sphi %s4064_s19, %s5479_s19   ;;  %s4016_s18 = sphi %s4062_s18, %s5478_s18   ;;  %s4012_s17 = sphi %s4060_s17, %s5477_s17   ;;  %s4008_s16 = sphi %s4058_s16, %s5476_s16   ;;  %s4004_s15 = sphi %s4056_s15, %s5475_s15  }
   0x6   : > { %s30_s23 = sadd.s32 1, %s4020_s19  ;;  %s140_s24 = sadd.s32 1, %s4012_s17 }
   0x7   : > { %p32_p0 = scmp.ge.s32.totalorder %s30_s23, 2  ;;  %p150_p1 = scmp.ne.s32.totalorder %s4012_s17, %s4008_s16 }
   0x8   : > { %p151_p2 = scmp.eq.s32.totalorder %s3578_s21, 1  ;;  %p156_p3 = scmp.ne.s32.totalorder %s4008_s16, %s4004_s15 }
   0x9   : > { %s5481_s23 = smov (%p32_p0, %s30_s23), 0  ;;  %p157_p5 = scmp.eq.s32.totalorder %s3579_s22, 1 }
   0xa   : > { %p4096_p4 = por %p151_p2, %p150_p1  ;;  %s135_s26 = ssub.s32 %s4020_s19, %s5481_s23 }
   0xb   : > { %p3580_p6 = scmp.ge.s32.totalorder %s4024_s20, 1  ;;  %p138_p7 = scmp.eq.s32.totalorder %s135_s26, 0 }
   0xc   : > { %p4103_p8 = por %p157_p5, %p156_p3  ;;  %p164_p9 = scmp.lt.s32.totalorder %s4024_s20, 3 }
   0xd   : > { %s4109_s28 = scalar_select %p138_p7, %s4012_s17, %s140_s24  }
   0xe   : > { %p4111_p10 = pnand %p3580_p6, %p164_p9  ;;  %p4115_p11 = scmp.eq.s32.totalorder %s3578_s21, 0 }
   0xf   : > { %s186_s7 = sshll.u32 %s5445_s3, 4  ;;  %s187_s7 = int_to_ptr.vmem [resolvable:$true] %s186_s7 }
  0x10   : > { %p3828_p12 = pneg %p4111_p10  ;;  %s3927_s8 = scalar_lea.vmem %s187_s7, 16 }
  0x11   : > { %p3928_p0 = scmp.ne.s32.totalorder %s187_s7, %s3927_s8  ;;  %p3935_p5 = scmp.lt.s32.totalorder %s187_s7, %s187_s7 }
  0x12   : > { %p3829_p13 = pnand %p4115_p11, %p3828_p12  ;;  %p3936_p6 = scmp.lt.s32.totalorder %s3927_s8, %s3927_s8 }
  0x14   : > { %p3929_p1 = pneg %p3829_p13  ;;  %p3937_p7 = por %p3936_p6, %p3935_p5 }
  0x16   : > { %p3930_p2 = pnand %p3929_p1, %p3928_p0 }
  0x18   : > { %p3931_p3 = pneg %p3930_p2 }
  0x1a   : > { %p3938_p9 = pnand %p3937_p7, %p3931_p3 }
  0x1c   : > { %3941 = shalt.err (!%p3938_p9)
}
  0x1d   : > { %s4026_s9 = smov [#allocation2]   ;;  %220 = sbr.rel (%p4111_p10) target bundleno = 478 (0x1de), region = 36 }
  0x1e   : > { %3831 = dma.vmem_to_smem (!%p3829_p13), %s187_s7, 16, %s4026_s9, [#allocation4]  }
  0x24   : > { %3995 = dma.done.wait (%p4115_p11), [#allocation4], 16  }
  0x25   : > { %3997 = vsyncadd (%p4115_p11), [#allocation4], 4294967280 }
  0x26   : > { %226 = sfence }
  0x27   : > { %p262_p12 = scmp.lt.s32.totalorder %s4016_s18, 1  ;;  %v5447_v0 = vmov 0.0   ;;  %vm700_vm0 = vcmask 1043456   ;;  %v4151_v8 = vld [vmem:[%s5444_s2] sm:$0xff]  ;;  %vm687_vm1 = vcmask 31744   ;;  %v4168_v13 = vld [vmem:[%s5444_s2 + $0x8] sm:$0xff] }
  0x28   : > { %789 = vmatprep.mubr.f32.mxu0 %v5447_v0  ;;  %878 = vmatprep.mubr.f32.mxu1 %v5447_v0  ;;  %v4183_v15 = vld [vmem:[%s5444_s2 + $0x10] sm:$0xff]  ;;  %v4195_v16 = vld [vmem:[%s5444_s2 + $0x18] sm:$0xff]  ;;  %s287_s7 = sld [smem:[#allocation2]]  ;;  %s3592_s8 = sld [smem:[#allocation2 + $0x1]] }
  0x29   : > { %s4136_s10 = scalar_select %p262_p12, %s4016_s18, 1 }
  0x2a   : > { %s3600_s22 = sld [smem:[#allocation2 + $0xa]]  ;;  %s3606_s24 = sld [smem:[#allocation2 + $0x3]] }
  0x2b   : > { %s3820_s11 = smul.u32 192, %s4136_s10  ;;  %s3607_s26 = sld [smem:[#allocation2 + $0x4]] }
  0x2c   : > { %s3819_s9 = smul.u32 96, %s4136_s10  ;;  %s3598_s10 = sld [smem:[#allocation2 + $0x9]] }
  0x2d   : > { %s4142_s14 = scalar_lea.vmem %s5443_s1, %s3820_s11  ;;  %s3597_s11 = sld [smem:[#allocation2 + $0x2]] }
  0x2e   : > { %v669_v1 = vld [vmem:[%s4142_s14] sm:$0xff]  ;;  %v670_v2 = vld [vmem:[%s4142_s14 + $0x8] sm:$0xff]  ;;  %v671_v3 = vld [vmem:[%s4142_s14 + $0x10] sm:$0xff]  ;;  %s4412_s21 = scalar_lea.vmem %s5442_s0, %s3819_s9  ;;  %v4432_v49 = vstv %s287_s7  ;;  %s3602_s29 = sld [smem:[#allocation2 + $0xb]] }
  0x2f   : > { %v681_v4 = vcombine.high %v669_v1, %v669_v1  ;;  %v682_v5 = vcombine.high %v670_v2, %v670_v2  ;;  %v683_v6 = vcombine.high %v671_v3, %v671_v3  ;;  %v672_v7 = vld [vmem:[%s4142_s14 + $0x18] sm:$0xff]  ;;  %v673_v9 = vld [vmem:[%s4142_s14 + $0x20] sm:$0xff]  ;;  %v674_v11 = vld [vmem:[%s4142_s14 + $0x28] sm:$0xff]  ;;  %v4434_v50 = vstv %s3592_s8  ;;  %s3608_s30 = sld [smem:[#allocation2 + $0x5]]  ;;  %s4479_s6 = sld [smem:[#allocation2 + $0x16]] }
  0x30   : > { %v684_v10 = vcombine.high %v672_v7, %v672_v7  ;;  %v685_v12 = vcombine.high %v673_v9, %v673_v9  ;;  %v686_v14 = vcombine.high %v674_v11, %v674_v11  ;;  %v3673_v17 = vld [vmem:[%s4142_s14 + $0x30] sm:$0xff]  ;;  %v3674_v18 = vld [vmem:[%s4142_s14 + $0x38] sm:$0xff]  ;;  %v3675_v21 = vld [vmem:[%s4142_s14 + $0x40] sm:$0xff]  ;;  %s3599_s5 = sld [smem:[#allocation2 + $0x15]]  ;;  %v4477_v61 = vstv %s3600_s22  ;;  %s4481_s7 = sld [smem:[#allocation2 + $0xc]] }
  0x31   : > { %3633 = vmatprep.subr.msk.mxu0 %vm700_vm0, %v681_v4  ;;  %3639 = vmatprep.subr.msk.mxu1 %vm700_vm0, %v682_v5  ;;  %v1372_v19 = vcombine.high %v3673_v17, %v3673_v17  ;;  %v1373_v20 = vcombine.high %v3674_v18, %v3674_v18  ;;  %v3676_v22 = vld [vmem:[%s4142_s14 + $0x48] sm:$0xff]  ;;  %v1374_v23 = vcombine.high %v3675_v21, %v3675_v21  ;;  %v3677_v25 = vld [vmem:[%s4142_s14 + $0x50] sm:$0xff]  ;;  %v3678_v26 = vld [vmem:[%s4142_s14 + $0x58] sm:$0xff]  ;;  %v4483_v62 = vstv %s3606_s24  ;;  %s4509_s8 = sld [smem:[#allocation2 + $0x17]]  ;;  %s3605_s9 = sld [smem:[#allocation2 + $0x18]] }
  0x32   : > { %3634 = vmatpush1.msk.msra.mxu0 %vm700_vm0, %v669_v1  ;;  %3640 = vmatpush1.msk.msra.mxu1 %vm700_vm0, %v670_v2  ;;  %v1375_v24 = vcombine.high %v3676_v22, %v3676_v22  ;;  %v1376_v27 = vcombine.high %v3677_v25, %v3677_v25  ;;  %v1377_v28 = vcombine.high %v3678_v26, %v3678_v26  ;;  %v3719_v29 = vld [vmem:[%s4142_s14 + $0x60] sm:$0xff]  ;;  %v3720_v30 = vld [vmem:[%s4142_s14 + $0x68] sm:$0xff]  ;;  %v3721_v33 = vld [vmem:[%s4142_s14 + $0x70] sm:$0xff]  ;;  %v4475_v60 = vstv %s3598_s10  ;;  %s4549_s12 = sld [smem:[#allocation2 + $0xf]]  ;;  %s4560_s13 = sld [smem:[#allocation2 + $0x19]] }
  0x33   : > { %3635 = vmatmul.mubr.msk.f32.vlgmr.msra.gmra.mrb[0].mxu0 %vm687_vm1, %v4151_v8  ;;  %3645 = vmatprep.subr.msk.mxu0 %vm700_vm0, %v683_v6  ;;  %v2061_v31 = vcombine.high %v3719_v29, %v3719_v29  ;;  %v2062_v32 = vcombine.high %v3720_v30, %v3720_v30  ;;  %v3722_v34 = vld [vmem:[%s4142_s14 + $0x78] sm:$0xff]  ;;  %v2063_v35 = vcombine.high %v3721_v33, %v3721_v33  ;;  %v3723_v37 = vld [vmem:[%s4142_s14 + $0x80] sm:$0xff]  ;;  %v3724_v38 = vld [vmem:[%s4142_s14 + $0x88] sm:$0xff]  ;;  %v4454_v56 = vstv %s3597_s11  ;;  %s3611_s11 = sld [smem:[#allocation2 + $0xe]]  ;;  %s4578_s22 = sld [smem:[#allocation2 + $0x7]] }
  0x34   : > { %3641 = vmatmul.mubr.msk.f32.vlgmr.msra.gmra.mrb[0].mxu1 %vm687_vm1, %v4151_v8  ;;  %3646 = vmatpush1.msk.msra.mxu0 %vm700_vm0, %v671_v3  ;;  %v2064_v36 = vcombine.high %v3722_v34, %v3722_v34  ;;  %v2065_v39 = vcombine.high %v3723_v37, %v3723_v37  ;;  %v2066_v40 = vcombine.high %v3724_v38, %v3724_v38  ;;  %v3765_v41 = vld [vmem:[%s4142_s14 + $0x90] sm:$0xff]  ;;  %v3766_v42 = vld [vmem:[%s4142_s14 + $0x98] sm:$0xff]  ;;  %v4417_v45 = vld [vmem:[%s4142_s14 + $0xa0] sm:$0xff]  ;;  %v4485_v63 = vstv %s3607_s26  ;;  %s4576_s10 = sld [smem:[#allocation2 + $0x6]]  ;;  %s4584_s24 = sld [smem:[#allocation2 + $0x10]] }
  0x35   : > { %3651 = vmatprep.subr.msk.mxu1 %vm700_vm0, %v684_v10  ;;  %795 = vmatprep.mubr.f32.mxu0 %v5447_v0  ;;  %v2770_v43 = vcombine.high %v3765_v41, %v3765_v41  ;;  %v2771_v44 = vcombine.high %v3766_v42, %v3766_v42  ;;  %v4423_v46 = vld [vmem:[%s4142_s14 + $0xa8] sm:$0xff]  ;;  %v4427_v47 = vld [vmem:[%s4412_s21] sm:$0xff]  ;;  %v2772_v51 = vcombine.high %v4417_v45, %v4417_v45  ;;  %v4490_v1 = vld [vmem:[%s4142_s14 + $0xb0] sm:$0xff]  ;;  %v4513_v10 = vstv %s3608_s30  ;;  %s4588_s26 = sld [smem:[#allocation2 + $0x1a]]  ;;  %s4613_s30 = sld [smem:[#allocation2 + $0x8]] }
  0x36   : > { %3652 = vmatpush1.msk.msra.mxu1 %vm700_vm0, %v672_v7  ;;  %884 = vmatprep.mubr.f32.mxu1 %v5447_v0  ;;  %5463 = vst [vmem:[#allocation8_spill] sm:$0xff] %v4427_v47  ;;  %v4430_v48 = vld [vmem:[%s4412_s21 + $0x20] sm:$0xff]  ;;  %v2773_v52 = vcombine.high %v4423_v46, %v4423_v46  ;;  %v289_v53 = vmul.f32 %v4432_v49, %v4427_v47  ;;  %v4496_v2 = vld [vmem:[%s4142_s14 + $0xb8] sm:$0xff]  ;;  %s4515_s14 = sld [smem:[#allocation2 + $0xd]] }
  0x37   : > { %3636 = vmatmul.mubr.msk.f32.gmra.mrb[2].mxu0 %vm687_vm1, %v4168_v13  ;;  %3657 = vmatprep.subr.msk.mxu0 %vm700_vm0, %v685_v12  ;;  %5464 = vst [vmem:[#allocation9_spill] sm:$0xff] %v4430_v48  ;;  %v300_v54 = vmul.f32 %v4430_v48, %v4434_v50  ;;  %v4452_v55 = vld [vmem:[%s4412_s21 + $0x40] sm:$0xff]  ;;  %v401_v5 = vmul.f32 %v4483_v62, %v4427_v47 }
  0x38   : > { %3642 = vmatmul.mubr.msk.f32.gmra.mrb[2].mxu1 %vm687_vm1, %v4168_v13  ;;  %801 = vmatprep.mubr.f32.mxu0 %v5447_v0  ;;  %5465 = vst [vmem:[#allocation10_spill] sm:$0xff] %v4452_v55  ;;  %v315_v58 = vmul.f32 %v4452_v55, %v4454_v56  ;;  %v407_v6 = vmul.f32 %v4430_v48, %v4485_v63 }
  0x39   : > { %890 = vmatprep.mubr.f32.mxu1 %v5447_v0  ;;  %3663 = vmatprep.subr.msk.mxu1 %vm700_vm0, %v686_v14  ;;  %v304_v57 = vadd.f32 %v300_v54, %v289_v53  ;;  %v2774_v7 = vcombine.high %v4490_v1, %v4490_v1 }
  0x3a   : > { %v4629_v54 = vstv %s4576_s10  ;;  %s4954_s10 = sld [smem:[#allocation2 + $0x21]] }
  0x3b   : > { %3637 = vmatmul.mubr.msk.f32.gmra.mrb[4].mxu0 %vm687_vm1, %v4183_v15  ;;  %v4472_v59 = vadd.f32 %v315_v58, %v304_v57  ;;  %v4632_v57 = vstv %s4578_s22 }
  0x3c   : > { %3643 = vmatmul.mubr.msk.f32.gmra.mrb[4].mxu1 %vm687_vm1, %v4183_v15  ;;  %807 = vmatprep.mubr.f32.mxu0 %v5447_v0 }
  0x3d   : > { %896 = vmatprep.mubr.f32.mxu1 %v5447_v0  ;;  %v326_v3 = vsub.f32 %v4472_v59, %v4475_v60  ;;  %v342_v4 = vsub.f32 %v4472_v59, %v4477_v61 }
  0x3f   : > { %3638 = vmatmul.mubr.msk.f32.gmra.mrb[6].mxu0 %vm687_vm1, %v4195_v16  ;;  %v330_v12 = vmax.f32 %v326_v3, 0.0  ;;  %v346_v14 = vmax.f32 %v342_v4, 0.0  ;;  %v4641_v4 = vstv %s4584_s24 }
  0x40   : > { %3644 = vmatmul.mubr.msk.f32.gmra.mrb[6].mxu1 %vm687_vm1, %v4195_v16  ;;  %967 = vmatprep.mubr.f32.mxu0 %v5447_v0 }
  0x41   : > { %1056 = vmatprep.mubr.f32.mxu1 %v5447_v0 }
  0x43   : > { %3647 = vmatmul.mubr.msk.f32.vlgmr.msra.gmra.mrb[8].mxu0 %vm687_vm1, %v4151_v8 }
  0x44   : > { %3653 = vmatmul.mubr.msk.f32.vlgmr.msra.gmra.mrb[8].mxu1 %vm687_vm1, %v4151_v8  ;;  %3658 = vmatpush1.msk.msra.mxu0 %vm700_vm0, %v673_v9  ;;  %v4511_v9 = vstv %s3602_s29  ;;  %s4604_s29 = sld [smem:[#allocation2 + $0x1b]] }
  0x45   : > { %3664 = vmatpush1.msk.msra.mxu1 %vm700_vm0, %v674_v11  ;;  %973 = vmatprep.mubr.f32.mxu0 %v5447_v0  ;;  %v2775_v11 = vcombine.high %v4496_v2, %v4496_v2 }
  0x46   : > { %1062 = vmatprep.mubr.f32.mxu1 %v5447_v0  ;;  %3679 = vmatprep.subr.msk.mxu0 %vm700_vm0, %v1372_v19  ;;  %v411_v19 = vadd.f32 %v407_v6, %v401_v5  ;;  %v4644_v5 = vld [vmem:[%s4412_s21 + $0x10] sm:$0xff]  ;;  %v4651_v6 = vstv %s4588_s26  ;;  %s3821_s26 = smul.u32 1536, %s4016_s18 }
  0x47   : > { %3648 = vmatmul.mubr.msk.f32.gmra.mrb[10].mxu0 %vm687_vm1, %v4168_v13  ;;  %3685 = vmatprep.subr.msk.mxu1 %vm700_vm0, %v1373_v20  ;;  %v417_v20 = vmul.f32 %v4452_v55, %v4513_v10 }
  0x48   : > { %3654 = vmatmul.mubr.msk.f32.gmra.mrb[10].mxu1 %vm687_vm1, %v4168_v13  ;;  %979 = vmatprep.mubr.f32.mxu0 %v5447_v0 }
  0x49   : > { %1068 = vmatprep.mubr.f32.mxu1 %v5447_v0 }
  0x4b   : > { %3649 = vmatmul.mubr.msk.f32.gmra.mrb[12].mxu0 %vm687_vm1, %v4183_v15 }
  0x4c   : > { %3655 = vmatmul.mubr.msk.f32.gmra.mrb[12].mxu1 %vm687_vm1, %v4183_v15  ;;  %985 = vmatprep.mubr.f32.mxu0 %v5447_v0 }
  0x4d   : > { %1074 = vmatprep.mubr.f32.mxu1 %v5447_v0 }
  0x4f   : > { %3650 = vmatmul.mubr.msk.f32.gmra.mrb[14].mxu0 %vm687_vm1, %v4195_v16 }
  0x50   : > { %3656 = vmatmul.mubr.msk.f32.gmra.mrb[14].mxu1 %vm687_vm1, %v4195_v16  ;;  %1145 = vmatprep.mubr.f32.mxu0 %v5447_v0 }
  0x51   : > { %1234 = vmatprep.mubr.f32.mxu1 %v5447_v0 }
  0x53   : > { %3659 = vmatmul.mubr.msk.f32.vlgmr.msra.gmra.mrb[16].mxu0 %vm687_vm1, %v4151_v8 }
  0x54   : > { %3665 = vmatmul.mubr.msk.f32.vlgmr.msra.gmra.mrb[16].mxu1 %vm687_vm1, %v4151_v8  ;;  %3680 = vmatpush1.msk.msra.mxu0 %vm700_vm0, %v3673_v17  ;;  %v4528_v17 = vstv %s3599_s5  ;;  %s4638_s5 = sld [smem:[#allocation2 + $0x1c]] }
  0x55   : > { %3686 = vmatpush1.msk.msra.mxu1 %vm700_vm0, %v3674_v18  ;;  %1151 = vmatprep.mubr.f32.mxu0 %v5447_v0  ;;  %v362_v18 = vsub.f32 %v4472_v59, %v4511_v9 }
  0x56   : > { %1240 = vmatprep.mubr.f32.mxu1 %v5447_v0  ;;  %3691 = vmatprep.subr.msk.mxu0 %vm700_vm0, %v1374_v23  ;;  %v335_v23 = vmul.f32 %v4528_v17, %v330_v12  ;;  %v513_v12 = vmul.f32 %v4430_v48, %v4632_v57 }
  0x57   : > { %3660 = vmatmul.mubr.msk.f32.gmra.mrb[18].mxu0 %vm687_vm1, %v4168_v13  ;;  %3697 = vmatprep.subr.msk.mxu1 %vm700_vm0, %v1375_v24 }
  0x58   : > { %3666 = vmatmul.mubr.msk.f32.gmra.mrb[18].mxu1 %vm687_vm1, %v4168_v13  ;;  %1157 = vmatprep.mubr.f32.mxu0 %v5447_v0 }
  0x59   : > { %1246 = vmatprep.mubr.f32.mxu1 %v5447_v0 }
  0x5b   : > { %3661 = vmatmul.mubr.msk.f32.gmra.mrb[20].mxu0 %vm687_vm1, %v4183_v15 }
  0x5c   : > { %3667 = vmatmul.mubr.msk.f32.gmra.mrb[20].mxu1 %vm687_vm1, %v4183_v15  ;;  %1163 = vmatprep.mubr.f32.mxu0 %v5447_v0 }
  0x5d   : > { %1252 = vmatprep.mubr.f32.mxu1 %v5447_v0 }
  0x5f   : > { %3662 = vmatmul.mubr.msk.f32.gmra.mrb[22].mxu0 %vm687_vm1, %v4195_v16 }
  0x60   : > { %3668 = vmatmul.mubr.msk.f32.gmra.mrb[22].mxu1 %vm687_vm1, %v4195_v16  ;;  %1466 = vmatprep.mubr.f32.mxu0 %v5447_v0 }
  0x61   : > { %1555 = vmatprep.mubr.f32.mxu1 %v5447_v0 }
  0x63   : > { %3681 = vmatmul.mubr.msk.f32.vlgmr.msra.gmra.mrb[24].mxu0 %vm687_vm1, %v4151_v8 }
  0x64   : > { %3687 = vmatmul.mubr.msk.f32.vlgmr.msra.gmra.mrb[24].mxu1 %vm687_vm1, %v4151_v8  ;;  %3692 = vmatpush1.msk.msra.mxu0 %vm700_vm0, %v3675_v21  ;;  %v4537_v21 = vstv %s4479_s6  ;;  %s4669_s6 = sld [smem:[#allocation2 + $0x11]] }
  0x65   : > { %3698 = vmatpush1.msk.msra.mxu1 %vm700_vm0, %v3676_v22  ;;  %1472 = vmatprep.mubr.f32.mxu0 %v5447_v0  ;;  %v4540_v22 = vstv %s4481_s7  ;;  %v351_v24 = vmul.f32 %v4537_v21, %v346_v14  ;;  %v4665_v14 = vstv %s4604_s29  ;;  %s4671_s7 = sld [smem:[#allocation2 + $0x12]] }
  0x66   : > { %1561 = vmatprep.mubr.f32.mxu1 %v5447_v0  ;;  %3703 = vmatprep.subr.msk.mxu0 %vm700_vm0, %v1376_v27  ;;  %v4555_v27 = vadd.f32 %v417_v20, %v411_v19  ;;  %v291_v19 = vmul.f32 %v4432_v49, %v4644_v5 }
  0x67   : > { %3682 = vmatmul.mubr.msk.f32.gmra.mrb[26].mxu0 %vm687_vm1, %v4168_v13  ;;  %3709 = vmatprep.subr.msk.mxu1 %vm700_vm0, %v1377_v28  ;;  %v4558_v28 = vstv %s4509_s8  ;;  %s4685_s8 = sld [smem:[#allocation2 + $0x13]] }
  0x68   : > { %3688 = vmatmul.mubr.msk.f32.gmra.mrb[26].mxu1 %vm687_vm1, %v4168_v13  ;;  %1478 = vmatprep.mubr.f32.mxu0 %v5447_v0 }
  0x69   : > { %1567 = vmatprep.mubr.f32.mxu1 %v5447_v0 }
  0x6b   : > { %3683 = vmatmul.mubr.msk.f32.gmra.mrb[28].mxu0 %vm687_vm1, %v4183_v15 }
  0x6c   : > { %3689 = vmatmul.mubr.msk.f32.gmra.mrb[28].mxu1 %vm687_vm1, %v4183_v15  ;;  %1484 = vmatprep.mubr.f32.mxu0 %v5447_v0 }
  0x6d   : > { %1573 = vmatprep.mubr.f32.mxu1 %v5447_v0 }
  0x6f   : > { %3684 = vmatmul.mubr.msk.f32.gmra.mrb[30].mxu0 %vm687_vm1, %v4195_v16 }
  0x70   : > { %3690 = vmatmul.mubr.msk.f32.gmra.mrb[30].mxu1 %vm687_vm1, %v4195_v16  ;;  %1644 = vmatprep.mubr.f32.mxu0 %v5447_v0 }
  0x71   : > { %1733 = vmatprep.mubr.f32.mxu1 %v5447_v0 }
  0x73   : > { %3693 = vmatmul.mubr.msk.f32.vlgmr.msra.gmra.mrb[32].mxu0 %vm687_vm1, %v4151_v8 }
  0x74   : > { %3699 = vmatmul.mubr.msk.f32.vlgmr.msra.gmra.mrb[32].mxu1 %vm687_vm1, %v4151_v8  ;;  %3704 = vmatpush1.msk.msra.mxu0 %vm700_vm0, %v3677_v25  ;;  %v366_v25 = vmax.f32 %v362_v18, 0.0  ;;  %v488_v18 = vsub.f32 %v4555_v27, %v4641_v4 }
  0x75   : > { %3710 = vmatpush1.msk.msra.mxu1 %vm700_vm0, %v3678_v26  ;;  %1650 = vmatprep.mubr.f32.mxu0 %v5447_v0  ;;  %v382_v26 = vsub.f32 %v4472_v59, %v4540_v22 }
  0x76   : > { %1739 = vmatprep.mubr.f32.mxu1 %v5447_v0  ;;  %3725 = vmatprep.subr.msk.mxu0 %vm700_vm0, %v2061_v31  ;;  %v4571_v31 = vld [vmem:[%s4412_s21 + $0x28] sm:$0xff] }
  0x77   : > { %3694 = vmatmul.mubr.msk.f32.gmra.mrb[34].mxu0 %vm687_vm1, %v4168_v13  ;;  %3731 = vmatprep.subr.msk.mxu1 %vm700_vm0, %v2062_v32  ;;  %5467 = vst [vmem:[#allocation12_spill] sm:$0xff] %v4571_v31  ;;  %v355_v32 = vadd.f32 %v351_v24, %v335_v23 }
  0x78   : > { %3700 = vmatmul.mubr.msk.f32.gmra.mrb[34].mxu1 %vm687_vm1, %v4168_v13  ;;  %1656 = vmatprep.mubr.f32.mxu0 %v5447_v0 }
  0x79   : > { %1745 = vmatprep.mubr.f32.mxu1 %v5447_v0 }
  0x7b   : > { %3695 = vmatmul.mubr.msk.f32.gmra.mrb[36].mxu0 %vm687_vm1, %v4183_v15 }
  0x7c   : > { %3701 = vmatmul.mubr.msk.f32.gmra.mrb[36].mxu1 %vm687_vm1, %v4183_v15  ;;  %1662 = vmatprep.mubr.f32.mxu0 %v5447_v0 }
  0x7d   : > { %1751 = vmatprep.mubr.f32.mxu1 %v5447_v0 }
  0x7f   : > { %3696 = vmatmul.mubr.msk.f32.gmra.mrb[38].mxu0 %vm687_vm1, %v4195_v16 }
  0x80   : > { %3702 = vmatmul.mubr.msk.f32.gmra.mrb[38].mxu1 %vm687_vm1, %v4195_v16  ;;  %1822 = vmatprep.mubr.f32.mxu0 %v5447_v0 }
  0x81   : > { %1911 = vmatprep.mubr.f32.mxu1 %v5447_v0 }
  0x83   : > { %3705 = vmatmul.mubr.msk.f32.vlgmr.msra.gmra.mrb[40].mxu0 %vm687_vm1, %v4151_v8 }
  0x84   : > { %3711 = vmatmul.mubr.msk.f32.vlgmr.msra.gmra.mrb[40].mxu1 %vm687_vm1, %v4151_v8  ;;  %3726 = vmatpush1.msk.msra.mxu0 %vm700_vm0, %v3719_v29  ;;  %v4563_v29 = vstv %s4515_s14  ;;  %s4711_s14 = sld [smem:[#allocation2 + $0x1d]] }
  0x85   : > { %3732 = vmatpush1.msk.msra.mxu1 %vm700_vm0, %v3720_v30  ;;  %1828 = vmatprep.mubr.f32.mxu0 %v5447_v0  ;;  %v4568_v30 = vld [vmem:[%s4412_s21 + $0x8] sm:$0xff] }
  0x86   : > { %1917 = vmatprep.mubr.f32.mxu1 %v5447_v0  ;;  %3737 = vmatprep.subr.msk.mxu0 %vm700_vm0, %v2063_v35  ;;  %5466 = vst [vmem:[#allocation11_spill] sm:$0xff] %v4568_v30  ;;  %v428_v35 = vsub.f32 %v4555_v27, %v4563_v29 }
  0x87   : > { %3706 = vmatmul.mubr.msk.f32.gmra.mrb[42].mxu0 %vm687_vm1, %v4168_v13  ;;  %3743 = vmatprep.subr.msk.mxu1 %vm700_vm0, %v2064_v36  ;;  %v4586_v36 = vstv %s3605_s9  ;;  %s4743_s9 = sld [smem:[#allocation2 + $0x1e]] }
  0x88   : > { %3712 = vmatmul.mubr.msk.f32.gmra.mrb[42].mxu1 %vm687_vm1, %v4168_v13  ;;  %1834 = vmatprep.mubr.f32.mxu0 %v5447_v0 }
  0x89   : > { %1923 = vmatprep.mubr.f32.mxu1 %v5447_v0 }
  0x8b   : > { %3707 = vmatmul.mubr.msk.f32.gmra.mrb[44].mxu0 %vm687_vm1, %v4183_v15 }
  0x8c   : > { %3713 = vmatmul.mubr.msk.f32.gmra.mrb[44].mxu1 %vm687_vm1, %v4183_v15  ;;  %1840 = vmatprep.mubr.f32.mxu0 %v5447_v0 }
  0x8d   : > { %1929 = vmatprep.mubr.f32.mxu1 %v5447_v0 }
  0x8f   : > { %3708 = vmatmul.mubr.msk.f32.gmra.mrb[46].mxu0 %vm687_vm1, %v4195_v16 }
  0x90   : > { %3714 = vmatmul.mubr.msk.f32.gmra.mrb[46].mxu1 %vm687_vm1, %v4195_v16  ;;  %2155 = vmatprep.mubr.f32.mxu0 %v5447_v0 }
  0x91   : > { %2244 = vmatprep.mubr.f32.mxu1 %v5447_v0 }
  0x93   : > { %3727 = vmatmul.mubr.msk.f32.vlgmr.msra.gmra.mrb[48].mxu0 %vm687_vm1, %v4151_v8 }
  0x94   : > { %3733 = vmatmul.mubr.msk.f32.vlgmr.msra.gmra.mrb[48].mxu1 %vm687_vm1, %v4151_v8  ;;  %3738 = vmatpush1.msk.msra.mxu0 %vm700_vm0, %v3721_v33  ;;  %v371_v33 = vmul.f32 %v4558_v28, %v366_v25  ;;  %v4680_v25 = vstv %s4613_s30 }
  0x95   : > { %3744 = vmatpush1.msk.msra.mxu1 %vm700_vm0, %v3722_v34  ;;  %2161 = vmatprep.mubr.f32.mxu0 %v5447_v0  ;;  %v386_v34 = vmax.f32 %v382_v26, 0.0  ;;  %v4683_v26 = vld [vmem:[%s4412_s21 + $0x50] sm:$0xff] }
  0x96   : > { %2250 = vmatprep.mubr.f32.mxu1 %v5447_v0  ;;  %3749 = vmatprep.subr.msk.mxu0 %vm700_vm0, %v2065_v39  ;;  %v301_v39 = vmul.f32 %v4571_v31, %v4434_v50 }
  0x97   : > { %3728 = vmatmul.mubr.msk.f32.gmra.mrb[50].mxu0 %vm687_vm1, %v4168_v13  ;;  %3755 = vmatprep.subr.msk.mxu1 %vm700_vm0, %v2066_v40  ;;  %v4599_v40 = vld [vmem:[%s4412_s21 + $0x48] sm:$0xff] }
  0x98   : > { %3734 = vmatmul.mubr.msk.f32.gmra.mrb[50].mxu1 %vm687_vm1, %v4168_v13  ;;  %2167 = vmatprep.mubr.f32.mxu0 %v5447_v0 }
  0x99   : > { %2256 = vmatprep.mubr.f32.mxu1 %v5447_v0 }
  0x9b   : > { %3729 = vmatmul.mubr.msk.f32.gmra.mrb[52].mxu0 %vm687_vm1, %v4183_v15 }
  0x9c   : > { %3735 = vmatmul.mubr.msk.f32.gmra.mrb[52].mxu1 %vm687_vm1, %v4183_v15  ;;  %2173 = vmatprep.mubr.f32.mxu0 %v5447_v0 }
  0x9d   : > { %2262 = vmatprep.mubr.f32.mxu1 %v5447_v0 }
  0x9f   : > { %3730 = vmatmul.mubr.msk.f32.gmra.mrb[54].mxu0 %vm687_vm1, %v4195_v16 }
  0xa0   : > { %3736 = vmatmul.mubr.msk.f32.gmra.mrb[54].mxu1 %vm687_vm1, %v4195_v16  ;;  %2333 = vmatprep.mubr.f32.mxu0 %v5447_v0 }
  0xa1   : > { %2422 = vmatprep.mubr.f32.mxu1 %v5447_v0 }
  0xa3   : > { %3739 = vmatmul.mubr.msk.f32.vlgmr.msra.gmra.mrb[56].mxu0 %vm687_vm1, %v4151_v8 }
  0xa4   : > { %3745 = vmatmul.mubr.msk.f32.vlgmr.msra.gmra.mrb[56].mxu1 %vm687_vm1, %v4151_v8  ;;  %3750 = vmatpush1.msk.msra.mxu0 %vm700_vm0, %v3723_v37  ;;  %v4590_v37 = vstv %s3611_s11  ;;  %s4745_s11 = sld [smem:[#allocation2 + $0x14]] }
  0xa5   : > { %3756 = vmatpush1.msk.msra.mxu1 %vm700_vm0, %v3724_v38  ;;  %2339 = vmatprep.mubr.f32.mxu0 %v5447_v0  ;;  %v290_v38 = vmul.f32 %v4432_v49, %v4568_v30 }
  0xa6   : > { %2428 = vmatprep.mubr.f32.mxu1 %v5447_v0  ;;  %3771 = vmatprep.subr.msk.mxu0 %vm700_vm0, %v2770_v43  ;;  %v391_v43 = vmul.f32 %v4586_v36, %v386_v34 }
  0xa7   : > { %3740 = vmatmul.mubr.msk.f32.gmra.mrb[58].mxu0 %vm687_vm1, %v4168_v13  ;;  %3777 = vmatprep.subr.msk.mxu1 %vm700_vm0, %v2771_v44  ;;  %v432_v44 = vmax.f32 %v428_v35, 0.0  ;;  %v4695_v35 = vld [vmem:[%s4412_s21 + $0x18] sm:$0xff] }
  0xa8   : > { %3746 = vmatmul.mubr.msk.f32.gmra.mrb[58].mxu1 %vm687_vm1, %v4168_v13  ;;  %2345 = vmatprep.mubr.f32.mxu0 %v5447_v0 }
  0xa9   : > { %2434 = vmatprep.mubr.f32.mxu1 %v5447_v0 }
  0xab   : > { %3741 = vmatmul.mubr.msk.f32.gmra.mrb[60].mxu0 %vm687_vm1, %v4183_v15 }
  0xac   : > { %3747 = vmatmul.mubr.msk.f32.gmra.mrb[60].mxu1 %vm687_vm1, %v4183_v15  ;;  %2351 = vmatprep.mubr.f32.mxu0 %v5447_v0 }
  0xad   : > { %2440 = vmatprep.mubr.f32.mxu1 %v5447_v0 }
  0xaf   : > { %3742 = vmatmul.mubr.msk.f32.gmra.mrb[62].mxu0 %vm687_vm1, %v4195_v16 }
  0xb0   : > { %3748 = vmatmul.mubr.msk.f32.gmra.mrb[62].mxu1 %vm687_vm1, %v4195_v16  ;;  %2511 = vmatprep.mubr.f32.mxu0 %v5447_v0 }
  0xb1   : > { %2600 = vmatprep.mubr.f32.mxu1 %v5447_v0 }
  0xb3   : > { %3751 = vmatmul.mubr.msk.f32.vlgmr.msra.gmra.mrb[64].mxu0 %vm687_vm1, %v4151_v8 }
  0xb4   : > { %3757 = vmatmul.mubr.msk.f32.vlgmr.msra.gmra.mrb[64].mxu1 %vm687_vm1, %v4151_v8  ;;  %3772 = vmatpush1.msk.msra.mxu0 %vm700_vm0, %v3765_v41  ;;  %v4607_v41 = vstv %s4549_s12  ;;  %s4877_s12 = sld [smem:[#allocation2 + $0x1f]] }
  0xb5   : > { %3778 = vmatpush1.msk.msra.mxu1 %vm700_vm0, %v3766_v42  ;;  %2517 = vmatprep.mubr.f32.mxu0 %v5447_v0  ;;  %v375_v42 = vadd.f32 %v371_v33, %v355_v32  ;;  %v468_v53 = vsub.f32 %v4555_v27, %v4607_v41 }
  0xb6   : > { %2606 = vmatprep.mubr.f32.mxu1 %v5447_v0  ;;  %3783 = vmatprep.subr.msk.mxu0 %vm700_vm0, %v2772_v51  ;;  %v305_v51 = vadd.f32 %v301_v39, %v290_v38  ;;  %v4698_v38 = vld [vmem:[%s4412_s21 + $0x38] sm:$0xff]  ;;  %v492_v39 = vmax.f32 %v488_v18, 0.0  ;;  %v4733_v18 = vstv %s4669_s6  ;;  %s5388_s6 = scalar_lea.hbm %s5446_s4, %s3821_s26 }
  0xb7   : > { %3752 = vmatmul.mubr.msk.f32.gmra.mrb[66].mxu0 %vm687_vm1, %v4168_v13  ;;  %3789 = vmatprep.subr.msk.mxu1 %vm700_vm0, %v2773_v52  ;;  %v316_v52 = vmul.f32 %v4599_v40, %v4454_v56  ;;  %v395_v58 = vadd.f32 %v391_v43, %v375_v42  ;;  %v523_v42 = vmul.f32 %v4452_v55, %v4680_v25 }
  0xb8   : > { %3758 = vmatmul.mubr.msk.f32.gmra.mrb[66].mxu1 %vm687_vm1, %v4168_v13  ;;  %2523 = vmatprep.mubr.f32.mxu0 %v5447_v0 }
  0xb9   : > { %2612 = vmatprep.mubr.f32.mxu1 %v5447_v0 }
  0xbb   : > { %3753 = vmatmul.mubr.msk.f32.gmra.mrb[68].mxu0 %vm687_vm1, %v4183_v15 }
  0xbc   : > { %3759 = vmatmul.mubr.msk.f32.gmra.mrb[68].mxu1 %vm687_vm1, %v4183_v15  ;;  %2529 = vmatprep.mubr.f32.mxu0 %v5447_v0 }
  0xbd   : > { %2618 = vmatprep.mubr.f32.mxu1 %v5447_v0 }
  0xbf   : > { %3754 = vmatmul.mubr.msk.f32.gmra.mrb[70].mxu0 %vm687_vm1, %v4195_v16 }
  0xc0   : > { %3760 = vmatmul.mubr.msk.f32.gmra.mrb[70].mxu1 %vm687_vm1, %v4195_v16  ;;  %2864 = vmatprep.mubr.f32.mxu0 %v5447_v0 }
  0xc1   : > { %2953 = vmatprep.mubr.f32.mxu1 %v5447_v0 }
  0xc3   : > { %3773 = vmatmul.mubr.msk.f32.vlgmr.msra.gmra.mrb[72].mxu0 %vm687_vm1, %v4151_v8 }
  0xc4   : > { %3779 = vmatmul.mubr.msk.f32.vlgmr.msra.gmra.mrb[72].mxu1 %vm687_vm1, %v4151_v8  ;;  %3784 = vmatpush1.msk.msra.mxu0 %vm700_vm0, %v4417_v45  ;;  %v448_v45 = vsub.f32 %v4555_v27, %v4590_v37 }
  0xc5   : > { %3790 = vmatpush1.msk.msra.mxu1 %vm700_vm0, %v4423_v46  ;;  %2870 = vmatprep.mubr.f32.mxu0 %v5447_v0  ;;  %v4616_v46 = vstv %s4560_s13  ;;  %s4894_s13 = sld [smem:[#allocation2 + $0x20]] }
  0xc6   : > { %2959 = vmatprep.mubr.f32.mxu1 %v5447_v0  ;;  %3795 = vmatprep.subr.msk.mxu0 %vm700_vm0, %v2774_v7  ;;  %v437_v59 = vmul.f32 %v4616_v46, %v432_v44  ;;  %v452_v3 = vmax.f32 %v448_v45, 0.0  ;;  %v472_v7 = vmax.f32 %v468_v53, 0.0  ;;  %v317_v44 = vmul.f32 %v4683_v26, %v4454_v56 }
  0xc7   : > { %3774 = vmatmul.mubr.msk.f32.gmra.mrb[74].mxu0 %vm687_vm1, %v4168_v13  ;;  %3801 = vmatprep.subr.msk.mxu1 %vm700_vm0, %v2775_v11  ;;  %v507_v11 = vmul.f32 %v4629_v54, %v4427_v47  ;;  %v408_v53 = vmul.f32 %v4571_v31, %v4485_v63 }
  0xc8   : > { %3780 = vmatmul.mubr.msk.f32.gmra.mrb[74].mxu1 %vm687_vm1, %v4168_v13  ;;  %2876 = vmatprep.mubr.f32.mxu0 %v5447_v0  ;;  %v441_v23 = vadd.f32 %v437_v59, %v395_v58  ;;  %v457_v24 = vmul.f32 %v4651_v6, %v452_v3  ;;  %v477_v32 = vmul.f32 %v4665_v14, %v472_v7 }
  0xc9   : > { %2965 = vmatprep.mubr.f32.mxu1 %v5447_v0  ;;  %v517_v33 = vadd.f32 %v513_v12, %v507_v11  ;;  %v292_v59 = vmul.f32 %v4432_v49, %v4695_v35  ;;  %v303_v3 = vmul.f32 %v4698_v38, %v4434_v50  ;;  %v4726_v12 = vld [vmem:[%s4412_s21 + $0x58] sm:$0xff] }
  0xca   : > { %v461_v45 = vadd.f32 %v457_v24, %v441_v23 }
  0xcb   : > { %3775 = vmatmul.mubr.msk.f32.gmra.mrb[76].mxu0 %vm687_vm1, %v4183_v15  ;;  %v4741_v23 = vadd.f32 %v523_v42, %v517_v33 }
  0xcc   : > { %3781 = vmatmul.mubr.msk.f32.gmra.mrb[76].mxu1 %vm687_vm1, %v4183_v15  ;;  %2882 = vmatprep.mubr.f32.mxu0 %v5447_v0 }
  0xcd   : > { %2971 = vmatprep.mubr.f32.mxu1 %v5447_v0 }
  0xcf   : > { %3776 = vmatmul.mubr.msk.f32.gmra.mrb[78].mxu0 %vm687_vm1, %v4195_v16 }
  0xd0   : > { %3782 = vmatmul.mubr.msk.f32.gmra.mrb[78].mxu1 %vm687_vm1, %v4195_v16  ;;  %3042 = vmatprep.mubr.f32.mxu0 %v5447_v0 }
  0xd1   : > { %3131 = vmatprep.mubr.f32.mxu1 %v5447_v0 }
  0xd3   : > { %3785 = vmatmul.mubr.msk.f32.vlgmr.msra.gmra.mrb[80].mxu0 %vm687_vm1, %v4151_v8 }
  0xd4   : > { %3791 = vmatmul.mubr.msk.f32.vlgmr.msra.gmra.mrb[80].mxu1 %vm687_vm1, %v4151_v8  ;;  %3796 = vmatpush1.msk.msra.mxu0 %vm700_vm0, %v4490_v1  ;;  %v4647_v1 = vld [vmem:[%s4412_s21 + $0x30] sm:$0xff] }
  0xd5   : > { %3802 = vmatpush1.msk.msra.mxu1 %vm700_vm0, %v4496_v2  ;;  %3048 = vmatprep.mubr.f32.mxu0 %v5447_v0  ;;  %v4653_v2 = vadd.f32 %v316_v52, %v305_v51  ;;  %v302_v20 = vmul.f32 %v4647_v1, %v4434_v50  ;;  %v4709_v51 = vstv %s4638_s5  ;;  %v402_v52 = vmul.f32 %v4483_v62, %v4568_v30 }
  0xd6   : > { %3137 = vmatprep.mubr.f32.mxu1 %v5447_v0  ;;  %v497_v49 = vmul.f32 %v4709_v51, %v492_v39  ;;  %v4736_v50 = vstv %s4671_s7 }
  0xd7   : > { %3786 = vmatmul.mubr.msk.f32.gmra.mrb[82].mxu0 %vm687_vm1, %v4168_v13  ;;  %v327_v27 = vsub.f32 %v4653_v2, %v4475_v60  ;;  %v343_v34 = vsub.f32 %v4653_v2, %v4477_v61  ;;  %v306_v43 = vadd.f32 %v302_v20, %v291_v19  ;;  %v363_v11 = vsub.f32 %v4653_v2, %v4511_v9 }
  0xd8   : > { %3792 = vmatmul.mubr.msk.f32.gmra.mrb[82].mxu1 %vm687_vm1, %v4168_v13  ;;  %3054 = vmatprep.mubr.f32.mxu0 %v5447_v0  ;;  %v481_v20 = vadd.f32 %v477_v32, %v461_v45  ;;  %v412_v24 = vadd.f32 %v408_v53, %v402_v52  ;;  %v383_v42 = vsub.f32 %v4653_v2, %v4540_v22 }
  0xd9   : > { %3143 = vmatprep.mubr.f32.mxu1 %v5447_v0  ;;  %v331_v58 = vmax.f32 %v327_v27, 0.0  ;;  %v347_v7 = vmax.f32 %v343_v34, 0.0  ;;  %v4738_v19 = vadd.f32 %v317_v44, %v306_v43  ;;  %v418_v27 = vmul.f32 %v4599_v40, %v4513_v10 }
  0xda   : > { %v4750_v34 = vstv %s4685_s8  ;;  %v307_v43 = vadd.f32 %v303_v3, %v292_v59  ;;  %v318_v44 = vmul.f32 %v4726_v12, %v4454_v56  ;;  %v367_v33 = vmax.f32 %v363_v11, 0.0  ;;  %s4028_s8 = smov [#allocation5]  }
  0xdb   : > { %3787 = vmatmul.mubr.msk.f32.gmra.mrb[84].mxu0 %vm687_vm1, %v4183_v15  ;;  %v336_v39 = vmul.f32 %v4528_v17, %v331_v58  ;;  %v352_v32 = vmul.f32 %v4537_v21, %v347_v7  ;;  %v403_v45 = vmul.f32 %v4483_v62, %v4644_v5  ;;  %v328_v56 = vsub.f32 %v4738_v19, %v4475_v60 }
  0xdc   : > { %3793 = vmatmul.mubr.msk.f32.gmra.mrb[84].mxu1 %vm687_vm1, %v4183_v15  ;;  %3060 = vmatprep.mubr.f32.mxu0 %v5447_v0  ;;  %v344_v52 = vsub.f32 %v4738_v19, %v4477_v61  ;;  %v409_v53 = vmul.f32 %v4647_v1, %v4485_v63  ;;  %v534_v2 = vsub.f32 %v4741_v23, %v4733_v18  ;;  %v4775_v58 = vstv %s4711_s14  ;;  %s3946_s14 = sshll.u32 %s4028_s8, 4  ;;  %s3947_s14 = int_to_ptr.vmem [resolvable:$false] %s3946_s14 }
  0xdd   : > { %3149 = vmatprep.mubr.f32.mxu1 %v5447_v0  ;;  %v4777_v59 = vadd.f32 %v418_v27, %v412_v24  ;;  %v554_v3 = vsub.f32 %v4741_v23, %v4736_v50  ;;  %v4785_v11 = vadd.f32 %v318_v44, %v307_v43  ;;  %v372_v55 = vmul.f32 %v4558_v28, %v367_v33 }
  0xde   : > { %v387_v24 = vmax.f32 %v383_v42, 0.0  ;;  %v332_v27 = vmax.f32 %v328_v56, 0.0  ;;  %v348_v48 = vmax.f32 %v344_v52, 0.0  ;;  %v413_v7 = vadd.f32 %v409_v53, %v403_v45 }
  0xdf   : > { %3788 = vmatmul.mubr.msk.f32.gmra.mrb[86].mxu0 %vm687_vm1, %v4195_v16  ;;  %v419_v43 = vmul.f32 %v4683_v26, %v4513_v10  ;;  %v4802_v44 = vstv %s4745_s11  ;;  %v329_v33 = vsub.f32 %v4785_v11, %v4475_v60  ;;  %v345_v42 = vsub.f32 %v4785_v11, %v4477_v61 }
  0xe0   : > { %3794 = vmatmul.mubr.msk.f32.gmra.mrb[86].mxu1 %vm687_vm1, %v4195_v16  ;;  %3220 = vmatprep.mubr.f32.mxu0 %v5447_v0  ;;  %v404_v45 = vmul.f32 %v4483_v62, %v4695_v35  ;;  %v410_v56 = vmul.f32 %v4698_v38, %v4485_v63  ;;  %v392_v53 = vmul.f32 %v4586_v36, %v387_v24 }
  0xe1   : > { %3309 = vmatprep.mubr.f32.mxu1 %v5447_v0  ;;  %v384_v60 = vsub.f32 %v4738_v19, %v4540_v22  ;;  %v337_v61 = vmul.f32 %v4528_v17, %v332_v27  ;;  %v353_v62 = vmul.f32 %v4537_v21, %v348_v48  ;;  %v4828_v47 = vadd.f32 %v419_v43, %v413_v7 }
  0xe2   : > { %v333_v24 = vmax.f32 %v329_v33, 0.0  ;;  %v365_v27 = vsub.f32 %v4785_v11, %v4511_v9  ;;  %v414_v48 = vadd.f32 %v410_v56, %v404_v45  ;;  %v4841_v7 = vmax.f32 %v554_v3, 0.0 }
  0xe3   : > { %3797 = vmatmul.mubr.msk.f32.vlgmr.msra.gmra.mrb[88].mxu0 %vm687_vm1, %v4151_v8  ;;  %v357_v43 = vadd.f32 %v353_v62, %v337_v61  ;;  %v385_v3 = vsub.f32 %v4785_v11, %v4540_v22  ;;  %v509_v61 = vmul.f32 %v4629_v54, %v4644_v5  ;;  %v5469_v22 = vsub.f32 %v4741_v23, %v4750_v34 }
  0xe4   : > { %3803 = vmatmul.mubr.msk.f32.vlgmr.msra.gmra.mrb[88].mxu1 %vm687_vm1, %v4151_v8  ;;  %3226 = vmatprep.mubr.f32.mxu0 %v5447_v0  ;;  %v4779_v8 = vadd.f32 %v497_v49, %v481_v20  ;;  %v364_v49 = vsub.f32 %v4738_v19, %v4511_v9  ;;  %v5468_v20 = vmov 0.0   ;;  %v449_v19 = vsub.f32 %v4777_v59, %v4590_v37 }
  0xe5   : > { %3315 = vmatprep.mubr.f32.mxu1 %v5447_v0  ;;  %v356_v0 = vadd.f32 %v352_v32, %v336_v39  ;;  %v4799_v39 = vstv %s4743_s9  ;;  %v429_v32 = vsub.f32 %v4777_v59, %v4563_v29  ;;  %v430_v9 = vsub.f32 %v4828_v47, %v4563_v29  ;;  %s3948_s9 = scalar_lea.vmem %s3947_s14, 3072 }
  0xe6   : > { %v368_v63 = vmax.f32 %v364_v49, 0.0  ;;  %v524_v49 = vmul.f32 %v4599_v40, %v4680_v25  ;;  %v369_v45 = vmax.f32 %v365_v27, 0.0 }
  0xe7   : > { %3798 = vmatmul.mubr.msk.f32.gmra.mrb[90].mxu0 %vm687_vm1, %v4168_v13  ;;  %v376_v52 = vadd.f32 %v372_v55, %v356_v0  ;;  %v4831_v0 = vmax.f32 %v534_v2, 0.0  ;;  %v433_v55 = vmax.f32 %v429_v32, 0.0 }
  0xe8   : > { %3804 = vmatmul.mubr.msk.f32.gmra.mrb[90].mxu1 %vm687_vm1, %v4168_v13  ;;  %3232 = vmatprep.mubr.f32.mxu0 %v5468_v20  ;;  %v508_v13 = vmul.f32 %v4629_v54, %v4568_v30  ;;  %v514_v30 = vmul.f32 %v4571_v31, %v4632_v57  ;;  %v349_v31 = vmax.f32 %v345_v42, 0.0  ;;  %v373_v32 = vmul.f32 %v4558_v28, %v368_v63 }
  0xe9   : > { %3321 = vmatprep.mubr.f32.mxu1 %v5468_v20  ;;  %v438_v33 = vmul.f32 %v4616_v46, %v433_v55  ;;  %v453_v42 = vmax.f32 %v449_v19, 0.0  ;;  %v434_v63 = vmax.f32 %v430_v9, 0.0 }
  0xea   : > { %v518_v2 = vadd.f32 %v514_v30, %v508_v13  ;;  %v469_v30 = vsub.f32 %v4777_v59, %v4607_v41  ;;  %v338_v13 = vmul.f32 %v4528_v17, %v333_v24  ;;  %v377_v62 = vadd.f32 %v373_v32, %v357_v43 }
  0xeb   : > { %3799 = vmatmul.mubr.msk.f32.gmra.mrb[92].mxu0 %vm687_vm1, %v4183_v15  ;;  %v450_v17 = vsub.f32 %v4828_v47, %v4590_v37  ;;  %v458_v11 = vmul.f32 %v4651_v6, %v453_v42  ;;  %v389_v24 = vmax.f32 %v385_v3, 0.0  ;;  %v439_v43 = vmul.f32 %v4616_v46, %v434_v63 }
  0xec   : > { %3805 = vmatmul.mubr.msk.f32.gmra.mrb[92].mxu1 %vm687_vm1, %v4183_v15  ;;  %3238 = vmatprep.mubr.f32.mxu0 %v5468_v20  ;;  %v420_v15 = vmul.f32 %v4726_v12, %v4513_v10  ;;  %v396_v10 = vadd.f32 %v392_v53, %v376_v52  ;;  %v489_v52 = vsub.f32 %v4777_v59, %v4641_v4  ;;  %v473_v55 = vmax.f32 %v469_v30, 0.0 }
  0xed   : > { %3327 = vmatprep.mubr.f32.mxu1 %v5468_v20  ;;  %v388_v20 = vmax.f32 %v384_v60, 0.0  ;;  %v4861_v53 = vadd.f32 %v524_v49, %v518_v2  ;;  %v470_v49 = vsub.f32 %v4828_v47, %v4607_v41  ;;  %v510_v42 = vmul.f32 %v4629_v54, %v4695_v35 }
  0xee   : > { %v4857_v56 = vadd.f32 %v420_v15, %v414_v48  ;;  %v442_v59 = vadd.f32 %v438_v33, %v396_v10  ;;  %v374_v15 = vmul.f32 %v4558_v28, %v369_v45  ;;  %v493_v48 = vmax.f32 %v489_v52, 0.0 }
  0xef   : > { %3800 = vmatmul.mubr.msk.f32.gmra.mrb[94].mxu0 %vm687_vm1, %v4195_v16  ;;  %v393_v60 = vmul.f32 %v4586_v36, %v388_v20  ;;  %v535_v2 = vsub.f32 %v4861_v53, %v4733_v18  ;;  %v525_v20 = vmul.f32 %v4683_v26, %v4680_v25  ;;  %v454_v28 = vmax.f32 %v450_v17, 0.0 }
  0xf0   : > { %3806 = vmatmul.mubr.msk.f32.gmra.mrb[94].mxu1 %vm687_vm1, %v4195_v16  ;;  %v354_v16 = vmul.f32 %v4537_v21, %v349_v31  ;;  %v515_v21 = vmul.f32 %v4647_v1, %v4632_v57  ;;  %v578_v31 = vmax.f32 %v5469_v22, 0.0  ;;  %v431_v27 = vsub.f32 %v4857_v56, %v4563_v29 }
  0xf1   : > { %v397_v10 = vadd.f32 %v393_v60, %v377_v62  ;;  %v462_v9 = vadd.f32 %v458_v11, %v442_v59  ;;  %v478_v29 = vmul.f32 %v4665_v14, %v473_v55  ;;  %v451_v33 = vsub.f32 %v4857_v56, %v4590_v37 }
  0xf2   : > { %v358_v19 = vadd.f32 %v354_v16, %v338_v13  ;;  %v519_v32 = vadd.f32 %v515_v21, %v509_v61  ;;  %v394_v3 = vmul.f32 %v4586_v36, %v389_v24  ;;  %v435_v13 = vmax.f32 %v431_v27, 0.0 }
  0xf3   : > { %v516_v16 = vmul.f32 %v4698_v38, %v4632_v57  ;;  %v594_v45 = vsub.f32 %v4741_v23, %v4802_v44  ;;  %v498_v52 = vmul.f32 %v4709_v51, %v493_v48  ;;  %v555_v37 = vsub.f32 %v4861_v53, %v4736_v50 }
  0xf4   : > { %v378_v30 = vadd.f32 %v374_v15, %v358_v19  ;;  %v490_v54 = vsub.f32 %v4828_v47, %v4641_v4  ;;  %v443_v60 = vadd.f32 %v439_v43, %v397_v10  ;;  %v459_v36 = vmul.f32 %v4651_v6, %v454_v28 }
  0xf5   : > { %v474_v61 = vmax.f32 %v470_v49, 0.0  ;;  %v4904_v62 = vadd.f32 %v525_v20, %v519_v32  ;;  %v482_v57 = vadd.f32 %v478_v29, %v462_v9  ;;  %v539_v63 = vmax.f32 %v535_v2, 0.0 }
  0xf6   : > { %v455_v17 = vmax.f32 %v451_v33, 0.0  ;;  %v471_v23 = vsub.f32 %v4857_v56, %v4607_v41  ;;  %v398_v21 = vadd.f32 %v394_v3, %v378_v30  ;;  %v440_v22 = vmul.f32 %v4616_v46, %v435_v13 }
  0xf7   : > { %v520_v59 = vadd.f32 %v516_v16, %v510_v42  ;;  %v526_v11 = vmul.f32 %v4726_v12, %v4680_v25  ;;  %v543_v47 = vmul.f32 %v4775_v58, %v4831_v0  ;;  %v563_v55 = vmul.f32 %v4799_v39, %v4841_v7 }
  0xf8   : > { %v4916_v19 = vstv %s4877_s12  ;;  %v575_v15 = vsub.f32 %v4861_v53, %v4750_v34  ;;  %v463_v41 = vadd.f32 %v459_v36, %v443_v60  ;;  %v479_v24 = vmul.f32 %v4665_v14, %v474_v61 }
  0xf9   : > { %v494_v46 = vmax.f32 %v490_v54, 0.0  ;;  %v536_v27 = vsub.f32 %v4904_v62, %v4733_v18  ;;  %v502_v25 = vadd.f32 %v498_v52, %v482_v57  ;;  %v544_v48 = vmul.f32 %v4775_v58, %v539_v63  ;;  %v5470_v52 = vld [vmem:[#allocation8_spill] sm:$0xff]  ;;  %v5471_v63 = vld [vmem:[#allocation9_spill] sm:$0xff] }
  0xfa   : > { %v559_v0 = vmax.f32 %v555_v37, 0.0  ;;  %v491_v7 = vsub.f32 %v4857_v56, %v4641_v4  ;;  %v444_v2 = vadd.f32 %v440_v22, %v398_v21  ;;  %v460_v49 = vmul.f32 %v4651_v6, %v455_v17 }
  0xfb   : > { %v475_v20 = vmax.f32 %v471_v23, 0.0  ;;  %v4927_v10 = vadd.f32 %v526_v11, %v520_v59  ;;  %v547_v43 = vadd.f32 %v543_v47, %v4779_v8  ;;  %v583_v28 = vmul.f32 %v4916_v19, %v578_v31 }
  0xfc   : > { %v598_v32 = vmax.f32 %v594_v45, 0.0  ;;  %v4932_v9 = vstv %s4894_s13  ;;  %v483_v29 = vadd.f32 %v479_v24, %v463_v41  ;;  %v499_v33 = vmul.f32 %v4709_v51, %v494_v46  ;;  %v5472_v46 = vld [vmem:[#allocation10_spill] sm:$0xff] }
  0xfd   : > { %v540_v42 = vmax.f32 %v536_v27, 0.0  ;;  %v556_v4 = vsub.f32 %v4904_v62, %v4736_v50  ;;  %v548_v56 = vadd.f32 %v544_v48, %v502_v25  ;;  %v564_v6 = vmul.f32 %v4799_v39, %v559_v0  ;;  %v5473_v48 = vld [vmem:[#allocation11_spill] sm:$0xff] }
  0xfe   : > { %v579_v30 = vmax.f32 %v575_v15, 0.0  ;;  %v595_v3 = vsub.f32 %v4861_v53, %v4802_v44  ;;  %v464_v13 = vadd.f32 %v460_v49, %v444_v2  ;;  %v480_v31 = vmul.f32 %v4665_v14, %v475_v20  ;;  %v5474_v20 = vld [vmem:[#allocation12_spill] sm:$0xff] }
  0xff   : > { %v495_v16 = vmax.f32 %v491_v7, 0.0  ;;  %v537_v45 = vsub.f32 %v4927_v10, %v4733_v18  ;;  %v567_v36 = vadd.f32 %v563_v55, %v547_v43  ;;  %v603_v61 = vmul.f32 %v4932_v9, %v598_v32 }
 0x100   : > { %v576_v57 = vsub.f32 %v4904_v62, %v4750_v34  ;;  %v503_v23 = vadd.f32 %v499_v33, %v483_v29  ;;  %v545_v14 = vmul.f32 %v4775_v58, %v540_v42  ;;  %v560_v21 = vmax.f32 %v556_v4, 0.0 }
 0x101   : > { %v568_v59 = vadd.f32 %v564_v6, %v548_v56  ;;  %v584_v18 = vmul.f32 %v4916_v19, %v579_v30  ;;  %v599_v11 = vmax.f32 %v595_v3, 0.0  ;;  %v484_v15 = vadd.f32 %v480_v31, %v464_v13 }
 0x102   : > { %v500_v55 = vmul.f32 %v4709_v51, %v495_v16  ;;  %v541_v41 = vmax.f32 %v537_v45, 0.0  ;;  %v557_v24 = vsub.f32 %v4927_v10, %v4736_v50  ;;  %v596_v49 = vsub.f32 %v4904_v62, %v4802_v44 }
 0x103   : > { %v549_v51 = vadd.f32 %v545_v14, %v503_v23  ;;  %v565_v29 = vmul.f32 %v4799_v39, %v560_v21  ;;  %v580_v33 = vmax.f32 %v576_v57, 0.0  ;;  %v587_v50 = vadd.f32 %v583_v28, %v567_v36 }
 0x104   : > { %v604_v4 = vmul.f32 %v4932_v9, %v599_v11  ;;  %v504_v30 = vadd.f32 %v500_v55, %v484_v15  ;;  %v546_v3 = vmul.f32 %v4775_v58, %v541_v41  ;;  %v577_v62 = vsub.f32 %v4927_v10, %v4750_v34 }
 0x105   : > { %v588_v31 = vadd.f32 %v584_v18, %v568_v59  ;;  %v585_v36 = vmul.f32 %v4916_v19, %v580_v33  ;;  %v600_v57 = vmax.f32 %v596_v49, 0.0  ;;  %v597_v59 = vsub.f32 %v4927_v10, %v4802_v44 }
 0x106   : > { %v791_v8 = vpop.f32.mrb[0].mxu0  ;;  %v550_v14 = vadd.f32 %v546_v3, %v504_v30  ;;  %v612_v18 = vstv %s4954_s10 }
 0x107   : > { %v1259_v37 = vmul.f32 %v791_v8, %v5470_v52  ;;  %v793_v54 = vpop.f32.mrb[1].mxu0  ;;  %v880_v60 = vpop.f32.mrb[0].mxu1  ;;  %v561_v8 = vmax.f32 %v557_v24, 0.0  ;;  %v601_v49 = vmax.f32 %v597_v59, 0.0 }
 0x108   : > { %v1267_v53 = vmul.f32 %v5471_v63, %v793_v54  ;;  %v882_v17 = vpop.f32.mrb[1].mxu1  ;;  %v1275_v27 = vmul.f32 %v5472_v46, %v880_v60  ;;  %v569_v60 = vadd.f32 %v565_v29, %v549_v51 }
 0x109   : > { %v1263_v22 = vadd.f32 %v1259_v37, %v882_v17  ;;  %v566_v21 = vmul.f32 %v4799_v39, %v561_v8 }
 0x10a   : > { %v797_v47 = vpop.f32.mrb[2].mxu0  ;;  %v589_v24 = vadd.f32 %v585_v36, %v569_v60 }
 0x10b   : > { %v1271_v25 = vadd.f32 %v1267_v53, %v1263_v22  ;;  %v1260_v0 = vmul.f32 %v797_v47, %v5473_v48  ;;  %v799_v7 = vpop.f32.mrb[3].mxu0  ;;  %v886_v2 = vpop.f32.mrb[2].mxu1  ;;  %v607_v53 = vadd.f32 %v603_v61, %v587_v50  ;;  %v581_v22 = vmax.f32 %v577_v62, 0.0 }
 0x10c   : > { %v1268_v43 = vmul.f32 %v5474_v20, %v799_v7  ;;  %v888_v32 = vpop.f32.mrb[3].mxu1  ;;  %v1276_v13 = vmul.f32 %v4599_v40, %v886_v2  ;;  %v608_v61 = vadd.f32 %v604_v4, %v588_v31  ;;  %v570_v44 = vadd.f32 %v566_v21, %v550_v14 }
 0x10d   : > { %v4961_v42 = vadd.f32 %v1275_v27, %v1271_v25  ;;  %v1264_v56 = vadd.f32 %v1260_v0, %v888_v32  ;;  %v605_v27 = vmul.f32 %v4932_v9, %v600_v57  ;;  %v613_v2 = vadd.f32 %v612_v18, %v607_v53 }
 0x10e   : > { %v803_v6 = vpop.f32.mrb[4].mxu0  ;;  %v586_v10 = vmul.f32 %v4916_v19, %v581_v22  ;;  %v614_v4 = vadd.f32 %v612_v18, %v608_v61  ;;  %v606_v19 = vmul.f32 %v4932_v9, %v601_v49 }
 0x10f   : > { %v1272_v16 = vadd.f32 %v1268_v43, %v1264_v56  ;;  %v1261_v45 = vmul.f32 %v803_v6, %v4644_v5  ;;  %v805_v28 = vpop.f32.mrb[5].mxu0  ;;  %v892_v37 = vpop.f32.mrb[4].mxu1  ;;  %v609_v56 = vadd.f32 %v605_v27, %v589_v24  ;;  %v617_v62 = vmax.f32 %v613_v2, 0.0 }
 0x110   : > { %v1269_v54 = vmul.f32 %v4647_v1, %v805_v28  ;;  %v894_v58 = vpop.f32.mrb[5].mxu1  ;;  %v1277_v11 = vmul.f32 %v4683_v26, %v892_v37  ;;  %v618_v60 = vmax.f32 %v614_v4, 0.0 }
 0x111   : > { %v4971_v17 = vadd.f32 %v1276_v13, %v1272_v16  ;;  %v1265_v34 = vadd.f32 %v1261_v45, %v894_v58  ;;  %v590_v13 = vadd.f32 %v586_v10, %v570_v44  ;;  %v615_v36 = vadd.f32 %v612_v18, %v609_v56 }
 0x112   : > { %v809_v23 = vpop.f32.mrb[6].mxu0 }
 0x113   : > { %v1273_v47 = vadd.f32 %v1269_v54, %v1265_v34  ;;  %v1262_v15 = vmul.f32 %v809_v23, %v4695_v35  ;;  %v811_v55 = vpop.f32.mrb[7].mxu0  ;;  %v898_v41 = vpop.f32.mrb[6].mxu1  ;;  %v621_v23 = vmin.f32 %v617_v62, 1.0  ;;  %v610_v14 = vadd.f32 %v606_v19, %v590_v13 }
 0x114   : > { %v1270_v25 = vmul.f32 %v4698_v38, %v811_v55  ;;  %v900_v0 = vpop.f32.mrb[7].mxu1  ;;  %v1278_v32 = vmul.f32 %v4726_v12, %v898_v41  ;;  %v619_v55 = vmax.f32 %v615_v36, 0.0 }
 0x115   : > { %v4981_v39 = vadd.f32 %v1277_v11, %v1273_v47  ;;  %v1266_v7 = vadd.f32 %v1262_v15, %v900_v0  ;;  %v622_v15 = vmin.f32 %v618_v60, 1.0  ;;  %v616_v0 = vadd.f32 %v612_v18, %v610_v14 }
 0x116   : > { %v969_v43 = vpop.f32.mrb[8].mxu0 }
 0x117   : > { %v1274_v51 = vadd.f32 %v1270_v25, %v1266_v7  ;;  %v1287_v29 = vmul.f32 %v969_v43, %v5470_v52  ;;  %v971_v33 = vpop.f32.mrb[9].mxu0  ;;  %v1058_v50 = vpop.f32.mrb[8].mxu1  ;;  %v625_v25 = vmul.f32 4.0, %v621_v23 }
 0x118   : > { %v1295_v6 = vmul.f32 %v5471_v63, %v971_v33  ;;  %v1060_v30 = vpop.f32.mrb[9].mxu1  ;;  %v1303_v16 = vmul.f32 %v5472_v46, %v1058_v50 }
 0x119   : > { %v4987_v3 = vadd.f32 %v1278_v32, %v1274_v51  ;;  %v1291_v8 = vadd.f32 %v1287_v29, %v1060_v30  ;;  %v626_v32 = vmul.f32 4.0, %v622_v15  ;;  %v623_v51 = vmin.f32 %v619_v55, 1.0 }
 0x11a   : > { %v975_v31 = vpop.f32.mrb[10].mxu0  ;;  %v5005_v56 = vadd.f32 -0.5, %v625_v25 }
 0x11b   : > { %v1299_v45 = vadd.f32 %v1295_v6, %v1291_v8  ;;  %v1288_v28 = vmul.f32 %v975_v31, %v5473_v48  ;;  %v977_v37 = vpop.f32.mrb[11].mxu0  ;;  %v1064_v54 = vpop.f32.mrb[10].mxu1  ;;  %v620_v6 = vmax.f32 %v616_v0, 0.0  ;;  %v5009_v31 = vadd.f32 -0.5, %v626_v32 }
 0x11c   : > { %v1296_v57 = vmul.f32 %v5474_v20, %v977_v37  ;;  %v1066_v58 = vpop.f32.mrb[11].mxu1  ;;  %v1304_v9 = vmul.f32 %v4599_v40, %v1064_v54  ;;  %v649_v60 = vadd.f32 1.0, %v5005_v56 }
 0x11d   : > { %v4993_v53 = vadd.f32 %v1303_v16, %v1299_v45  ;;  %v1292_v34 = vadd.f32 %v1288_v28, %v1066_v58  ;;  %v627_v16 = vmul.f32 4.0, %v623_v51  ;;  %v624_v36 = vmin.f32 %v620_v6, 1.0 }
 0x11e   : > { %v981_v21 = vpop.f32.mrb[12].mxu0  ;;  %v653_v15 = vand.u32 2147483647, %v649_v60 }
 0x11f   : > { %v1300_v22 = vadd.f32 %v1296_v57, %v1292_v34  ;;  %v1289_v59 = vmul.f32 %v981_v21, %v4644_v5  ;;  %v983_v11 = vpop.f32.mrb[13].mxu0  ;;  %v1070_v47 = vpop.f32.mrb[12].mxu1  ;;  %v650_v21 = vadd.f32 1.0, %v5009_v31  ;;  %v628_v55 = vmul.f32 4.0, %v624_v36 }
 0x120   : > { %v1297_v41 = vmul.f32 %v4647_v1, %v983_v11  ;;  %v1072_v61 = vpop.f32.mrb[13].mxu1  ;;  %v1305_v2 = vmul.f32 %v4683_v26, %v1070_v47 }
 0x121   : > { %v4998_v24 = vadd.f32 %v1304_v9, %v1300_v22  ;;  %v1293_v27 = vadd.f32 %v1289_v59, %v1072_v61  ;;  %v5018_v9 = vadd.f32 -0.5, %v627_v16  ;;  %v637_v59 = vand.u32 2147483647, %v5005_v56 }
 0x122   : > { %v987_v7 = vpop.f32.mrb[14].mxu0 }
 0x123   : > { %v1301_v44 = vadd.f32 %v1297_v41, %v1293_v27  ;;  %v1290_v10 = vmul.f32 %v987_v7, %v4695_v35  ;;  %v989_v49 = vpop.f32.mrb[15].mxu0  ;;  %v1076_v43 = vpop.f32.mrb[14].mxu1 }
 0x124   : > { %v1298_v29 = vmul.f32 %v4698_v38, %v989_v49  ;;  %v1078_v33 = vpop.f32.mrb[15].mxu1  ;;  %v1306_v30 = vmul.f32 %v4726_v12, %v1076_v43 }
 0x125   : > { %v5003_v50 = vadd.f32 %v1305_v2, %v1301_v44  ;;  %v1294_v4 = vadd.f32 %v1290_v10, %v1078_v33  ;;  %v3669_v2 = vadd.f32 -1.0, %v5005_v56  ;;  %v654_v44 = vand.u32 2147483647, %v650_v21 }
 0x126   : > { %v1147_v18 = vpop.f32.mrb[16].mxu0  ;;  %v651_v10 = vadd.f32 1.0, %v5018_v9  ;;  %v641_v33 = vsub.f32 1.0, %v637_v59 }
 0x127   : > { %v1302_v8 = vadd.f32 %v1298_v29, %v1294_v4  ;;  %v1315_v62 = vmul.f32 %v1147_v18, %v5470_v52  ;;  %v1149_v13 = vpop.f32.mrb[17].mxu0  ;;  %v1236_v19 = vpop.f32.mrb[16].mxu1  ;;  %v3670_v29 = vadd.f32 -1.0, %v5009_v31  ;;  %v657_v4 = vsub.f32 1.0, %v653_v15 }
 0x128   : > { %v1323_v45 = vmul.f32 %v5471_v63, %v1149_v13  ;;  %v1238_v28 = vpop.f32.mrb[17].mxu1  ;;  %v1331_v58 = vmul.f32 %v5472_v46, %v1236_v19  ;;  %v638_v46 = vand.u32 2147483647, %v5009_v31  ;;  %v5033_v18 = vadd.f32 -0.5, %v628_v55 }
 0x129   : > { %v5012_v37 = vadd.f32 %v1306_v30, %v1302_v8  ;;  %v1319_v54 = vadd.f32 %v1315_v62, %v1238_v28  ;;  %v658_v28 = vsub.f32 1.0, %v654_v44  ;;  %v655_v60 = vand.u32 2147483647, %v651_v10 }
 0x12a   : > { %v1153_v57 = vpop.f32.mrb[18].mxu0  ;;  %v642_v6 = vsub.f32 1.0, %v638_v46  ;;  %v661_v21 = vmax.f32 %v657_v4, 0.0  ;;  %v5045_v46 = vld [vmem:[%s4412_s21] sm:$0xff]  ;;  %v640_v4 = vand.u32 2147483647, %v5033_v18 }
 0x12b   : > { %v1327_v34 = vadd.f32 %v1323_v45, %v1319_v54  ;;  %v1316_v52 = vmul.f32 %v1153_v57, %v5473_v48  ;;  %v1155_v23 = vpop.f32.mrb[19].mxu0  ;;  %v1242_v14 = vpop.f32.mrb[18].mxu1  ;;  %v1347_v45 = vand.u32 2147483647, %v3669_v2  ;;  %v639_v54 = vand.u32 2147483647, %v5018_v9 }
 0x12c   : > { %v1324_v63 = vmul.f32 %v5474_v20, %v1155_v23  ;;  %v1244_v22 = vpop.f32.mrb[19].mxu1  ;;  %v1332_v61 = vmul.f32 %v4599_v40, %v1242_v14  ;;  %v3671_v23 = vadd.f32 -1.0, %v5018_v9  ;;  %v645_v14 = vmax.f32 %v641_v33, 0.0  ;;  %v5049_v2 = vld [vmem:[%s4412_s21 + $0x20] sm:$0xff] }
 0x12d   : > { %v5022_v11 = vadd.f32 %v1331_v58, %v1327_v34  ;;  %v1320_v47 = vadd.f32 %v1316_v52, %v1244_v22  ;;  %v1348_v52 = vand.u32 2147483647, %v3670_v29  ;;  %v652_v22 = vadd.f32 1.0, %v5033_v18 }
 0x12e   : > { %v1159_v41 = vpop.f32.mrb[20].mxu0  ;;  %v1349_v29 = vand.u32 2147483647, %v3671_v23  ;;  %v5054_v33 = vadd.f32 %v661_v21, %v645_v14 }
 0x12f   : > { %v1328_v27 = vadd.f32 %v1324_v63, %v1320_v47  ;;  %v1317_v25 = vmul.f32 %v1159_v41, %v4644_v5  ;;  %v1161_v0 = vpop.f32.mrb[21].mxu0  ;;  %v1248_v7 = vpop.f32.mrb[20].mxu1  ;;  %v646_v63 = vmax.f32 %v642_v6, 0.0  ;;  %v656_v6 = vand.u32 2147483647, %v652_v22 }
 0x130   : > { %v1325_v49 = vmul.f32 %v4647_v1, %v1161_v0  ;;  %v1250_v43 = vpop.f32.mrb[21].mxu1  ;;  %v1333_v8 = vmul.f32 %v4683_v26, %v1248_v7  ;;  %v643_v0 = vsub.f32 1.0, %v639_v54  ;;  %v659_v7 = vsub.f32 1.0, %v655_v60 }
 0x131   : > { %v5030_v32 = vadd.f32 %v1332_v61, %v1328_v27  ;;  %v1321_v51 = vadd.f32 %v1317_v25, %v1250_v43  ;;  %v1351_v27 = vsub.f32 1.0, %v1347_v45  ;;  %v662_v25 = vmax.f32 %v658_v28, 0.0 }
 0x132   : > { %v1165_v30 = vpop.f32.mrb[22].mxu0  ;;  %v1353_v22 = vsub.f32 1.0, %v1349_v29 }
 0x133   : > { %v1329_v62 = vadd.f32 %v1325_v49, %v1321_v51  ;;  %v1318_v13 = vmul.f32 %v1165_v30, %v4695_v35  ;;  %v1167_v19 = vpop.f32.mrb[23].mxu0  ;;  %v1254_v16 = vpop.f32.mrb[22].mxu1  ;;  %v1352_v51 = vsub.f32 1.0, %v1348_v52  ;;  %v5065_v60 = vadd.f32 %v662_v25, %v646_v63 }
 0x134   : > { %v1326_v36 = vmul.f32 %v4698_v38, %v1167_v19  ;;  %v1256_v57 = vpop.f32.mrb[23].mxu1  ;;  %v1334_v47 = vmul.f32 %v4726_v12, %v1254_v16  ;;  %v5062_v19 = vmax.f32 %v1351_v27, 0.0 }
 0x135   : > { %v5039_v58 = vadd.f32 %v1333_v8, %v1329_v62  ;;  %v1322_v34 = vadd.f32 %v1318_v13, %v1256_v57  ;;  %v3672_v8 = vadd.f32 -1.0, %v5033_v18  ;;  %v5059_v62 = vld [vmem:[%s4412_s21 + $0x40] sm:$0xff]  ;;  %v663_v57 = vmax.f32 %v659_v7, 0.0 }
 0x136   : > { %v1468_v59 = vpop.f32.mrb[24].mxu0  ;;  %v5068_v14 = vmax.f32 %v1352_v51, 0.0  ;;  %v1284_v29 = vmul.f32 %v4971_v17, %v5065_v60 }
 0x137   : > { %v1330_v15 = vadd.f32 %v1326_v36, %v1322_v34  ;;  %v1936_v55 = vmul.f32 %v5045_v46, %v1468_v59  ;;  %v1470_v41 = vpop.f32.mrb[25].mxu0  ;;  %v1557_v61 = vpop.f32.mrb[24].mxu1  ;;  %v647_v36 = vmax.f32 %v643_v0, 0.0  ;;  %v1283_v59 = vmul.f32 %v4961_v42, %v5054_v33 }
 0x138   : > { %v1944_v44 = vmul.f32 %v5049_v2, %v1470_v41  ;;  %v1559_v10 = vpop.f32.mrb[25].mxu1  ;;  %v1952_v13 = vmul.f32 %v5059_v62, %v1557_v61 }
 0x139   : > { %v5052_v49 = vadd.f32 %v1334_v47, %v1330_v15  ;;  %v1940_v43 = vadd.f32 %v1936_v55, %v1559_v10  ;;  %v644_v47 = vsub.f32 1.0, %v640_v4  ;;  %v660_v15 = vsub.f32 1.0, %v656_v6 }
 0x13a   : > { %v1474_v30 = vpop.f32.mrb[26].mxu0  ;;  %v1350_v55 = vand.u32 2147483647, %v3672_v8  ;;  %v5075_v0 = vadd.f32 %v663_v57, %v647_v36 }
 0x13b   : > { %v1948_v16 = vadd.f32 %v1944_v44, %v1940_v43  ;;  %v1937_v45 = vmul.f32 %v1474_v30, %v5473_v48  ;;  %v1476_v28 = vpop.f32.mrb[27].mxu0  ;;  %v1563_v54 = vpop.f32.mrb[26].mxu1  ;;  %v5080_v43 = vmax.f32 %v1353_v22, 0.0  ;;  %v664_v4 = vmax.f32 %v660_v15, 0.0 }
 0x13c   : > { %v1945_v34 = vmul.f32 %v5474_v20, %v1476_v28  ;;  %v1565_v52 = vpop.f32.mrb[27].mxu1  ;;  %v1953_v41 = vmul.f32 %v4599_v40, %v1563_v54  ;;  %v648_v40 = vmax.f32 %v644_v47, 0.0 }
 0x13d   : > { %v1956_v23 = vadd.f32 %v1952_v13, %v1948_v16  ;;  %v1941_v21 = vadd.f32 %v1937_v45, %v1565_v52 }
 0x13e   : > { %v1480_v48 = vpop.f32.mrb[28].mxu0  ;;  %v5092_v52 = vadd.f32 %v664_v4, %v648_v40 }
 0x13f   : > { %v1960_v63 = vmul.f32 %v1956_v23, %v5062_v19  ;;  %v1949_v61 = vadd.f32 %v1945_v34, %v1941_v21  ;;  %v1938_v20 = vmul.f32 %v1480_v48, %v4644_v5  ;;  %v1482_v27 = vpop.f32.mrb[29].mxu0  ;;  %v1569_v25 = vpop.f32.mrb[28].mxu1  ;;  %v1354_v5 = vsub.f32 1.0, %v1350_v55 }
 0x140   : > { %v1946_v7 = vmul.f32 %v4647_v1, %v1482_v27  ;;  %v1571_v44 = vpop.f32.mrb[29].mxu1  ;;  %v1954_v8 = vmul.f32 %v4683_v26, %v1569_v25  ;;  %v1285_v34 = vmul.f32 %v4981_v39, %v5075_v0 }
 0x141   : > { %v5078_v10 = vadd.f32 %v1960_v63, %v1283_v59  ;;  %v1957_v42 = vadd.f32 %v1953_v41, %v1949_v61  ;;  %v1942_v51 = vadd.f32 %v1938_v20, %v1571_v44  ;;  %v5094_v23 = vmax.f32 %v1354_v5, 0.0 }
 0x142   : > { %v1486_v6 = vpop.f32.mrb[30].mxu0  ;;  %v1286_v41 = vmul.f32 %v4987_v3, %v5092_v52 }
 0x143   : > { %v1961_v30 = vmul.f32 %v1957_v42, %v5068_v14  ;;  %v1950_v13 = vadd.f32 %v1946_v7, %v1942_v51  ;;  %v1939_v1 = vmul.f32 %v1486_v6, %v4695_v35  ;;  %v1488_v16 = vpop.f32.mrb[31].mxu0  ;;  %v1575_v45 = vpop.f32.mrb[30].mxu1  ;;  %v5107_v7 = vld [vmem:[%s4412_s21 + $0x8] sm:$0xff] }
 0x144   : > { %v1947_v28 = vmul.f32 %v4698_v38, %v1488_v16  ;;  %v1577_v54 = vpop.f32.mrb[31].mxu1  ;;  %v1955_v35 = vmul.f32 %v4726_v12, %v1575_v45 }
 0x145   : > { %v5088_v36 = vadd.f32 %v1961_v30, %v1284_v29  ;;  %v1958_v57 = vadd.f32 %v1954_v8, %v1950_v13  ;;  %v1943_v17 = vadd.f32 %v1939_v1, %v1577_v54  ;;  %v5111_v29 = vld [vmem:[%s4412_s21 + $0x28] sm:$0xff]  ;;  %v1311_v30 = vmul.f32 %v4993_v53, %v5054_v33 }
 0x146   : > { %v1646_v26 = vpop.f32.mrb[32].mxu0  ;;  %v5120_v1 = vld [vmem:[%s4412_s21 + $0x48] sm:$0xff] }
 0x147   : > { %v1962_v21 = vmul.f32 %v1958_v57, %v5080_v43  ;;  %v1951_v22 = vadd.f32 %v1947_v28, %v1943_v17  ;;  %v1968_v38 = vmul.f32 %v5045_v46, %v1646_v26  ;;  %v1648_v59 = vpop.f32.mrb[33].mxu0  ;;  %v1735_v47 = vpop.f32.mrb[32].mxu1  ;;  %v5124_v28 = vld [vmem:[%s4412_s21 + $0x10] sm:$0xff] }
 0x148   : > { %v1976_v15 = vmul.f32 %v5049_v2, %v1648_v59  ;;  %v1737_v48 = vpop.f32.mrb[33].mxu1  ;;  %v1984_v27 = vmul.f32 %v5059_v62, %v1735_v47 }
 0x149   : > { %v5100_v39 = vadd.f32 %v1962_v21, %v1285_v34  ;;  %v1959_v55 = vadd.f32 %v1955_v35, %v1951_v22  ;;  %v1972_v63 = vadd.f32 %v1968_v38, %v1737_v48  ;;  %v5128_v34 = vld [vmem:[%s4412_s21 + $0x30] sm:$0xff]  ;;  %v1312_v38 = vmul.f32 %v4998_v24, %v5065_v60 }
 0x14a   : > { %v1652_v61 = vpop.f32.mrb[34].mxu0 }
 0x14b   : > { %v1963_v20 = vmul.f32 %v1959_v55, %v5094_v23  ;;  %v1980_v25 = vadd.f32 %v1976_v15, %v1972_v63  ;;  %v1969_v44 = vmul.f32 %v5107_v7, %v1652_v61  ;;  %v1654_v42 = vpop.f32.mrb[35].mxu0  ;;  %v1741_v51 = vpop.f32.mrb[34].mxu1  ;;  %v5137_v15 = vld [vmem:[%s4412_s21 + $0x50] sm:$0xff]  ;;  %v5141_v63 = vld [vmem:[%s4412_s21 + $0x18] sm:$0xff] }
 0x14c   : > { %v1977_v40 = vmul.f32 %v5111_v29, %v1654_v42  ;;  %v1743_v3 = vpop.f32.mrb[35].mxu1  ;;  %v1985_v16 = vmul.f32 %v5120_v1, %v1741_v51 }
 0x14d   : > { %v5114_v4 = vadd.f32 %v1963_v20, %v1286_v41  ;;  %v1988_v6 = vadd.f32 %v1984_v27, %v1980_v25  ;;  %v1973_v5 = vadd.f32 %v1969_v44, %v1743_v3  ;;  %v5145_v27 = vld [vmem:[%s4412_s21 + $0x38] sm:$0xff] }
 0x14e   : > { %v1658_v8 = vpop.f32.mrb[36].mxu0 }
 0x14f   : > { %v1992_v13 = vmul.f32 %v1988_v6, %v5062_v19  ;;  %v1981_v45 = vadd.f32 %v1977_v40, %v1973_v5  ;;  %v1970_v54 = vmul.f32 %v5124_v28, %v1658_v8  ;;  %v1660_v57 = vpop.f32.mrb[37].mxu0  ;;  %v1747_v17 = vpop.f32.mrb[36].mxu1  ;;  %v1313_v40 = vmul.f32 %v5003_v50, %v5075_v0 }
 0x150   : > { %v1978_v53 = vmul.f32 %v5128_v34, %v1660_v57  ;;  %v1749_v26 = vpop.f32.mrb[37].mxu1  ;;  %v1986_v48 = vmul.f32 %v5137_v15, %v1747_v17  ;;  %v1314_v50 = vmul.f32 %v5012_v37, %v5092_v52  ;;  %v1339_v37 = vmul.f32 %v5022_v11, %v5054_v33 }
 0x151   : > { %v5131_v21 = vadd.f32 %v1992_v13, %v1311_v30  ;;  %v1989_v35 = vadd.f32 %v1985_v16, %v1981_v45  ;;  %v1974_v22 = vadd.f32 %v1970_v54, %v1749_v26  ;;  %v1340_v11 = vmul.f32 %v5030_v32, %v5065_v60 }
 0x152   : > { %v1664_v59 = vpop.f32.mrb[38].mxu0 }
 0x153   : > { %v1993_v47 = vmul.f32 %v1989_v35, %v5068_v14  ;;  %v1982_v55 = vadd.f32 %v1978_v53, %v1974_v22  ;;  %v1971_v41 = vmul.f32 %v5141_v63, %v1664_v59  ;;  %v1666_v61 = vpop.f32.mrb[39].mxu0  ;;  %v1753_v20 = vpop.f32.mrb[38].mxu1 }
 0x154   : > { %v1979_v25 = vmul.f32 %v5145_v27, %v1666_v61  ;;  %v1755_v44 = vpop.f32.mrb[39].mxu1  ;;  %v1987_v5 = vmul.f32 %v4726_v12, %v1753_v20 }
 0x155   : > { %v5148_v24 = vadd.f32 %v1993_v47, %v1312_v38  ;;  %v1990_v42 = vadd.f32 %v1986_v48, %v1982_v55  ;;  %v1975_v51 = vadd.f32 %v1971_v41, %v1755_v44 }
 0x156   : > { %v1824_v3 = vpop.f32.mrb[40].mxu0 }
 0x157   : > { %v1994_v6 = vmul.f32 %v1990_v42, %v5080_v43  ;;  %v1983_v30 = vadd.f32 %v1979_v25, %v1975_v51  ;;  %v2000_v8 = vmul.f32 %v5045_v46, %v1824_v3  ;;  %v1826_v13 = vpop.f32.mrb[41].mxu0  ;;  %v1913_v16 = vpop.f32.mrb[40].mxu1  ;;  %v3715_v25 = vadd.f32 -2.0, %v5005_v56 }
 0x158   : > { %v2008_v45 = vmul.f32 %v5049_v2, %v1826_v13  ;;  %v1915_v54 = vpop.f32.mrb[41].mxu1  ;;  %v2016_v12 = vmul.f32 %v5059_v62, %v1913_v16 }
 0x159   : > { %v5156_v57 = vadd.f32 %v1994_v6, %v1313_v40  ;;  %v1991_v17 = vadd.f32 %v1987_v5, %v1983_v30  ;;  %v2004_v53 = vadd.f32 %v2000_v8, %v1915_v54  ;;  %v2036_v54 = vand.u32 2147483647, %v3715_v25  ;;  %v5189_v25 = vld [vmem:[%s4412_s21 + $0x58] sm:$0xff]  ;;  %s258_s21 = sand.u32 1, %s4008_s16  }
 0x15a   : > { %v1830_v26 = vpop.f32.mrb[42].mxu0  ;;  %s3818_s22 = smul.u32 96, %s258_s21  ;;  %s5396_s18 = scalar_lea.sflag [#allocation3], %s258_s21 }
 0x15b   : > { %v1995_v35 = vmul.f32 %v1991_v17, %v5094_v23  ;;  %v2012_v22 = vadd.f32 %v2008_v45, %v2004_v53  ;;  %v2001_v38 = vmul.f32 %v5107_v7, %v1830_v26  ;;  %v1832_v59 = vpop.f32.mrb[43].mxu0  ;;  %v1919_v47 = vpop.f32.mrb[42].mxu1  ;;  %v2040_v60 = vsub.f32 1.0, %v2036_v54 }
 0x15c   : > { %v2009_v48 = vmul.f32 %v5111_v29, %v1832_v59  ;;  %v1921_v55 = vpop.f32.mrb[43].mxu1  ;;  %v2017_v51 = vmul.f32 %v5120_v1, %v1919_v47  ;;  %v3718_v54 = vadd.f32 -2.0, %v5033_v18  ;;  %s5319_s24 = scalar_lea.vmem [#allocation5], %s3818_s22 }
 0x15d   : > { %v5164_v41 = vadd.f32 %v1995_v35, %v1314_v50  ;;  %v2020_v61 = vadd.f32 %v2016_v12, %v2012_v22  ;;  %v2005_v20 = vadd.f32 %v2001_v38, %v1921_v55  ;;  %s3460_s29 = sshll.u32 %s5319_s24, 4  ;;  %s5391_s29 = int_to_ptr.vmem [resolvable:$true] %s3460_s29 }
 0x15e   : > { %v1836_v44 = vpop.f32.mrb[44].mxu0  ;;  %s3942_s7 = scalar_lea.vmem %s5391_s29, 1536  ;;  %p3949_p0 = scmp.lt.s32.totalorder %s5391_s29, %s3947_s14 }
 0x15f   : > { %v2024_v42 = vmul.f32 %v2020_v61, %v5062_v19  ;;  %v2013_v40 = vadd.f32 %v2009_v48, %v2005_v20  ;;  %v2002_v3 = vmul.f32 %v5124_v28, %v1836_v44  ;;  %v1838_v6 = vpop.f32.mrb[45].mxu0  ;;  %v1925_v5 = vpop.f32.mrb[44].mxu1  ;;  %v3716_v19 = vadd.f32 -2.0, %v5009_v31  ;;  %p3943_p10 = scmp.ne.s32.totalorder %s5391_s29, %s3942_s7  ;;  %p3950_p1 = scmp.lt.s32.totalorder %s3948_s9, %s3942_s7 }
 0x160   : > { %v2010_v30 = vmul.f32 %v5128_v34, %v1838_v6  ;;  %v1927_v8 = vpop.f32.mrb[45].mxu1  ;;  %v2018_v53 = vmul.f32 %v5137_v15, %v1925_v5  ;;  %v1341_v48 = vmul.f32 %v5039_v58, %v5075_v0  ;;  %v3717_v61 = vadd.f32 -2.0, %v5018_v9 }
 0x161   : > { %v5173_v13 = vadd.f32 %v2024_v42, %v1339_v37  ;;  %v2021_v16 = vadd.f32 %v2017_v51, %v2013_v40  ;;  %v2006_v45 = vadd.f32 %v2002_v3, %v1927_v8  ;;  %v2037_v55 = vand.u32 2147483647, %v3716_v19  ;;  %p3944_p11 = pnand %p3943_p10, %p4096_p4  ;;  %p3951_p2 = por %p3950_p1, %p3949_p0 }
 0x162   : > { %v1842_v33 = vpop.f32.mrb[46].mxu0  ;;  %v5196_v0 = vmax.f32 %v2040_v60, 0.0 }
 0x163   : > { %v2025_v17 = vmul.f32 %v2021_v16, %v5068_v14  ;;  %v2014_v50 = vadd.f32 %v2010_v30, %v2006_v45  ;;  %v2003_v26 = vmul.f32 %v5141_v63, %v1842_v33  ;;  %v1844_v35 = vpop.f32.mrb[47].mxu0  ;;  %v1931_v12 = vpop.f32.mrb[46].mxu1  ;;  %v2041_v16 = vsub.f32 1.0, %v2037_v55  ;;  %p3945_p13 = pneg %p3944_p11 }
 0x164   : > { %v2011_v22 = vmul.f32 %v5145_v27, %v1844_v35  ;;  %v1933_v38 = vpop.f32.mrb[47].mxu1  ;;  %v2019_v37 = vmul.f32 %v5189_v25, %v1931_v12  ;;  %v2038_v45 = vand.u32 2147483647, %v3717_v61 }
 0x165   : > { %v5182_v59 = vadd.f32 %v2025_v17, %v1340_v11  ;;  %v2022_v47 = vadd.f32 %v2018_v53, %v2014_v50  ;;  %v2007_v32 = vadd.f32 %v2003_v26, %v1933_v38  ;;  %p3952_p3 = pnand %p3951_p2, %p3945_p13 }
 0x166   : > { %v2157_v14 = vpop.f32.mrb[48].mxu0 }
 0x167   : > { %v2026_v20 = vmul.f32 %v2022_v47, %v5080_v43  ;;  %v2015_v44 = vadd.f32 %v2011_v22, %v2007_v32  ;;  %v2625_v42 = vmul.f32 %v5045_v46, %v2157_v14  ;;  %v2159_v51 = vpop.f32.mrb[49].mxu0  ;;  %v2246_v40 = vpop.f32.mrb[48].mxu1  ;;  %v1342_v43 = vmul.f32 %v5052_v49, %v5092_v52 }
 0x168   : > { %v2633_v3 = vmul.f32 %v5049_v2, %v2159_v51  ;;  %v2248_v6 = vpop.f32.mrb[49].mxu1  ;;  %v2641_v33 = vmul.f32 %v5059_v62, %v2246_v40  ;;  %v5207_v22 = vmax.f32 %v2041_v16, 0.0  ;;  %v2042_v47 = vsub.f32 1.0, %v2038_v45 }
 0x169   : > { %v5194_v5 = vadd.f32 %v2026_v20, %v1341_v48  ;;  %v2023_v58 = vadd.f32 %v2019_v37, %v2015_v44  ;;  %v2629_v30 = vadd.f32 %v2625_v42, %v2248_v6  ;;  %v2039_v32 = vand.u32 2147483647, %v3718_v54 }
 0x16a   : > { %v2163_v8 = vpop.f32.mrb[50].mxu0  ;;  %v5216_v40 = vmax.f32 %v2042_v47, 0.0 }
 0x16b   : > { %v2027_v11 = vmul.f32 %v2023_v58, %v5094_v23  ;;  %v2637_v19 = vadd.f32 %v2633_v3, %v2629_v30  ;;  %v2626_v17 = vmul.f32 %v5107_v7, %v2163_v8  ;;  %v2165_v53 = vpop.f32.mrb[51].mxu0  ;;  %v2252_v50 = vpop.f32.mrb[50].mxu1  ;;  %v2043_v6 = vsub.f32 1.0, %v2039_v32 }
 0x16c   : > { %v2634_v26 = vmul.f32 %v5111_v29, %v2165_v53  ;;  %v2254_v35 = vpop.f32.mrb[51].mxu1  ;;  %v2642_v60 = vmul.f32 %v5120_v1, %v2252_v50 }
 0x16d   : > { %v5205_v12 = vadd.f32 %v2027_v11, %v1342_v43  ;;  %v2645_v49 = vadd.f32 %v2641_v33, %v2637_v19  ;;  %v2630_v52 = vadd.f32 %v2626_v17, %v2254_v35  ;;  %v5225_v17 = vmax.f32 %v2043_v6, 0.0 }
 0x16e   : > { %v2169_v38 = vpop.f32.mrb[52].mxu0 }
 0x16f   : > { %v2649_v23 = vmul.f32 %v2645_v49, %v5196_v0  ;;  %v2638_v48 = vadd.f32 %v2634_v26, %v2630_v52  ;;  %v2627_v14 = vmul.f32 %v5124_v28, %v2169_v38  ;;  %v2171_v55 = vpop.f32.mrb[53].mxu0  ;;  %v2258_v61 = vpop.f32.mrb[52].mxu1 }
 0x170   : > { %v2635_v20 = vmul.f32 %v5128_v34, %v2171_v55  ;;  %v2260_v37 = vpop.f32.mrb[53].mxu1  ;;  %v2643_v30 = vmul.f32 %v5137_v15, %v2258_v61 }
 0x171   : > { %v5214_v44 = vadd.f32 %v2649_v23, %v5078_v10  ;;  %v2646_v42 = vadd.f32 %v2642_v60, %v2638_v48  ;;  %v2631_v51 = vadd.f32 %v2627_v14, %v2260_v37 }
 0x172   : > { %v2175_v3 = vpop.f32.mrb[54].mxu0 }
 0x173   : > { %v2650_v58 = vmul.f32 %v2646_v42, %v5207_v22  ;;  %v2639_v43 = vadd.f32 %v2635_v20, %v2631_v51  ;;  %v2628_v8 = vmul.f32 %v5141_v63, %v2175_v3  ;;  %v2177_v16 = vpop.f32.mrb[55].mxu0  ;;  %v2264_v45 = vpop.f32.mrb[54].mxu1 }
 0x174   : > { %v2636_v54 = vmul.f32 %v5145_v27, %v2177_v16  ;;  %v2266_v11 = vpop.f32.mrb[55].mxu1  ;;  %v2644_v26 = vmul.f32 %v5189_v25, %v2264_v45 }
 0x175   : > { %v5223_v10 = vadd.f32 %v2650_v58, %v5088_v36  ;;  %v2647_v33 = vadd.f32 %v2643_v30, %v2639_v43  ;;  %v2632_v19 = vadd.f32 %v2628_v8, %v2266_v11 }
 0x176   : > { %v2335_v53 = vpop.f32.mrb[56].mxu0 }
 0x177   : > { %v2651_v50 = vmul.f32 %v2647_v33, %v5216_v40  ;;  %v2640_v35 = vadd.f32 %v2636_v54, %v2632_v19  ;;  %v2657_v49 = vmul.f32 %v5045_v46, %v2335_v53  ;;  %v2337_v52 = vpop.f32.mrb[57].mxu0  ;;  %v2424_v38 = vpop.f32.mrb[56].mxu1 }
 0x178   : > { %v2665_v47 = vmul.f32 %v5049_v2, %v2337_v52  ;;  %v2426_v32 = vpop.f32.mrb[57].mxu1  ;;  %v2673_v55 = vmul.f32 %v5059_v62, %v2424_v38 }
 0x179   : > { %v5232_v36 = vadd.f32 %v2651_v50, %v5100_v39  ;;  %v2648_v23 = vadd.f32 %v2644_v26, %v2640_v35  ;;  %v2661_v60 = vadd.f32 %v2657_v49, %v2426_v32 }
 0x17a   : > { %v2341_v48 = vpop.f32.mrb[58].mxu0 }
 0x17b   : > { %v2652_v14 = vmul.f32 %v2648_v23, %v5225_v17  ;;  %v2669_v61 = vadd.f32 %v2665_v47, %v2661_v60  ;;  %v2658_v20 = vmul.f32 %v5107_v7, %v2341_v48  ;;  %v2343_v37 = vpop.f32.mrb[59].mxu0  ;;  %v2430_v42 = vpop.f32.mrb[58].mxu1 }
 0x17c   : > { %v2666_v51 = vmul.f32 %v5111_v29, %v2343_v37  ;;  %v2432_v3 = vpop.f32.mrb[59].mxu1  ;;  %v2674_v8 = vmul.f32 %v5120_v1, %v2430_v42 }
 0x17d   : > { %v5239_v6 = vadd.f32 %v2652_v14, %v5114_v4  ;;  %v2677_v39 = vadd.f32 %v2673_v55, %v2669_v61  ;;  %v2662_v58 = vadd.f32 %v2658_v20, %v2432_v3 }
 0x17e   : > { %v2347_v30 = vpop.f32.mrb[60].mxu0 }
 0x17f   : > { %v2681_v43 = vmul.f32 %v2677_v39, %v5196_v0  ;;  %v2670_v16 = vadd.f32 %v2666_v51, %v2662_v58  ;;  %v2659_v45 = vmul.f32 %v5124_v28, %v2347_v30  ;;  %v2349_v54 = vpop.f32.mrb[61].mxu0  ;;  %v2436_v11 = vpop.f32.mrb[60].mxu1  ;;  %v3761_v30 = vadd.f32 -3.0, %v5005_v56 }
 0x180   : > { %v2667_v33 = vmul.f32 %v5128_v34, %v2349_v54  ;;  %v2438_v19 = vpop.f32.mrb[61].mxu1  ;;  %v2675_v49 = vmul.f32 %v5137_v15, %v2436_v11 }
 0x181   : > { %v5246_v53 = vadd.f32 %v2681_v43, %v5131_v21  ;;  %v2678_v4 = vadd.f32 %v2674_v8, %v2670_v16  ;;  %v2663_v50 = vadd.f32 %v2659_v45, %v2438_v19  ;;  %v2737_v45 = vsub.f32 4.0, %v5005_v56 }
 0x182   : > { %v2353_v26 = vpop.f32.mrb[62].mxu0 }
 0x183   : > { %v2682_v35 = vmul.f32 %v2678_v4, %v5207_v22  ;;  %v2671_v52 = vadd.f32 %v2667_v33, %v2663_v50  ;;  %v2660_v38 = vmul.f32 %v5141_v63, %v2353_v26  ;;  %v2355_v47 = vpop.f32.mrb[63].mxu0  ;;  %v2442_v32 = vpop.f32.mrb[62].mxu1 }
 0x184   : > { %v2668_v23 = vmul.f32 %v5145_v27, %v2355_v47  ;;  %v2444_v60 = vpop.f32.mrb[63].mxu1  ;;  %v2676_v20 = vmul.f32 %v5189_v25, %v2442_v32 }
 0x185   : > { %v5253_v48 = vadd.f32 %v2682_v35, %v5148_v24  ;;  %v2679_v21 = vadd.f32 %v2675_v49, %v2671_v52  ;;  %v2664_v14 = vadd.f32 %v2660_v38, %v2444_v60  ;;  %v2725_v49 = vand.u32 2147483647, %v3761_v30 }
 0x186   : > { %v2513_v55 = vpop.f32.mrb[64].mxu0  ;;  %v2738_v52 = vsub.f32 4.0, %v5009_v31 }
 0x187   : > { %v2683_v61 = vmul.f32 %v2679_v21, %v5216_v40  ;;  %v2672_v37 = vadd.f32 %v2668_v23, %v2664_v14  ;;  %v2689_v42 = vmul.f32 %v5045_v46, %v2513_v55  ;;  %v2515_v51 = vpop.f32.mrb[65].mxu0  ;;  %v2602_v3 = vpop.f32.mrb[64].mxu1  ;;  %v2741_v23 = vand.u32 2147483647, %v2737_v45 }
 0x188   : > { %v2697_v39 = vmul.f32 %v5049_v2, %v2515_v51  ;;  %v2604_v58 = vpop.f32.mrb[65].mxu1  ;;  %v2705_v11 = vmul.f32 %v5059_v62, %v2602_v3 }
 0x189   : > { %v5261_v24 = vadd.f32 %v2683_v61, %v5156_v57  ;;  %v2680_v43 = vadd.f32 %v2676_v20, %v2672_v37  ;;  %v2693_v8 = vadd.f32 %v2689_v42, %v2604_v58  ;;  %v3762_v57 = vadd.f32 -3.0, %v5009_v31 }
 0x18a   : > { %v2519_v16 = vpop.f32.mrb[66].mxu0  ;;  %v2729_v31 = vsub.f32 1.0, %v2725_v49 }
 0x18b   : > { %v2684_v54 = vmul.f32 %v2680_v43, %v5225_v17  ;;  %v2701_v33 = vadd.f32 %v2697_v39, %v2693_v8  ;;  %v2690_v19 = vmul.f32 %v5107_v7, %v2519_v16  ;;  %v2521_v4 = vpop.f32.mrb[67].mxu0  ;;  %v2608_v50 = vpop.f32.mrb[66].mxu1  ;;  %v2726_v51 = vand.u32 2147483647, %v3762_v57 }
 0x18c   : > { %v2698_v26 = vmul.f32 %v5111_v29, %v2521_v4  ;;  %v2610_v35 = vpop.f32.mrb[67].mxu1  ;;  %v2706_v21 = vmul.f32 %v5120_v1, %v2608_v50  ;;  %v2745_v43 = vsub.f32 1.0, %v2741_v23  ;;  %v2739_v8 = vsub.f32 4.0, %v5018_v9 }
 0x18d   : > { %v5271_v38 = vadd.f32 %v2684_v54, %v5164_v41  ;;  %v2709_v56 = vadd.f32 %v2705_v11, %v2701_v33  ;;  %v2694_v47 = vadd.f32 %v2690_v19, %v2610_v35  ;;  %v2742_v41 = vand.u32 2147483647, %v2738_v52 }
 0x18e   : > { %v2525_v32 = vpop.f32.mrb[68].mxu0  ;;  %v2733_v50 = vmax.f32 %v2729_v31, 0.0  ;;  %v2740_v23 = vsub.f32 4.0, %v5033_v18 }
 0x18f   : > { %v2713_v60 = vmul.f32 %v2709_v56, %v5196_v0  ;;  %v2702_v14 = vadd.f32 %v2698_v26, %v2694_v47  ;;  %v2691_v55 = vmul.f32 %v5124_v28, %v2525_v32  ;;  %v2527_v61 = vpop.f32.mrb[69].mxu0  ;;  %v2614_v20 = vpop.f32.mrb[68].mxu1  ;;  %v3763_v0 = vadd.f32 -3.0, %v5018_v9 }
 0x190   : > { %v2699_v37 = vmul.f32 %v5128_v34, %v2527_v61  ;;  %v2616_v42 = vpop.f32.mrb[69].mxu1  ;;  %v2707_v45 = vmul.f32 %v5137_v15, %v2614_v20  ;;  %v2730_v26 = vsub.f32 1.0, %v2726_v51  ;;  %v2746_v35 = vsub.f32 1.0, %v2742_v41 }
 0x191   : > { %v5278_v3 = vadd.f32 %v2713_v60, %v5173_v13  ;;  %v2710_v39 = vadd.f32 %v2706_v21, %v2702_v14  ;;  %v2695_v58 = vadd.f32 %v2691_v55, %v2616_v42  ;;  %v2727_v52 = vand.u32 2147483647, %v3763_v0 }
 0x192   : > { %v2531_v30 = vpop.f32.mrb[70].mxu0  ;;  %v2749_v56 = vmax.f32 %v2745_v43, 0.0  ;;  %v2743_v47 = vand.u32 2147483647, %v2739_v8  ;;  %v3764_v32 = vadd.f32 -3.0, %v5033_v18  ;;  %v2734_v42 = vmax.f32 %v2730_v26, 0.0 }
 0x193   : > { %v2714_v16 = vmul.f32 %v2710_v39, %v5207_v22  ;;  %v2703_v54 = vadd.f32 %v2699_v37, %v2695_v58  ;;  %v2692_v11 = vmul.f32 %v5141_v63, %v2531_v30  ;;  %v2533_v33 = vpop.f32.mrb[71].mxu0  ;;  %v2620_v19 = vpop.f32.mrb[70].mxu1  ;;  %v2750_v31 = vmax.f32 %v2746_v35, 0.0 }
 0x194   : > { %v2700_v13 = vmul.f32 %v5145_v27, %v2533_v33  ;;  %v2622_v4 = vpop.f32.mrb[71].mxu1  ;;  %v2708_v21 = vmul.f32 %v5189_v25, %v2620_v19  ;;  %v5299_v39 = vadd.f32 %v2749_v56, %v2733_v50  ;;  %v2747_v0 = vsub.f32 1.0, %v2743_v47 }
 0x195   : > { %v5287_v49 = vadd.f32 %v2714_v16, %v5182_v59  ;;  %v2711_v57 = vadd.f32 %v2707_v45, %v2703_v54  ;;  %v2696_v9 = vadd.f32 %v2692_v11, %v2622_v4  ;;  %v2728_v30 = vand.u32 2147483647, %v3764_v32 }
 0x196   : > { %v2866_v22 = vpop.f32.mrb[72].mxu0  ;;  %v2744_v43 = vand.u32 2147483647, %v2740_v23  ;;  %v5310_v50 = vadd.f32 %v2750_v31, %v2734_v42 }
 0x197   : > { %v2715_v60 = vmul.f32 %v2711_v57, %v5216_v40  ;;  %v2704_v14 = vadd.f32 %v2700_v13, %v2696_v9  ;;  %v3334_v55 = vmul.f32 %v5045_v46, %v2866_v22  ;;  %v2868_v59 = vpop.f32.mrb[73].mxu0  ;;  %v2955_v61 = vpop.f32.mrb[72].mxu1  ;;  %v2731_v40 = vsub.f32 1.0, %v2727_v52 }
 0x198   : > { %v3342_v20 = vmul.f32 %v5049_v2, %v2868_v59  ;;  %v2957_v37 = vpop.f32.mrb[73].mxu1  ;;  %v3350_v16 = vmul.f32 %v5059_v62, %v2955_v61  ;;  %v2751_v57 = vmax.f32 %v2747_v0, 0.0  ;;  %v2732_v9 = vsub.f32 1.0, %v2728_v30 }
 0x199   : > { %v5296_v51 = vadd.f32 %v2715_v60, %v5194_v5  ;;  %v2712_v41 = vadd.f32 %v2708_v21, %v2704_v14  ;;  %v3338_v18 = vadd.f32 %v3334_v55, %v2957_v37  ;;  %v2735_v35 = vmax.f32 %v2731_v40, 0.0 }
 0x19a   : > { %v2872_v58 = vpop.f32.mrb[74].mxu0  ;;  %v2748_v52 = vsub.f32 1.0, %v2744_v43  ;;  %v2736_v37 = vmax.f32 %v2732_v9, 0.0 }
 0x19b   : > { %v2716_v8 = vmul.f32 %v2712_v41, %v5225_v17  ;;  %v3346_v45 = vadd.f32 %v3342_v20, %v3338_v18  ;;  %v3335_v54 = vmul.f32 %v5107_v7, %v2872_v58  ;;  %v2874_v5 = vpop.f32.mrb[75].mxu0  ;;  %v2961_v11 = vpop.f32.mrb[74].mxu1  ;;  %v5317_v61 = vadd.f32 %v2751_v57, %v2735_v35 }
 0x19c   : > { %v3343_v33 = vmul.f32 %v5111_v29, %v2874_v5  ;;  %v2963_v19 = vpop.f32.mrb[75].mxu1  ;;  %v3351_v56 = vmul.f32 %v5120_v1, %v2961_v11  ;;  %v2752_v42 = vmax.f32 %v2748_v52, 0.0 }
 0x19d   : > { %v5308_v13 = vadd.f32 %v2716_v8, %v5205_v12  ;;  %v3354_v4 = vadd.f32 %v3350_v16, %v3346_v45  ;;  %v3339_v26 = vadd.f32 %v3335_v54, %v2963_v19 }
 0x19e   : > { %v2878_v17 = vpop.f32.mrb[76].mxu0  ;;  %v5327_v45 = vadd.f32 %v2752_v42, %v2736_v37 }
 0x19f   : > { %v3358_v22 = vmul.f32 %v3354_v4, %v5299_v39  ;;  %v3347_v47 = vadd.f32 %v3343_v33, %v3339_v26  ;;  %v3336_v32 = vmul.f32 %v5124_v28, %v2878_v17  ;;  %v2880_v23 = vpop.f32.mrb[77].mxu0  ;;  %v2967_v60 = vpop.f32.mrb[76].mxu1 }
 0x1a0   : > { %v3344_v12 = vmul.f32 %v5128_v34, %v2880_v23  ;;  %v2969_v21 = vpop.f32.mrb[77].mxu1  ;;  %v3352_v41 = vmul.f32 %v5137_v15, %v2967_v60 }
 0x1a1   : > { %v3362_v14 = vadd.f32 %v3358_v22, %v5214_v44  ;;  %v3355_v55 = vadd.f32 %v3351_v56, %v3347_v47  ;;  %v3340_v59 = vadd.f32 %v3336_v32, %v2969_v21 }
 0x1a2   : > { %v2884_v20 = vpop.f32.mrb[78].mxu0 }
 0x1a3   : > { %3430 = vst [vmem:[%s5319_s24] sm:$0xff] %v3362_v14  ;;  %v3359_v31 = vmul.f32 %v3355_v55, %v5310_v50  ;;  %v3348_v18 = vadd.f32 %v3344_v12, %v3340_v59  ;;  %v3337_v40 = vmul.f32 %v5141_v63, %v2884_v20  ;;  %v2886_v44 = vpop.f32.mrb[79].mxu0  ;;  %v2973_v58 = vpop.f32.mrb[78].mxu1 }
 0x1a4   : > { %v3345_v0 = vmul.f32 %v5145_v27, %v2886_v44  ;;  %v2975_v30 = vpop.f32.mrb[79].mxu1  ;;  %v3353_v11 = vmul.f32 %v5189_v25, %v2973_v58 }
 0x1a5   : > { %v3363_v43 = vadd.f32 %v3359_v31, %v5223_v10  ;;  %v3356_v8 = vadd.f32 %v3352_v41, %v3348_v18  ;;  %v3341_v16 = vadd.f32 %v3337_v40, %v2975_v30 }
 0x1a6   : > { %v3044_v54 = vpop.f32.mrb[80].mxu0 }
 0x1a7   : > { %3431 = vst [vmem:[%s5319_s24 + $0x8] sm:$0xff] %v3363_v43  ;;  %v3360_v5 = vmul.f32 %v3356_v8, %v5317_v61  ;;  %v3349_v33 = vadd.f32 %v3345_v0, %v3341_v16  ;;  %v3366_v19 = vmul.f32 %v5045_v46, %v3044_v54  ;;  %v3046_v4 = vpop.f32.mrb[81].mxu0  ;;  %v3133_v26 = vpop.f32.mrb[80].mxu1 }
 0x1a8   : > { %v3374_v17 = vmul.f32 %v5049_v2, %v3046_v4  ;;  %v3135_v35 = vpop.f32.mrb[81].mxu1  ;;  %v3382_v56 = vmul.f32 %v5059_v62, %v3133_v26 }
 0x1a9   : > { %v3364_v10 = vadd.f32 %v3360_v5, %v5232_v36  ;;  %v3357_v57 = vadd.f32 %v3353_v11, %v3349_v33  ;;  %v3370_v9 = vadd.f32 %v3366_v19, %v3135_v35 }
 0x1aa   : > { %v3050_v52 = vpop.f32.mrb[82].mxu0 }
 0x1ab   : > { %3432 = vst [vmem:[%s5319_s24 + $0x10] sm:$0xff] %v3364_v10  ;;  %v3361_v22 = vmul.f32 %v3357_v57, %v5327_v45  ;;  %v3378_v47 = vadd.f32 %v3374_v17, %v3370_v9  ;;  %v3367_v32 = vmul.f32 %v5107_v7, %v3050_v52  ;;  %v3052_v23 = vpop.f32.mrb[83].mxu0  ;;  %v3139_v60 = vpop.f32.mrb[82].mxu1 }
 0x1ac   : > { %v3375_v12 = vmul.f32 %v5111_v29, %v3052_v23  ;;  %v3141_v21 = vpop.f32.mrb[83].mxu1  ;;  %v3383_v37 = vmul.f32 %v5120_v1, %v3139_v60 }
 0x1ad   : > { %v3365_v14 = vadd.f32 %v3361_v22, %v5239_v6  ;;  %v3386_v36 = vadd.f32 %v3382_v56, %v3378_v47  ;;  %v3371_v55 = vadd.f32 %v3367_v32, %v3141_v21 }
 0x1ae   : > { %v3056_v59 = vpop.f32.mrb[84].mxu0 }
 0x1af   : > { %3433 = vst [vmem:[%s5319_s24 + $0x18] sm:$0xff] %v3365_v14  ;;  %v3390_v20 = vmul.f32 %v3386_v36, %v5299_v39  ;;  %v3379_v42 = vadd.f32 %v3375_v12, %v3371_v55  ;;  %v3368_v31 = vmul.f32 %v5124_v28, %v3056_v59  ;;  %v3058_v41 = vpop.f32.mrb[85].mxu0  ;;  %v3145_v18 = vpop.f32.mrb[84].mxu1 }
 0x1b0   : > { %v3376_v40 = vmul.f32 %v5128_v34, %v3058_v41  ;;  %v3147_v44 = vpop.f32.mrb[85].mxu1  ;;  %v3384_v8 = vmul.f32 %v5137_v15, %v3145_v18 }
 0x1b1   : > { %v3394_v58 = vadd.f32 %v3390_v20, %v5246_v53  ;;  %v3387_v6 = vadd.f32 %v3383_v37, %v3379_v42  ;;  %v3372_v0 = vadd.f32 %v3368_v31, %v3147_v44 }
 0x1b2   : > { %v3062_v30 = vpop.f32.mrb[86].mxu0 }
 0x1b3   : > { %3807 = vst [vmem:[%s5319_s24 + $0x20] sm:$0xff] %v3394_v58  ;;  %v3391_v43 = vmul.f32 %v3387_v6, %v5310_v50  ;;  %v3380_v16 = vadd.f32 %v3376_v40, %v3372_v0  ;;  %v3369_v54 = vmul.f32 %v5141_v63, %v3062_v30  ;;  %v3064_v5 = vpop.f32.mrb[87].mxu0  ;;  %v3151_v11 = vpop.f32.mrb[86].mxu1 }
 0x1b4   : > { %v3377_v33 = vmul.f32 %v5145_v27, %v3064_v5  ;;  %v3153_v19 = vpop.f32.mrb[87].mxu1  ;;  %v3385_v10 = vmul.f32 %v5189_v25, %v3151_v11 }
 0x1b5   : > { %v3395_v4 = vadd.f32 %v3391_v43, %v5253_v48  ;;  %v3388_v53 = vadd.f32 %v3384_v8, %v3380_v16  ;;  %v3373_v26 = vadd.f32 %v3369_v54, %v3153_v19 }
 0x1b6   : > { %v3222_v17 = vpop.f32.mrb[88].mxu0 }
 0x1b7   : > { %3808 = vst [vmem:[%s5319_s24 + $0x28] sm:$0xff] %v3395_v4  ;;  %v3392_v35 = vmul.f32 %v3388_v53, %v5317_v61  ;;  %v3381_v57 = vadd.f32 %v3377_v33, %v3373_v26  ;;  %v3398_v9 = vmul.f32 %v5045_v46, %v3222_v17  ;;  %v3224_v52 = vpop.f32.mrb[89].mxu0  ;;  %v3311_v22 = vpop.f32.mrb[88].mxu1 }
 0x1b8   : > { %v3406_v56 = vmul.f32 %v5049_v2, %v3224_v52  ;;  %v3313_v47 = vpop.f32.mrb[89].mxu1  ;;  %v3414_v21 = vmul.f32 %v5059_v62, %v3311_v22 }
 0x1b9   : > { %v3396_v32 = vadd.f32 %v3392_v35, %v5261_v24  ;;  %v3389_v48 = vadd.f32 %v3385_v10, %v3381_v57  ;;  %v3402_v23 = vadd.f32 %v3398_v9, %v3313_v47 }
 0x1ba   : > { %v3228_v60 = vpop.f32.mrb[90].mxu0 }
 0x1bb   : > { %3809 = vst [vmem:[%s5319_s24 + $0x30] sm:$0xff] %v3396_v32  ;;  %v3393_v12 = vmul.f32 %v3389_v48, %v5327_v45  ;;  %v3410_v14 = vadd.f32 %v3406_v56, %v3402_v23  ;;  %v3399_v36 = vmul.f32 %v5107_v7, %v3228_v60  ;;  %v3230_v46 = vpop.f32.mrb[91].mxu0  ;;  %v3317_v55 = vpop.f32.mrb[90].mxu1 }
 0x1bc   : > { %v3407_v59 = vmul.f32 %v5111_v29, %v3230_v46  ;;  %v3319_v2 = vpop.f32.mrb[91].mxu1  ;;  %v3415_v41 = vmul.f32 %v5120_v1, %v3317_v55 }
 0x1bd   : > { %v3397_v20 = vadd.f32 %v3393_v12, %v5271_v38  ;;  %v3418_v24 = vadd.f32 %v3414_v21, %v3410_v14  ;;  %v3403_v37 = vadd.f32 %v3399_v36, %v3319_v2 }
 0x1be   : > { %v3234_v42 = vpop.f32.mrb[92].mxu0 }
 0x1bf   : > { %3810 = vst [vmem:[%s5319_s24 + $0x38] sm:$0xff] %v3397_v20  ;;  %v3422_v31 = vmul.f32 %v3418_v24, %v5299_v39  ;;  %v3411_v62 = vadd.f32 %v3407_v59, %v3403_v37  ;;  %v3400_v18 = vmul.f32 %v5124_v28, %v3234_v42  ;;  %v3236_v7 = vpop.f32.mrb[93].mxu0  ;;  %v3323_v40 = vpop.f32.mrb[92].mxu1 }
 0x1c0   : > { %v3408_v44 = vmul.f32 %v5128_v34, %v3236_v7  ;;  %v3325_v29 = vpop.f32.mrb[93].mxu1  ;;  %v3416_v1 = vmul.f32 %v5137_v15, %v3323_v40 }
 0x1c1   : > { %v3426_v58 = vadd.f32 %v3422_v31, %v5278_v3  ;;  %v3419_v38 = vadd.f32 %v3415_v41, %v3411_v62  ;;  %v3404_v6 = vadd.f32 %v3400_v18, %v3325_v29 }
 0x1c2   : > { %v3240_v0 = vpop.f32.mrb[94].mxu0 }
 0x1c3   : > { %3811 = vst [vmem:[%s5319_s24 + $0x40] sm:$0xff] %v3426_v58  ;;  %v3423_v39 = vmul.f32 %v3419_v38, %v5310_v50  ;;  %v3412_v30 = vadd.f32 %v3408_v44, %v3404_v6  ;;  %v3401_v28 = vmul.f32 %v5141_v63, %v3240_v0  ;;  %v3242_v43 = vpop.f32.mrb[95].mxu0  ;;  %v3329_v34 = vpop.f32.mrb[94].mxu1 }
 0x1c4   : > { %v3409_v8 = vmul.f32 %v5145_v27, %v3242_v43  ;;  %v3331_v3 = vpop.f32.mrb[95].mxu1  ;;  %v3417_v15 = vmul.f32 %v5189_v25, %v3329_v34 }
 0x1c5   : > { %v3427_v16 = vadd.f32 %v3423_v39, %v5287_v49  ;;  %v3420_v54 = vadd.f32 %v3416_v1, %v3412_v30  ;;  %v3405_v5 = vadd.f32 %v3401_v28, %v3331_v3 }
 0x1c7   : > { %3812 = vst [vmem:[%s5319_s24 + $0x48] sm:$0xff] %v3427_v16  ;;  %v3424_v50 = vmul.f32 %v3420_v54, %v5317_v61  ;;  %v3413_v11 = vadd.f32 %v3409_v8, %v3405_v5 }
 0x1c9   : > { %v3428_v63 = vadd.f32 %v3424_v50, %v5296_v51  ;;  %v3421_v33 = vadd.f32 %v3417_v15, %v3413_v11 }
 0x1cb   : > { %3813 = vst [vmem:[%s5319_s24 + $0x50] sm:$0xff] %v3428_v63  ;;  %v3425_v27 = vmul.f32 %v3421_v33, %v5327_v45 }
 0x1cd   : > { %v3429_v49 = vadd.f32 %v3425_v27, %v5308_v13 }
 0x1cf   : > { %3814 = vst [vmem:[%s5319_s24 + $0x58] sm:$0xff] %v3429_v49 }
 0x1d0   : > { %3955 = shalt.err (!%p3952_p3)
}
 0x1d1   : > { %s3956_s11 = scalar_lea.hbm %s5388_s6, 1536  ;;  %s3960_s10 = scalar_lea.hbm %s5446_s4, 3072 }
 0x1d2   : > { %p3957_p5 = scmp.ne.s32.totalorder %s5388_s6, %s3956_s11  ;;  %p3961_p9 = scmp.lt.u32.totalorder %s5388_s6, %s5446_s4 }
 0x1d3   : > { %p3962_p12 = scmp.lt.u32.totalorder %s3960_s10, %s3956_s11  ;;  %p3964_p11 = scmp.lt.u32.totalorder %s3956_s11, %s5388_s6 }
 0x1d4   : > { %p3958_p6 = pnand %p3957_p5, %p4096_p4 }
 0x1d5   : > { %p3963_p10 = por %p3962_p12, %p3961_p9 }
 0x1d6   : > { %p3959_p7 = pneg %p3958_p6 }
 0x1d7   : > { %p3965_p13 = por %p3964_p11, %p3963_p10 }
 0x1d9   : > { %p3966_p0 = pnand %p3965_p13, %p3959_p7 }
 0x1db   : > { %3969 = shalt.err (!%p3966_p0)
}
 0x1dc   : > { %s4029_s24 = smov 128   ;;  %s4030_s26 = smov 8  }
 0x1dd   : > { %3826 = dma.vmem_to_hbm [thread:$0]  (%p4096_p4), %s5391_s29, 1536, %s5388_s6, %s5396_s18, %s4029_s24, %s4029_s24, %s4030_s26  }
 0x1de PF: > { %p3838_p1 = scmp.ge.s32.totalorder %s4024_s20, 2  ;;  %s3475_s30 = sand.u32 1, %s4004_s15  }
 0x1df   : > { %s3476_s5 = scalar_lea.sflag [#allocation3], %s3475_s30 }
 0x1e0   : > { %p3833_p2 = pnand %p3838_p1, %p4103_p8 }
 0x1e2   : > { %3999 = dma.done.wait (!%p3833_p2), %s3476_s5, 1536  }
 0x1e3   : > { %4001 = vsyncadd (!%p3833_p2), %s3476_s5, 4294965760  ;;  %s18_s20 = sadd.s32 1, %s4024_s20   ;;  %s5475_s15 = smov %s4008_s16 }
 0x1e4   : > { %p15_p3 = scmp.ge.s32.totalorder %s18_s20, 4   ;;  %s5476_s16 = smov %s4012_s17 }
 0x1e5   : > { %s5477_s17 = smov %s4109_s28  ;;  %s5478_s18 = smov %s4020_s19 }
 0x1e6   : > { %s5479_s19 = smov %s5481_s23  ;;  %17 = sbr.rel (!%p15_p3) target bundleno = 5 (0x5), region = 89 }
 0x1ed   :  { %3481 = vsyncpa [#allocation3], 1 }
 0x1ee   :  { %3483 = vsyncpa [#allocation3 + $0x1], 1 }
 0x1ef   :  { %3484 = vsyncpa [#allocation4], 1 }
 0x1f0   :  { %3486 = vsyncpa [#allocation4 + $0x1], 1 }

</bundles_post_ra>
